<compile_context>
chip_gen: v5e
topology: v5e:2x2
jax: 0.10.0
libtpu: 0.0.40
codegen_flags: <defaults>
</compile_context>

<pallas_src>
import functools

import jax
import jax.numpy as jnp
from jax.experimental import pallas as pl
from jax.experimental.pallas import tpu as pltpu

_BN_EPS = 1e-5
_LANES = 128


def _round_up(x, m):
    return (x + m - 1) // m * m


# ------------------------------- Pallas kernels -------------------------------
def _conv_stats_kernel(sheet_ref, w_ref, mask_ref, y_ref, stats_ref,
                       *, tm, halo, wp, cin, kp, cp):
    """One M-tile: in-kernel haloed im2col + fused conv matmul + BN partials.

    sheet_ref: (SHEET_ROWS, Cin) f32  padded-input sheet (VMEM resident)
    w_ref    : (KP, CP)         bf16  weights (Cout zero-padded to CP)
    mask_ref : (TM, 1)          f32   1.0 for valid output rows, 0.0 for junk
    y_ref    : (TM, CP)         bf16  conv output tile
    stats_ref: (8, CP)          f32   row0 = sum(y), row1 = sum(y*y), rest 0
    """
    base = pl.multiple_of(pl.program_id(0) * tm, tm)
    # Aligned haloed stripe; all 9 taps are static row-shifted slices of it.
    blk = sheet_ref[pl.ds(base, tm + halo), :]                     # (tm+halo, cin)
    pieces = [blk[di * wp + dj: di * wp + dj + tm, :]
              for di in range(3) for dj in range(3)]               # 9 x (tm, cin)
    k = 9 * cin
    if kp > k:                                                     # pad K for bf16
        pieces.append(jnp.zeros((tm, kp - k), jnp.float32))
    slab = jnp.concatenate(pieces, axis=-1).astype(jnp.bfloat16)   # (tm, kp)

    y = jnp.dot(slab, w_ref[...], preferred_element_type=jnp.float32)  # (tm, cp)

    # BN batch statistics from the f32 accumulator; junk rows masked out.
    msk = mask_ref[...]                                            # (tm, 1)
    ym = y * msk
    stats_ref[...] = jnp.concatenate(
        [jnp.sum(ym, axis=0, keepdims=True),
         jnp.sum(ym * y, axis=0, keepdims=True),
         jnp.zeros((6, cp), jnp.float32)], axis=0)                 # one full store

    y_ref[...] = y.astype(y_ref.dtype)                             # bf16 intermediate


def _bn_relu_kernel(y_ref, scale_ref, shift_ref, out_ref):
    """out = relu(y*scale + shift); elementwise math kept in f32 (v5e-safe)."""
    y = y_ref[...].astype(jnp.float32)
    out_ref[...] = jnp.maximum(
        y * scale_ref[...] + shift_ref[...], 0.0).astype(out_ref.dtype)


# -------------------------------- layer wrapper --------------------------------
def conv_bn_relu(x_nhwc, w_hwio, gamma, beta, *, tm=1024):
    """One conv3x3(pad=1, no bias) + batch-stat BN + ReLU.  Returns bf16 NHWC."""
    n, h, w, cin = x_nhwc.shape
    kh, kw, _, cout = w_hwio.shape
    assert (kh, kw) == (3, 3)
    hp, wp = h + 2, w + 2
    p = n * hp * wp                       # candidate output rows (padded grid)
    k = kh * kw * cin
    kp = _round_up(k, 16)                 # bf16-friendly contraction dim
    cp = _round_up(cout, _LANES)          # lane-dense output channels

    tm = min(tm, _round_up(p, 16))
    assert tm % 16 == 0
    m_pad = _round_up(p, tm)
    num_tiles = m_pad // tm
    halo = _round_up(2 * wp + 2, 16)      # rows needed beyond a tile for taps
    sheet_rows = m_pad + halo

    # Resident-sheet VMEM guard (lane dim pads to 128 in VMEM, double-buffered).
    assert sheet_rows * _LANES * 4 * 2 < 20 * 1024 * 1024, (
        "padded-input sheet too large for VMEM residency; use stripe-DMA path")

    # Padded-input sheet (1x input size in HBM; the 9x im2col slab is gone).
    xp = jnp.pad(x_nhwc.astype(jnp.float32), ((0, 0), (1, 1), (1, 1), (0, 0)))
    sheet = jnp.pad(xp.reshape(p, cin), ((0, sheet_rows - p), (0, 0)))

    # Validity mask: output row p <-> padded position (n, r, w); valid iff
    # r < H and w < W.  Junk rows are excluded from the BN statistics only.
    valid = (jnp.arange(hp)[:, None] < h) & (jnp.arange(wp)[None, :] < w)
    mask = jnp.broadcast_to(valid[None], (n, hp, wp)).reshape(p, 1)
    mask = jnp.pad(mask.astype(jnp.float32), ((0, m_pad - p), (0, 0)))

    # Weights (3,3,Cin,Cout) -> (KP, CP) bf16.  Conv bias intentionally omitted:
    # training-mode (batch-statistic) BN cancels it exactly.
    w2 = jnp.pad(w_hwio.reshape(k, cout),
                 ((0, kp - k), (0, cp - cout))).astype(jnp.bfloat16)

    cparams = pltpu.CompilerParams(
        dimension_semantics=("parallel",),
        vmem_limit_bytes=32 * 1024 * 1024,   # <=32 MiB: safe on v7x (64 MiB/TC)
    )

    conv_kernel = functools.partial(
        _conv_stats_kernel, tm=tm, halo=halo, wp=wp, cin=cin, kp=kp, cp=cp)

    # --- pass 1: in-kernel im2col + conv + per-tile BN partial statistics ---
    y, stats = pl.pallas_call(
        conv_kernel,
        out_shape=(
            jax.ShapeDtypeStruct((m_pad, cp), jnp.bfloat16),
            jax.ShapeDtypeStruct((num_tiles * 8, cp), jnp.float32),
        ),
        grid_spec=pltpu.PrefetchScalarGridSpec(
            num_scalar_prefetch=0,
            grid=(num_tiles,),
            in_specs=[
                pl.BlockSpec((sheet_rows, cin), lambda i: (0, 0)),  # resident
                pl.BlockSpec((kp, cp), lambda i: (0, 0)),           # resident
                pl.BlockSpec((tm, 1), lambda i: (i, 0)),
            ],
            out_specs=[
                pl.BlockSpec((tm, cp), lambda i: (i, 0)),
                pl.BlockSpec((8, cp), lambda i: (i, 0)),
            ],
        ),
        compiler_params=cparams,
    )(sheet, w2, mask)

    # --- glue: fold batch statistics into per-channel scale / shift ---
    stats = stats.reshape(num_tiles, 8, cp)
    cnt = jnp.float32(n * h * w)          # masked rows contribute nothing
    mean = jnp.sum(stats[:, 0, :], axis=0) / cnt
    var = jnp.maximum(jnp.sum(stats[:, 1, :], axis=0) / cnt - mean * mean, 0.0)
    gamma_p = jnp.pad(gamma, (0, cp - cout))
    beta_p = jnp.pad(beta, (0, cp - cout))
    scale_vec = gamma_p * jax.lax.rsqrt(var + _BN_EPS)
    shift_vec = beta_p - mean * scale_vec
    scale = scale_vec.reshape(1, cp)
    shift = shift_vec.reshape(1, cp)

    # --- pass 2: normalize + ReLU; lane-dense bf16 stores ---
    out = pl.pallas_call(
        _bn_relu_kernel,
        out_shape=jax.ShapeDtypeStruct((m_pad, cp), jnp.bfloat16),
        grid_spec=pltpu.PrefetchScalarGridSpec(
            num_scalar_prefetch=0,
            grid=(num_tiles,),
            in_specs=[
                pl.BlockSpec((tm, cp), lambda i: (i, 0)),
                pl.BlockSpec((1, cp), lambda i: (0, 0)),
                pl.BlockSpec((1, cp), lambda i: (0, 0)),
            ],
            out_specs=pl.BlockSpec((tm, cp), lambda i: (i, 0)),
        ),
        compiler_params=cparams,
    )(y, scale, shift)

    # Valid output rows are the interior of the padded enumeration.
    out = out[:p].reshape(n, hp, wp, cp)[:, :h, :w, :cout]
    return out                            # bf16 (N, H, W, Cout)


@functools.partial(jax.jit, static_argnames=("tm",))
def conv_block_forward(x_nchw, params, *, tm=1024):
    """Full conv_block forward.  Input/output are NCHW (PyTorch convention)."""
    x = jnp.transpose(x_nchw, (0, 2, 3, 1))   # NCHW -> NHWC
    x = conv_bn_relu(x, params["w1"], params["g1"], params["be1"], tm=tm)
    x = conv_bn_relu(x, params["w2"], params["g2"], params["be2"], tm=tm)
    return jnp.transpose(x, (0, 3, 1, 2)).astype(jnp.float32)


# ------------------------------ pure-JAX reference -----------------------------
def _ref_layer(x_nhwc, w_hwio, b, gamma, beta):
    # bf16 conv operands + bf16 activation storage mirror the kernel path; BN
    # statistics and elementwise math stay in f32.  The conv bias is kept here:
    # batch-statistic BN cancels it, so the (bias-free) kernel must agree.
    y = jax.lax.conv_general_dilated(
        x_nhwc.astype(jnp.bfloat16), w_hwio.astype(jnp.bfloat16),
        window_strides=(1, 1), padding="SAME",
        dimension_numbers=("NHWC", "HWIO", "NHWC"),
        preferred_element_type=jnp.float32,
    ) + b
    mean = jnp.mean(y, axis=(0, 1, 2), keepdims=True)
    var = jnp.mean((y - mean) ** 2, axis=(0, 1, 2), keepdims=True)
    out = jnp.maximum((y - mean) * jax.lax.rsqrt(var + _BN_EPS) * gamma + beta, 0.0)
    return out.astype(jnp.bfloat16)


def _ref_forward(x_nchw, prm):
    x = jnp.transpose(x_nchw, (0, 2, 3, 1))
    x = _ref_layer(x, prm["w1"], prm["b1"], prm["g1"], prm["be1"])
    x = _ref_layer(x, prm["w2"], prm["b2"], prm["g2"], prm["be2"])
    return jnp.transpose(x, (0, 3, 1, 2)).astype(jnp.float32)


# ------------------------------------ main -------------------------------------
def _init_params(key, cin, cout, k=3):
    ks = jax.random.split(key, 4)
    lim1 = 1.0 / jnp.sqrt(jnp.float32(cin * k * k))
    lim2 = 1.0 / jnp.sqrt(jnp.float32(cout * k * k))
    return {
        "w1": jax.random.uniform(ks[0], (k, k, cin, cout), jnp.float32, -lim1, lim1),
        "b1": jax.random.uniform(ks[1], (cout,), jnp.float32, -lim1, lim1),
        "g1": jnp.ones((cout,), jnp.float32),
        "be1": jnp.zeros((cout,), jnp.float32),
        "w2": jax.random.uniform(ks[2], (k, k, cout, cout), jnp.float32, -lim2, lim2),
        "b2": jax.random.uniform(ks[3], (cout,), jnp.float32, -lim2, lim2),
        "g2": jnp.ones((cout,), jnp.float32),
        "be2": jnp.zeros((cout,), jnp.float32),
    }


if __name__ == "__main__":
    key = jax.random.PRNGKey(0)
    kx, kprm = jax.random.split(key)

    N, CIN, COUT, H, W = 2, 3, 8, 16, 16
    x = jax.random.normal(kx, (N, CIN, H, W), jnp.float32)   # NCHW like PyTorch
    params = _init_params(kprm, CIN, COUT)

    # tm=128 -> 6 M-tiles over the padded enumeration on the toy shape
    # (exercises the cross-tile BN reduction); default tm=1024 for real sizes.
    y = conv_block_forward(x, params, tm=128)
    y = jax.block_until_ready(y)
    assert y.shape == (N, COUT, H, W) and y.dtype == jnp.float32

    y_ref = _ref_forward(x, params)
    # Tolerance budget: the kernel quantizes the conv intermediate y and the
    # activations to bf16 (per perf review); that error is amplified by the
    # BN 1/sigma across two layers (~2-3e-2 worst case).
    assert jnp.allclose(y, y_ref, rtol=4e-2, atol=4e-2), "mismatch vs reference"

    print("KERNEL_OK")
</pallas_src>

<mosaic_0001>
module attributes {stable_mosaic.version = 11 : i64} {
  func.func @_conv_stats_kernel(%arg0: i32, %arg1: memref<816x3xf32, #tpu.memory_space<vmem>>, %arg2: memref<32x128xbf16, #tpu.memory_space<vmem>>, %arg3: memref<128x1xf32, #tpu.memory_space<vmem>>, %arg4: memref<128x128xbf16, #tpu.memory_space<vmem>>, %arg5: memref<8x128xf32, #tpu.memory_space<vmem>>) attributes {dimension_semantics = [#tpu.dimension_semantics<parallel>], iteration_bounds = array<i64: 6>, scalar_prefetch = 0 : i64, scratch_operands = 0 : i64, tpu.core_type = #tpu.core_type<tc>, window_params = [{pipeline_mode = #tpu.pipeline_mode<synchronous>, transform_indices = @transform_0, window_bounds = array<i64: 816, 3>}, {pipeline_mode = #tpu.pipeline_mode<synchronous>, transform_indices = @transform_1, window_bounds = array<i64: 32, 128>}, {transform_indices = @transform_2, window_bounds = array<i64: 128, 1>}, {transform_indices = @transform_3, window_bounds = array<i64: 128, 128>}, {transform_indices = @transform_4, window_bounds = array<i64: 8, 128>}]} {
    %c128_i32 = arith.constant 128 : i32
    %0 = arith.muli %arg0, %c128_i32 : i32
    %1 = tpu.assume_multiple %0, 128 : i32
    %2 = arith.index_cast %1 : i32 to index
    %c0 = arith.constant 0 : index
    %3 = vector.load %arg1[%2, %c0] : memref<816x3xf32, #tpu.memory_space<vmem>>, vector<176x3xf32>
    %4 = vector.extract_strided_slice %3 {offsets = [0, 0], sizes = [128, 3], strides = [1, 1]} : vector<176x3xf32> to vector<128x3xf32>
    %5 = vector.extract_strided_slice %3 {offsets = [1, 0], sizes = [128, 3], strides = [1, 1]} : vector<176x3xf32> to vector<128x3xf32>
    %6 = vector.extract_strided_slice %3 {offsets = [2, 0], sizes = [128, 3], strides = [1, 1]} : vector<176x3xf32> to vector<128x3xf32>
    %7 = vector.extract_strided_slice %3 {offsets = [18, 0], sizes = [128, 3], strides = [1, 1]} : vector<176x3xf32> to vector<128x3xf32>
    %8 = vector.extract_strided_slice %3 {offsets = [19, 0], sizes = [128, 3], strides = [1, 1]} : vector<176x3xf32> to vector<128x3xf32>
    %9 = vector.extract_strided_slice %3 {offsets = [20, 0], sizes = [128, 3], strides = [1, 1]} : vector<176x3xf32> to vector<128x3xf32>
    %10 = vector.extract_strided_slice %3 {offsets = [36, 0], sizes = [128, 3], strides = [1, 1]} : vector<176x3xf32> to vector<128x3xf32>
    %11 = vector.extract_strided_slice %3 {offsets = [37, 0], sizes = [128, 3], strides = [1, 1]} : vector<176x3xf32> to vector<128x3xf32>
    %12 = vector.extract_strided_slice %3 {offsets = [38, 0], sizes = [128, 3], strides = [1, 1]} : vector<176x3xf32> to vector<128x3xf32>
    %cst = arith.constant 0.000000e+00 : f32
    %13 = vector.broadcast %cst : f32 to vector<128x5xf32>
    %14 = tpu.concatenate %4, %5, %6, %7, %8, %9, %10, %11, %12, %13 in 1 : vector<128x3xf32>, vector<128x3xf32>, vector<128x3xf32>, vector<128x3xf32>, vector<128x3xf32>, vector<128x3xf32>, vector<128x3xf32>, vector<128x3xf32>, vector<128x3xf32>, vector<128x5xf32> -> vector<128x32xf32>
    %15 = arith.truncf %14 : vector<128x32xf32> to vector<128x32xbf16>
    %c0_0 = arith.constant 0 : index
    %c0_1 = arith.constant 0 : index
    %16 = vector.load %arg2[%c0_0, %c0_1] : memref<32x128xbf16, #tpu.memory_space<vmem>>, vector<32x128xbf16>
    %cst_2 = arith.constant dense<0.000000e+00> : vector<128x128xf32>
    %17 = tpu.matmul %15, %16, %cst_2 {dimension_numbers = #tpu.dot_dimension_numbers<[1], [0], [0], [1], [0, 0, 1, 1], [], []>} : vector<128x32xbf16>, vector<32x128xbf16>, vector<128x128xf32> -> vector<128x128xf32>
    %c0_3 = arith.constant 0 : index
    %c0_4 = arith.constant 0 : index
    %18 = vector.load %arg3[%c0_3, %c0_4] : memref<128x1xf32, #tpu.memory_space<vmem>>, vector<128x1xf32>
    %19 = vector.broadcast %18 : vector<128x1xf32> to vector<128x128xf32>
    %20 = arith.mulf %17, %19 : vector<128x128xf32>
    %cst_5 = arith.constant dense<0.000000e+00> : vector<128xf32>
    %21 = vector.multi_reduction <add>, %20, %cst_5 [0] : vector<128x128xf32> to vector<128xf32>
    %22 = vector.shape_cast %21 : vector<128xf32> to vector<1x128xf32>
    %23 = arith.mulf %20, %17 : vector<128x128xf32>
    %cst_6 = arith.constant dense<0.000000e+00> : vector<128xf32>
    %24 = vector.multi_reduction <add>, %23, %cst_6 [0] : vector<128x128xf32> to vector<128xf32>
    %25 = vector.shape_cast %24 : vector<128xf32> to vector<1x128xf32>
    %cst_7 = arith.constant 0.000000e+00 : f32
    %26 = vector.broadcast %cst_7 : f32 to vector<6x128xf32>
    %27 = tpu.concatenate %22, %25, %26 in 0 : vector<1x128xf32>, vector<1x128xf32>, vector<6x128xf32> -> vector<8x128xf32>
    %c0_8 = arith.constant 0 : index
    %c0_9 = arith.constant 0 : index
    %28 = vector.load %arg5[%c0_8, %c0_9] : memref<8x128xf32, #tpu.memory_space<vmem>>, vector<8x128xf32>
    tpu.vector_store %arg5[%c0_8, %c0_9], %27 {strides = array<i32>} : memref<8x128xf32, #tpu.memory_space<vmem>>, vector<8x128xf32>,
    %29 = arith.truncf %17 : vector<128x128xf32> to vector<128x128xbf16>
    %c0_10 = arith.constant 0 : index
    %c0_11 = arith.constant 0 : index
    %30 = vector.load %arg4[%c0_10, %c0_11] : memref<128x128xbf16, #tpu.memory_space<vmem>>, vector<128x128xbf16>
    tpu.vector_store %arg4[%c0_10, %c0_11], %29 {strides = array<i32>} : memref<128x128xbf16, #tpu.memory_space<vmem>>, vector<128x128xbf16>,
    return
  }
  func.func @transform_0(%arg0: i32) -> (i32, i32) {
    %c0_i32 = arith.constant 0 : i32
    %c0_i32_0 = arith.constant 0 : i32
    %c0_i32_1 = arith.constant 0 : i32
    return %c0_i32, %c0_i32_0 : i32, i32
  }
  func.func @transform_1(%arg0: i32) -> (i32, i32) {
    %c0_i32 = arith.constant 0 : i32
    %c0_i32_0 = arith.constant 0 : i32
    %c0_i32_1 = arith.constant 0 : i32
    return %c0_i32, %c0_i32_0 : i32, i32
  }
  func.func @transform_2(%arg0: i32) -> (i32, i32) {
    %c0_i32 = arith.constant 0 : i32
    %c0_i32_0 = arith.constant 0 : i32
    return %arg0, %c0_i32 : i32, i32
  }
  func.func @transform_3(%arg0: i32) -> (i32, i32) {
    %c0_i32 = arith.constant 0 : i32
    %c0_i32_0 = arith.constant 0 : i32
    return %arg0, %c0_i32 : i32, i32
  }
  func.func @transform_4(%arg0: i32) -> (i32, i32) {
    %c0_i32 = arith.constant 0 : i32
    %c0_i32_0 = arith.constant 0 : i32
    return %arg0, %c0_i32 : i32, i32
  }
}

module attributes {stable_mosaic.version = 11 : i64} {
  func.func @_bn_relu_kernel(%arg0: i32, %arg1: memref<128x128xbf16, #tpu.memory_space<vmem>>, %arg2: memref<1x128xf32, #tpu.memory_space<vmem>>, %arg3: memref<1x128xf32, #tpu.memory_space<vmem>>, %arg4: memref<128x128xbf16, #tpu.memory_space<vmem>>) attributes {dimension_semantics = [#tpu.dimension_semantics<parallel>], iteration_bounds = array<i64: 6>, scalar_prefetch = 0 : i64, scratch_operands = 0 : i64, tpu.core_type = #tpu.core_type<tc>, window_params = [{transform_indices = @transform_0, window_bounds = array<i64: 128, 128>}, {pipeline_mode = #tpu.pipeline_mode<synchronous>, transform_indices = @transform_1, window_bounds = array<i64: 1, 128>}, {pipeline_mode = #tpu.pipeline_mode<synchronous>, transform_indices = @transform_2, window_bounds = array<i64: 1, 128>}, {transform_indices = @transform_3, window_bounds = array<i64: 128, 128>}]} {
    %c0 = arith.constant 0 : index
    %c0_0 = arith.constant 0 : index
    %0 = vector.load %arg1[%c0, %c0_0] : memref<128x128xbf16, #tpu.memory_space<vmem>>, vector<128x128xbf16>
    %1 = arith.extf %0 : vector<128x128xbf16> to vector<128x128xf32>
    %c0_1 = arith.constant 0 : index
    %c0_2 = arith.constant 0 : index
    %2 = vector.load %arg2[%c0_1, %c0_2] : memref<1x128xf32, #tpu.memory_space<vmem>>, vector<1x128xf32>
    %3 = vector.broadcast %2 : vector<1x128xf32> to vector<128x128xf32>
    %4 = arith.mulf %1, %3 : vector<128x128xf32>
    %c0_3 = arith.constant 0 : index
    %c0_4 = arith.constant 0 : index
    %5 = vector.load %arg3[%c0_3, %c0_4] : memref<1x128xf32, #tpu.memory_space<vmem>>, vector<1x128xf32>
    %6 = vector.broadcast %5 : vector<1x128xf32> to vector<128x128xf32>
    %7 = arith.addf %4, %6 : vector<128x128xf32>
    %cst = arith.constant 0.000000e+00 : f32
    %8 = vector.broadcast %cst : f32 to vector<128x128xf32>
    %9 = arith.maximumf %7, %8 : vector<128x128xf32>
    %10 = arith.truncf %9 : vector<128x128xf32> to vector<128x128xbf16>
    %c0_5 = arith.constant 0 : index
    %c0_6 = arith.constant 0 : index
    %11 = vector.load %arg4[%c0_5, %c0_6] : memref<128x128xbf16, #tpu.memory_space<vmem>>, vector<128x128xbf16>
    tpu.vector_store %arg4[%c0_5, %c0_6], %10 {strides = array<i32>} : memref<128x128xbf16, #tpu.memory_space<vmem>>, vector<128x128xbf16>,
    return
  }
  func.func @transform_0(%arg0: i32) -> (i32, i32) {
    %c0_i32 = arith.constant 0 : i32
    %c0_i32_0 = arith.constant 0 : i32
    return %arg0, %c0_i32 : i32, i32
  }
  func.func @transform_1(%arg0: i32) -> (i32, i32) {
    %c0_i32 = arith.constant 0 : i32
    %c0_i32_0 = arith.constant 0 : i32
    %c0_i32_1 = arith.constant 0 : i32
    return %c0_i32, %c0_i32_0 : i32, i32
  }
  func.func @transform_2(%arg0: i32) -> (i32, i32) {
    %c0_i32 = arith.constant 0 : i32
    %c0_i32_0 = arith.constant 0 : i32
    %c0_i32_1 = arith.constant 0 : i32
    return %c0_i32, %c0_i32_0 : i32, i32
  }
  func.func @transform_3(%arg0: i32) -> (i32, i32) {
    %c0_i32 = arith.constant 0 : i32
    %c0_i32_0 = arith.constant 0 : i32
    return %arg0, %c0_i32 : i32, i32
  }
}

module attributes {stable_mosaic.version = 11 : i64} {
  func.func @_conv_stats_kernel(%arg0: i32, %arg1: memref<816x8xf32, #tpu.memory_space<vmem>>, %arg2: memref<80x128xbf16, #tpu.memory_space<vmem>>, %arg3: memref<128x1xf32, #tpu.memory_space<vmem>>, %arg4: memref<128x128xbf16, #tpu.memory_space<vmem>>, %arg5: memref<8x128xf32, #tpu.memory_space<vmem>>) attributes {dimension_semantics = [#tpu.dimension_semantics<parallel>], iteration_bounds = array<i64: 6>, scalar_prefetch = 0 : i64, scratch_operands = 0 : i64, tpu.core_type = #tpu.core_type<tc>, window_params = [{pipeline_mode = #tpu.pipeline_mode<synchronous>, transform_indices = @transform_0, window_bounds = array<i64: 816, 8>}, {pipeline_mode = #tpu.pipeline_mode<synchronous>, transform_indices = @transform_1, window_bounds = array<i64: 80, 128>}, {transform_indices = @transform_2, window_bounds = array<i64: 128, 1>}, {transform_indices = @transform_3, window_bounds = array<i64: 128, 128>}, {transform_indices = @transform_4, window_bounds = array<i64: 8, 128>}]} {
    %c128_i32 = arith.constant 128 : i32
    %0 = arith.muli %arg0, %c128_i32 : i32
    %1 = tpu.assume_multiple %0, 128 : i32
    %2 = arith.index_cast %1 : i32 to index
    %c0 = arith.constant 0 : index
    %3 = vector.load %arg1[%2, %c0] : memref<816x8xf32, #tpu.memory_space<vmem>>, vector<176x8xf32>
    %4 = vector.extract_strided_slice %3 {offsets = [0, 0], sizes = [128, 8], strides = [1, 1]} : vector<176x8xf32> to vector<128x8xf32>
    %5 = vector.extract_strided_slice %3 {offsets = [1, 0], sizes = [128, 8], strides = [1, 1]} : vector<176x8xf32> to vector<128x8xf32>
    %6 = vector.extract_strided_slice %3 {offsets = [2, 0], sizes = [128, 8], strides = [1, 1]} : vector<176x8xf32> to vector<128x8xf32>
    %7 = vector.extract_strided_slice %3 {offsets = [18, 0], sizes = [128, 8], strides = [1, 1]} : vector<176x8xf32> to vector<128x8xf32>
    %8 = vector.extract_strided_slice %3 {offsets = [19, 0], sizes = [128, 8], strides = [1, 1]} : vector<176x8xf32> to vector<128x8xf32>
    %9 = vector.extract_strided_slice %3 {offsets = [20, 0], sizes = [128, 8], strides = [1, 1]} : vector<176x8xf32> to vector<128x8xf32>
    %10 = vector.extract_strided_slice %3 {offsets = [36, 0], sizes = [128, 8], strides = [1, 1]} : vector<176x8xf32> to vector<128x8xf32>
    %11 = vector.extract_strided_slice %3 {offsets = [37, 0], sizes = [128, 8], strides = [1, 1]} : vector<176x8xf32> to vector<128x8xf32>
    %12 = vector.extract_strided_slice %3 {offsets = [38, 0], sizes = [128, 8], strides = [1, 1]} : vector<176x8xf32> to vector<128x8xf32>
    %cst = arith.constant 0.000000e+00 : f32
    %13 = vector.broadcast %cst : f32 to vector<128x8xf32>
    %14 = tpu.concatenate %4, %5, %6, %7, %8, %9, %10, %11, %12, %13 in 1 : vector<128x8xf32>, vector<128x8xf32>, vector<128x8xf32>, vector<128x8xf32>, vector<128x8xf32>, vector<128x8xf32>, vector<128x8xf32>, vector<128x8xf32>, vector<128x8xf32>, vector<128x8xf32> -> vector<128x80xf32>
    %15 = arith.truncf %14 : vector<128x80xf32> to vector<128x80xbf16>
    %c0_0 = arith.constant 0 : index
    %c0_1 = arith.constant 0 : index
    %16 = vector.load %arg2[%c0_0, %c0_1] : memref<80x128xbf16, #tpu.memory_space<vmem>>, vector<80x128xbf16>
    %cst_2 = arith.constant dense<0.000000e+00> : vector<128x128xf32>
    %17 = tpu.matmul %15, %16, %cst_2 {dimension_numbers = #tpu.dot_dimension_numbers<[1], [0], [0], [1], [0, 0, 1, 1], [], []>} : vector<128x80xbf16>, vector<80x128xbf16>, vector<128x128xf32> -> vector<128x128xf32>
    %c0_3 = arith.constant 0 : index
    %c0_4 = arith.constant 0 : index
    %18 = vector.load %arg3[%c0_3, %c0_4] : memref<128x1xf32, #tpu.memory_space<vmem>>, vector<128x1xf32>
    %19 = vector.broadcast %18 : vector<128x1xf32> to vector<128x128xf32>
    %20 = arith.mulf %17, %19 : vector<128x128xf32>
    %cst_5 = arith.constant dense<0.000000e+00> : vector<128xf32>
    %21 = vector.multi_reduction <add>, %20, %cst_5 [0] : vector<128x128xf32> to vector<128xf32>
    %22 = vector.shape_cast %21 : vector<128xf32> to vector<1x128xf32>
    %23 = arith.mulf %20, %17 : vector<128x128xf32>
    %cst_6 = arith.constant dense<0.000000e+00> : vector<128xf32>
    %24 = vector.multi_reduction <add>, %23, %cst_6 [0] : vector<128x128xf32> to vector<128xf32>
    %25 = vector.shape_cast %24 : vector<128xf32> to vector<1x128xf32>
    %cst_7 = arith.constant 0.000000e+00 : f32
    %26 = vector.broadcast %cst_7 : f32 to vector<6x128xf32>
    %27 = tpu.concatenate %22, %25, %26 in 0 : vector<1x128xf32>, vector<1x128xf32>, vector<6x128xf32> -> vector<8x128xf32>
    %c0_8 = arith.constant 0 : index
    %c0_9 = arith.constant 0 : index
    %28 = vector.load %arg5[%c0_8, %c0_9] : memref<8x128xf32, #tpu.memory_space<vmem>>, vector<8x128xf32>
    tpu.vector_store %arg5[%c0_8, %c0_9], %27 {strides = array<i32>} : memref<8x128xf32, #tpu.memory_space<vmem>>, vector<8x128xf32>,
    %29 = arith.truncf %17 : vector<128x128xf32> to vector<128x128xbf16>
    %c0_10 = arith.constant 0 : index
    %c0_11 = arith.constant 0 : index
    %30 = vector.load %arg4[%c0_10, %c0_11] : memref<128x128xbf16, #tpu.memory_space<vmem>>, vector<128x128xbf16>
    tpu.vector_store %arg4[%c0_10, %c0_11], %29 {strides = array<i32>} : memref<128x128xbf16, #tpu.memory_space<vmem>>, vector<128x128xbf16>,
    return
  }
  func.func @transform_0(%arg0: i32) -> (i32, i32) {
    %c0_i32 = arith.constant 0 : i32
    %c0_i32_0 = arith.constant 0 : i32
    %c0_i32_1 = arith.constant 0 : i32
    return %c0_i32, %c0_i32_0 : i32, i32
  }
  func.func @transform_1(%arg0: i32) -> (i32, i32) {
    %c0_i32 = arith.constant 0 : i32
    %c0_i32_0 = arith.constant 0 : i32
    %c0_i32_1 = arith.constant 0 : i32
    return %c0_i32, %c0_i32_0 : i32, i32
  }
  func.func @transform_2(%arg0: i32) -> (i32, i32) {
    %c0_i32 = arith.constant 0 : i32
    %c0_i32_0 = arith.constant 0 : i32
    return %arg0, %c0_i32 : i32, i32
  }
  func.func @transform_3(%arg0: i32) -> (i32, i32) {
    %c0_i32 = arith.constant 0 : i32
    %c0_i32_0 = arith.constant 0 : i32
    return %arg0, %c0_i32 : i32, i32
  }
  func.func @transform_4(%arg0: i32) -> (i32, i32) {
    %c0_i32 = arith.constant 0 : i32
    %c0_i32_0 = arith.constant 0 : i32
    return %arg0, %c0_i32 : i32, i32
  }
}

</mosaic_0001>

<bundles_post_ra>
// kernel: conv_block_forward.5
= control target key start
LH: loop header
LB: loop body
LE: loop exit
PB: predicated region body
PF: predicated region fallthrough
CT: control target
= control target key end

     0   :  { %s485_s12 = smov 0   ;;  %s571_s0 = inlined_call_operand.vmem [shape: bf16[768,128], index: 0, kind: input, shape index: {}]   ;;  %s572_s1 = inlined_call_operand.vmem [shape: f32[1,128], index: 1, kind: input, shape index: {}]   ;;  %s573_s2 = inlined_call_operand.vmem [shape: f32[1,128], index: 2, kind: input, shape index: {}]   ;;  %s574_s3 = inlined_call_operand.vmem [shape: bf16[768,128], index: 3, kind: output, shape index: {}]  }
   0x1 LB: > { %s350_s13 = sadd.s32 4294967295, %s463_s12   ;;  %p354_p0 = scmp.ge.s32.totalorder %s463_s12, 1  ;;  %s463_s12 = sphi %s485_s12, %s13_s12  }
   0x2   : > { %p138_p1 = scmp.lt.s32.totalorder %s463_s12, 7 }
   0x4   : > { %p139_p2 = pnand %p354_p0, %p138_p1 }
   0x5   : > { %s355_s14 = sshll.u32 (!%p139_p2), %s350_s13, 4 }
   0x6   : > { %142 = sbr.rel (%p139_p2) target bundleno = 37 (0x25), region = 32  ;;  %p163_p3 = scmp.lt.s32.totalorder (!%p139_p2), %s355_s14, 95 }
   0xb   : > { %s576_s14 = smov (!%p163_p3, %s355_s14), 95  ;;  %v506_v0 = vld [vmem:[%s572_s1] ss:$0 sm:$0xff] }
   0xc   : > { %s356_s15 = sshll.u32 %s576_s14, 2  ;;  %v514_v6 = vld [vmem:[%s573_s2] ss:$0 sm:$0xff] }
   0xd   : > { %s501_s18 = scalar_lea.vmem %s571_s0, %s356_s15  ;;  %s540_s25 = scalar_lea.vmem %s574_s3, %s356_s15 }
   0xe   : > { %v362_v1 = vld [vmem:[%s501_s18] sm:$0xff]   ;;  %v433_v2 = vld [vmem:[%s501_s18 + $0x8] sm:$0xff]   ;;  %v434_v3 = vld [vmem:[%s501_s18 + $0x10] sm:$0xff]  }
   0xf   : > { %v363_v4 = vunpack.c.l.bf16 %v362_v1  ;;  %v364_v5 = vunpack.c.h.bf16 %v362_v1  ;;  %v367_v7 = vunpack.c.l.bf16 %v433_v2  ;;  %v368_v8 = vunpack.c.h.bf16 %v433_v2  ;;  %v435_v9 = vld [vmem:[%s501_s18 + $0x18] sm:$0xff]   ;;  %v436_v30 = vld [vmem:[%s501_s18 + $0x20] sm:$0xff]   ;;  %v437_v35 = vld [vmem:[%s501_s18 + $0x28] sm:$0xff]  }
  0x10   : > { %v371_v10 = vunpack.c.l.bf16 %v434_v3  ;;  %v372_v11 = vunpack.c.h.bf16 %v434_v3  ;;  %v375_v12 = vunpack.c.l.bf16 %v435_v9  ;;  %v376_v13 = vunpack.c.h.bf16 %v435_v9  ;;  %v438_v40 = vld [vmem:[%s501_s18 + $0x30] sm:$0xff]   ;;  %v439_v45 = vld [vmem:[%s501_s18 + $0x38] sm:$0xff]  }
  0x11   : > { %v210_v14 = vmul.f32 %v506_v0, %v363_v4  ;;  %v211_v15 = vmul.f32 %v506_v0, %v364_v5  ;;  %v212_v16 = vmul.f32 %v506_v0, %v367_v7  ;;  %v213_v17 = vmul.f32 %v506_v0, %v368_v8 }
  0x12   : > { %v214_v18 = vmul.f32 %v506_v0, %v371_v10  ;;  %v215_v19 = vmul.f32 %v506_v0, %v372_v11  ;;  %v216_v20 = vmul.f32 %v506_v0, %v375_v12  ;;  %v217_v21 = vmul.f32 %v506_v0, %v376_v13 }
  0x13   : > { %v230_v22 = vadd.f32 %v514_v6, %v210_v14  ;;  %v231_v23 = vadd.f32 %v514_v6, %v211_v15  ;;  %v232_v24 = vadd.f32 %v514_v6, %v212_v16  ;;  %v233_v25 = vadd.f32 %v514_v6, %v213_v17 }
  0x14   : > { %v234_v26 = vadd.f32 %v514_v6, %v214_v18  ;;  %v235_v27 = vadd.f32 %v514_v6, %v215_v19  ;;  %v236_v28 = vadd.f32 %v514_v6, %v216_v20  ;;  %v237_v29 = vadd.f32 %v514_v6, %v217_v21 }
  0x15   : > { %v246_v31 = vmax.f32 %v230_v22, 0.0  ;;  %v247_v32 = vmax.f32 %v231_v23, 0.0  ;;  %v248_v33 = vmax.f32 %v232_v24, 0.0  ;;  %v249_v34 = vmax.f32 %v233_v25, 0.0 }
  0x16   : > { %v250_v36 = vmax.f32 %v234_v26, 0.0  ;;  %v251_v37 = vmax.f32 %v235_v27, 0.0  ;;  %v252_v38 = vmax.f32 %v236_v28, 0.0  ;;  %v253_v39 = vmax.f32 %v237_v29, 0.0 }
  0x17   : > { %v396_v41 = vpack.c.bf16 %v247_v32, %v246_v31  ;;  %v401_v42 = vpack.c.bf16 %v249_v34, %v248_v33  ;;  %v379_v43 = vunpack.c.l.bf16 %v436_v30  ;;  %v380_v44 = vunpack.c.h.bf16 %v436_v30 }
  0x18   : > { %v406_v46 = vpack.c.bf16 %v251_v37, %v250_v36  ;;  %v411_v47 = vpack.c.bf16 %v253_v39, %v252_v38  ;;  %v383_v48 = vunpack.c.l.bf16 %v437_v35  ;;  %v384_v49 = vunpack.c.h.bf16 %v437_v35 }
  0x19   : > { %397 = vst [vmem:[%s540_s25] sm:$0xff] %v396_v41   ;;  %v218_v50 = vmul.f32 %v506_v0, %v379_v43  ;;  %v219_v51 = vmul.f32 %v506_v0, %v380_v44  ;;  %v387_v52 = vunpack.c.l.bf16 %v438_v40  ;;  %v388_v53 = vunpack.c.h.bf16 %v438_v40 }
  0x1a   : > { %440 = vst [vmem:[%s540_s25 + $0x8] sm:$0xff] %v401_v42   ;;  %v220_v54 = vmul.f32 %v506_v0, %v383_v48  ;;  %v221_v55 = vmul.f32 %v506_v0, %v384_v49  ;;  %v391_v56 = vunpack.c.l.bf16 %v439_v45  ;;  %v392_v57 = vunpack.c.h.bf16 %v439_v45 }
  0x1b   : > { %441 = vst [vmem:[%s540_s25 + $0x10] sm:$0xff] %v406_v46   ;;  %v238_v58 = vadd.f32 %v514_v6, %v218_v50  ;;  %v239_v59 = vadd.f32 %v514_v6, %v219_v51  ;;  %v222_v60 = vmul.f32 %v506_v0, %v387_v52  ;;  %v223_v61 = vmul.f32 %v506_v0, %v388_v53 }
  0x1c   : > { %442 = vst [vmem:[%s540_s25 + $0x18] sm:$0xff] %v411_v47   ;;  %v240_v62 = vadd.f32 %v514_v6, %v220_v54  ;;  %v241_v63 = vadd.f32 %v514_v6, %v221_v55  ;;  %v224_v1 = vmul.f32 %v506_v0, %v391_v56  ;;  %v225_v2 = vmul.f32 %v506_v0, %v392_v57 }
  0x1d   : > { %v254_v3 = vmax.f32 %v238_v58, 0.0  ;;  %v255_v4 = vmax.f32 %v239_v59, 0.0  ;;  %v242_v5 = vadd.f32 %v514_v6, %v222_v60  ;;  %v243_v7 = vadd.f32 %v514_v6, %v223_v61 }
  0x1e   : > { %v256_v8 = vmax.f32 %v240_v62, 0.0  ;;  %v257_v9 = vmax.f32 %v241_v63, 0.0  ;;  %v244_v10 = vadd.f32 %v514_v6, %v224_v1  ;;  %v245_v11 = vadd.f32 %v514_v6, %v225_v2 }
  0x1f   : > { %v416_v12 = vpack.c.bf16 %v255_v4, %v254_v3  ;;  %v258_v13 = vmax.f32 %v242_v5, 0.0  ;;  %v259_v14 = vmax.f32 %v243_v7, 0.0 }
  0x20   : > { %v421_v15 = vpack.c.bf16 %v257_v9, %v256_v8  ;;  %v260_v0 = vmax.f32 %v244_v10, 0.0  ;;  %v261_v16 = vmax.f32 %v245_v11, 0.0 }
  0x21   : > { %443 = vst [vmem:[%s540_s25 + $0x20] sm:$0xff] %v416_v12   ;;  %v426_v17 = vpack.c.bf16 %v259_v14, %v258_v13 }
  0x22   : > { %444 = vst [vmem:[%s540_s25 + $0x28] sm:$0xff] %v421_v15   ;;  %v431_v18 = vpack.c.bf16 %v261_v16, %v260_v0 }
  0x23   : > { %445 = vst [vmem:[%s540_s25 + $0x30] sm:$0xff] %v426_v17  }
  0x24   : > { %446 = vst [vmem:[%s540_s25 + $0x38] sm:$0xff] %v431_v18  }
  0x25 PF: > { %s13_s12 = sadd.s32 1, %s463_s12  }
  0x26   : > { %p10_p4 = scmp.ge.s32.totalorder %s13_s12, 8  }
  0x28   :  { %12 = sbr.rel (!%p10_p4) target bundleno = 1 (0x1), region = 62 }

// kernel: conv_block_forward.4
= control target key start
LH: loop header
LB: loop body
LE: loop exit
PB: predicated region body
PF: predicated region fallthrough
CT: control target
= control target key end

     0   :  { %s1865_s15 = smov 0   ;;  %s2674_s0 = inlined_call_operand.vmem [shape: f32[816,3], index: 0, kind: input, shape index: {}]   ;;  %s2675_s1 = inlined_call_operand.vmem [shape: bf16[32,128], index: 1, kind: input, shape index: {}]   ;;  %s2676_s2 = inlined_call_operand.vmem [shape: f32[768,1], index: 2, kind: input, shape index: {}]   ;;  %s2677_s3 = inlined_call_operand.vmem [shape: bf16[768,128], index: 3, kind: output, shape index: {0}]   ;;  %s2678_s4 = inlined_call_operand.vmem [shape: f32[48,128], index: 4, kind: output, shape index: {1}]  }
   0x1 LB: > { %s1871_s16 = sadd.s32 4294967295, %s1829_s15   ;;  %p1403_p0 = scmp.ge.s32.totalorder %s1829_s15, 1  ;;  %s1829_s15 = sphi %s1865_s15, %s15_s15  }
   0x2   : > { %p166_p1 = scmp.lt.s32.totalorder %s1829_s15, 7 }
   0x4   : > { %p167_p2 = pnand %p1403_p0, %p166_p1 }
   0x5   : > { %s1409_s17 = sshll.u32 (!%p167_p2), %s1871_s16, 7  ;;  %s1831_s21 = smov (!%p167_p2), 3  }
   0x6   : > { %170 = sbr.rel (%p167_p2) target bundleno = 468 (0x1d4), region = 32  ;;  %s1879_s20 = scalar_lea.vmem (!%p167_p2), %s2674_s0, %s1409_s17 }
   0x7   : > { %s1832_s22 = smov (!%p167_p2), 6   ;;  %s1833_s23 = smov (!%p167_p2), 9  }
   0x8   : > { %s1834_s24 = smov (!%p167_p2), 12   ;;  %s1835_s25 = smov (!%p167_p2), 15  }
   0x9   : > { %s1836_s26 = smov (!%p167_p2), 18   ;;  %s1837_s27 = smov (!%p167_p2), 21  }
   0xa   : > { %s1838_s28 = smov (!%p167_p2), 24   ;;  %s1404_s29 = sshll.u32 (!%p167_p2), %s1871_s16, 4 }
   0xb   : > { %v1882_v0 = vld [vmem:[%s1879_s20 + $0x20] sm:$0xff]  ;;  %v1885_v1 = vld [vmem:[%s1879_s20 + $0x28] sm:$0xff]  ;;  %v1888_v2 = vld [vmem:[%s1879_s20 + $0x30] sm:$0xff]  ;;  %vm253_vm0 = vcmask 1046528   ;;  %vm335_vm1 = vcmask 1045504   ;;  %vm471_vm2 = vcmask 1044480  }
   0xc   : > { %v261_v3 = vrot.slane %v1882_v0, 1  ;;  %v263_v4 = vrot.slane %v1885_v1, 1  ;;  %v265_v5 = vrot.slane %v1888_v2, 1  ;;  %v1894_v6 = vld [vmem:[%s1879_s20] sm:$0xff]  ;;  %v1897_v7 = vld [vmem:[%s1879_s20 + $0x8] sm:$0xff]  ;;  %v1900_v8 = vld [vmem:[%s1879_s20 + $0x10] sm:$0xff] }
   0xd   : > { %v254_v9 = vrot.slane %v1894_v6, 1  ;;  %v255_v10 = vrot.slane %v1897_v7, 1  ;;  %v257_v11 = vrot.slane %v1900_v8, 1  ;;  %v1906_v12 = vld [vmem:[%s1879_s20 + $0x38] sm:$0xff]  ;;  %v1909_v13 = vld [vmem:[%s1879_s20 + $0x40] sm:$0xff]  ;;  %v1919_v19 = vld [vmem:[%s1879_s20 + $0x48] sm:$0xff] }
   0xe   : > { %v1912_v14 = vld [vmem:[%s1879_s20 + $0x18] sm:$0xff]  ;;  %v264_v15 = vsel %vm253_vm0, %v261_v3, %v263_v4  ;;  %v266_v16 = vsel %vm253_vm0, %v263_v4, %v265_v5  ;;  %v267_v17 = vrot.slane %v1906_v12, 1  ;;  %v269_v18 = vrot.slane %v1909_v13, 1  ;;  %v1922_v20 = vld [vmem:[%s1879_s20 + $0x50] sm:$0xff]  ;;  %v1929_v27 = vld [vmem:[%s1879_s20 + $0x60] sm:$0xff]  ;;  %p197_p3 = scmp.lt.s32.totalorder %s1404_s29, 95 }
   0xf   : > { %v1510_v21 = vpack.i.bf16 %v266_v16, %v264_v15  ;;  %v256_v22 = vsel %vm253_vm0, %v254_v9, %v255_v10  ;;  %v258_v23 = vsel %vm253_vm0, %v255_v10, %v257_v11  ;;  %v259_v24 = vrot.slane %v1912_v14, 1  ;;  %v1935_v30 = vld [vmem:[%s1879_s20 + $0x58] sm:$0xff]  ;;  %v1943_v35 = vld [vmem:[%s1879_s20 + $0x70] sm:$0xff]  ;;  %v1950_v38 = vld [vmem:[%s1879_s20 + $0x80] sm:$0xff]  ;;  %p208_p4 = scmp.lt.s32.totalorder %s1871_s16, 5 }
  0x10   : > { %v1500_v25 = vpack.i.bf16 %v258_v23, %v256_v22  ;;  %v271_v26 = vrot.slane %v1919_v19, 1  ;;  %v268_v28 = vsel %vm253_vm0, %v265_v5, %v267_v17  ;;  %v273_v29 = vrot.slane %v1922_v20, 1  ;;  %v1947_v37 = vld [vmem:[%s1879_s20 + $0x78] sm:$0xff]  ;;  %v1953_v39 = vld [vmem:[%s1879_s20 + $0x68] sm:$0xff]  ;;  %s2680_s29 = smov (!%p197_p3, %s1404_s29), 95 }
  0x11   : > { %1511 = vrot.lane.b32.xlu1 %v1510_v21, %s1831_s21  ;;  %v270_v31 = vsel %vm253_vm0, %v267_v17, %v269_v18  ;;  %v260_v32 = vsel %vm253_vm0, %v257_v11, %v259_v24  ;;  %v262_v33 = vsel %vm253_vm0, %v259_v24, %v261_v3  ;;  %v277_v40 = vrot.slane %v1929_v27, 1  ;;  %s1405_s6 = sshll.u32 %s2680_s29, 3  ;;  %s1407_s12 = sshll.u32 %s2680_s29, 2 }
  0x12   : > { %1501 = vrot.lane.b32.xlu0 %v1500_v25, %s1831_s21  ;;  %v272_v34 = vsel %vm253_vm0, %v269_v18, %v271_v26  ;;  %v274_v36 = vsel %vm253_vm0, %v271_v26, %v273_v29  ;;  %v275_v42 = vrot.slane %v1935_v30, 1  ;;  %v1515_v43 = vpack.i.bf16 %v270_v31, %v268_v28  ;;  %s2468_s9 = scalar_lea.vmem %s2676_s2, %s1405_s6  ;;  %s2655_s17 = scalar_lea.vmem %s2677_s3, %s1407_s12 }
  0x13   : > { %v1520_v41 = vpack.i.bf16 %v274_v36, %v272_v34  ;;  %v1505_v44 = vpack.i.bf16 %v262_v33, %v260_v32  ;;  %v281_v45 = vrot.slane %v1943_v35, 1  ;;  %v283_v46 = vrot.slane %v1947_v37, 1  ;;  %s2682_s16 = smov (!%p208_p4, %s1871_s16), 5 }
  0x14   : > { %v285_v47 = vrot.slane %v1950_v38, 1  ;;  %v279_v48 = vrot.slane %v1953_v39, 1  ;;  %v276_v49 = vsel %vm253_vm0, %v273_v29, %v275_v42  ;;  %v278_v50 = vsel %vm253_vm0, %v275_v42, %v277_v40  ;;  %s1408_s18 = sshll.u32 %s2682_s16, 3 }
  0x15   : > { %1521 = vrot.lane.b32.xlu2 %v1520_v41, %s1831_s21  ;;  %v284_v51 = vsel %vm253_vm0, %v281_v45, %v283_v46  ;;  %v1525_v54 = vpack.i.bf16 %v278_v50, %v276_v49  ;;  %v339_v56 = vrot.slane %v1900_v8, 2  ;;  %v336_v57 = vrot.slane %v1894_v6, 2 }
  0x16   : > { %v286_v52 = vsel %vm253_vm0, %v283_v46, %v285_v47  ;;  %v280_v53 = vsel %vm253_vm0, %v277_v40, %v279_v48  ;;  %v282_v55 = vsel %vm253_vm0, %v279_v48, %v281_v45  ;;  %v337_v58 = vrot.slane %v1897_v7, 2 }
  0x17   : > { %v1535_v59 = vpack.i.bf16 %v286_v52, %v284_v51  ;;  %v1530_v60 = vpack.i.bf16 %v282_v55, %v280_v53  ;;  %v343_v61 = vrot.slane %v1882_v0, 2  ;;  %v345_v62 = vrot.slane %v1885_v1, 2  ;;  %v2017_v52 = vld [vmem:[%s1879_s20 + $0x88] sm:$0xff]  ;;  %v2020_v53 = vld [vmem:[%s1879_s20 + $0x90] sm:$0xff] }
  0x18   : > { %v347_v63 = vrot.slane %v1888_v2, 2  ;;  %v341_v3 = vrot.slane %v1912_v14, 2  ;;  %v338_v4 = vsel %vm335_vm1, %v336_v57, %v337_v58  ;;  %v340_v5 = vsel %vm335_vm1, %v337_v58, %v339_v56 }
  0x19   : > { %1516 = vrot.lane.b32.xlu1 %v1515_v43, %s1831_s21  ;;  %v346_v9 = vsel %vm335_vm1, %v343_v61, %v345_v62  ;;  %v1540_v11 = vpack.i.bf16 %v340_v5, %v338_v4  ;;  %v351_v17 = vrot.slane %v1909_v13, 2  ;;  %v349_v18 = vrot.slane %v1906_v12, 2 }
  0x1a   : > { %1506 = vrot.lane.b32.xlu0 %v1505_v44, %s1831_s21  ;;  %v348_v10 = vsel %vm335_vm1, %v345_v62, %v347_v63  ;;  %v342_v15 = vsel %vm335_vm1, %v339_v56, %v341_v3  ;;  %v344_v16 = vsel %vm335_vm1, %v341_v3, %v343_v61  ;;  %v355_v23 = vrot.slane %v1922_v20, 2 }
  0x1b   : > { %v1550_v21 = vpack.i.bf16 %v348_v10, %v346_v9  ;;  %v1545_v22 = vpack.i.bf16 %v344_v16, %v342_v15  ;;  %v357_v24 = vrot.slane %v1935_v30, 2  ;;  %v359_v25 = vrot.slane %v1929_v27, 2 }
  0x1c   : > { %v353_v26 = vrot.slane %v1919_v19, 2  ;;  %v350_v28 = vsel %vm335_vm1, %v347_v63, %v349_v18  ;;  %v352_v29 = vsel %vm335_vm1, %v349_v18, %v351_v17  ;;  %v363_v40 = vrot.slane %v1943_v35, 2 }
  0x1d   : > { %1526 = vrot.lane.b32.xlu2 %v1525_v54, %s1831_s21  ;;  %v358_v31 = vsel %vm335_vm1, %v355_v23, %v357_v24  ;;  %v360_v32 = vsel %vm335_vm1, %v357_v24, %v359_v25  ;;  %v1555_v33 = vpack.i.bf16 %v352_v29, %v350_v28  ;;  %v361_v41 = vrot.slane %v1953_v39, 2 }
  0x1e   : > { %v354_v34 = vsel %vm335_vm1, %v351_v17, %v353_v26  ;;  %v356_v36 = vsel %vm335_vm1, %v353_v26, %v355_v23  ;;  %v1565_v42 = vpack.i.bf16 %v360_v32, %v358_v31  ;;  %v365_v44 = vrot.slane %v1947_v37, 2 }
  0x1f   : > { %v1560_v43 = vpack.i.bf16 %v356_v36, %v354_v34  ;;  %v367_v45 = vrot.slane %v1950_v38, 2  ;;  %v362_v46 = vsel %vm335_vm1, %v359_v25, %v361_v41  ;;  %v364_v47 = vsel %vm335_vm1, %v361_v41, %v363_v40 }
  0x20   : > { %v1570_v48 = vpack.i.bf16 %v364_v47, %v362_v46  ;;  %v366_v49 = vsel %vm335_vm1, %v363_v40, %v365_v44  ;;  %v419_v54 = vrot.slane %v2017_v52, 2  ;;  %v421_v55 = vrot.slane %v2020_v53, 2 }
  0x21   : > { %1536 = vrot.lane.b32.xlu1 %v1535_v59, %s1831_s21  ;;  %v368_v50 = vsel %vm335_vm1, %v365_v44, %v367_v45  ;;  %v475_v56 = vrot.slane %v1882_v0, 3  ;;  %v477_v57 = vrot.slane %v1885_v1, 3  ;;  %v479_v58 = vrot.slane %v1888_v2, 3 }
  0x22   : > { %1531 = vrot.lane.b32.xlu0 %v1530_v60, %s1831_s21  ;;  %v1575_v51 = vpack.i.bf16 %v368_v50, %v366_v49  ;;  %v472_v59 = vrot.slane %v1900_v8, 3  ;;  %v473_v60 = vrot.slane %v1912_v14, 3  ;;  %v420_v61 = vsel %vm335_vm1, %v367_v45, %v419_v54  ;;  %s211_s21 = scalar_lea.vmem %s2678_s4, %s1408_s18 }
  0x23   : > { %v422_v62 = vsel %vm335_vm1, %v419_v54, %v421_v55  ;;  %v478_v63 = vsel %vm471_vm2, %v475_v56, %v477_v57  ;;  %v480_v3 = vsel %vm471_vm2, %v477_v57, %v479_v58  ;;  %v483_v10 = vrot.slane %v1909_v13, 3 }
  0x24   : > { %v1615_v4 = vpack.i.bf16 %v422_v62, %v420_v61  ;;  %v474_v5 = vsel %vm471_vm2, %v472_v59, %v473_v60  ;;  %v476_v9 = vsel %vm471_vm2, %v473_v60, %v475_v56  ;;  %v1625_v15 = vpack.i.bf16 %v480_v3, %v478_v63 }
  0x25   : > { %1541 = vrot.lane.b32.xlu2 %v1540_v11, %s1832_s22  ;;  %v481_v11 = vrot.slane %v1906_v12, 3  ;;  %v487_v16 = vrot.slane %v1922_v20, 3  ;;  %v489_v17 = vrot.slane %v1935_v30, 3  ;;  %v1620_v18 = vpack.i.bf16 %v476_v9, %v474_v5 }
  0x26   : > { %v495_v32 = vrot.slane %v1943_v35, 3  ;;  %v499_v40 = vrot.slane %v1950_v38, 3  ;;  %v501_v41 = vrot.slane %v2017_v52, 3  ;;  %v554_v54 = vrot.slane %v1900_v8, 4 }
  0x27   : > { %v482_v23 = vsel %vm471_vm2, %v479_v58, %v481_v11  ;;  %v484_v24 = vsel %vm471_vm2, %v481_v11, %v483_v10  ;;  %v490_v25 = vsel %vm471_vm2, %v487_v16, %v489_v17  ;;  %v555_v55 = vrot.slane %v1912_v14, 4 }
  0x28   : > { %v1630_v31 = vpack.i.bf16 %v484_v24, %v482_v23  ;;  %v502_v46 = vsel %vm471_vm2, %v499_v40, %v501_v41  ;;  %vm553_vm3 = vcmask 1043456   ;;  %v561_v58 = vrot.slane %v1888_v2, 4 }
  0x29   : > { %1551 = vrot.lane.b32.xlu1 %v1550_v21, %s1832_s22  ;;  %v563_v59 = vrot.slane %v1906_v12, 4  ;;  %v565_v60 = vrot.slane %v1909_v13, 4  ;;  %v559_v61 = vrot.slane %v1885_v1, 4  ;;  %v556_v62 = vsel %vm553_vm3, %v554_v54, %v555_v55 }
  0x2a   : > { %1546 = vrot.lane.b32.xlu0 %v1545_v22, %s1832_s22  ;;  %v569_v11 = vrot.slane %v1922_v20, 4  ;;  %v571_v23 = vrot.slane %v1935_v30, 4  ;;  %vm689_vm4 = vcmask 1042432   ;;  %vm771_vm5 = vcmask 1041408  }
  0x2b   : > { %v564_v3 = vsel %vm553_vm3, %v561_v58, %v563_v59  ;;  %vm853_vm6 = vcmask 23552   ;;  %vm870_vm7 = vcmask 48128   ;;  %vm887_vm8 = vcmask 72704  }
  0x2c   : > { %vm904_vm9 = vcmask 97280   ;;  %vm921_vm10 = vcmask 121856   ;;  %vm938_vm11 = vcmask 146432   ;;  %vm955_vm12 = vcmask 171008  }
  0x2d   : > { %1556 = vrot.lane.b32.xlu2 %v1555_v33, %s1832_s22  ;;  %vm972_vm13 = vcmask 195584   ;;  %vm989_vm14 = vcmask 220160   ;;  %vm1030_vm15 = vcmask 261120   ;;  %vm1274_vm0 = vcmask 1040384  }
  0x31   : > { %1566 = vrot.lane.b32.xlu1 %v1565_v42, %s1832_s22 }
  0x32   : > { %1561 = vrot.lane.b32.xlu0 %v1560_v43, %s1832_s22 }
  0x35   : > { %1571 = vrot.lane.b32.xlu2 %v1570_v48, %s1832_s22 }
  0x39   : > { %1581 = vrot.lane.b32.xlu1 %v1545_v22, %s1833_s23  ;;  %v485_v22 = vrot.slane %v1919_v19, 3 }
  0x3a   : > { %1576 = vrot.lane.b32.xlu0 %v1575_v51, %s1832_s22 }
  0x3b   : > { %v486_v28 = vsel %vm471_vm2, %v483_v10, %v485_v22  ;;  %v488_v29 = vsel %vm471_vm2, %v485_v22, %v487_v16  ;;  %v562_v10 = vsel %vm553_vm3, %v559_v61, %v561_v58  ;;  %v577_v22 = vrot.slane %v1943_v35, 4 }
  0x3c   : > { %v1635_v36 = vpack.i.bf16 %v488_v29, %v486_v28 }
  0x3d   : > { %1586 = vrot.lane.b32.xlu2 %v1550_v21, %s1833_s23  ;;  %v491_v21 = vrot.slane %v1929_v27, 3 }
  0x3f   : > { %v492_v26 = vsel %vm471_vm2, %v489_v17, %v491_v21 }
  0x40   : > { %v1640_v34 = vpack.i.bf16 %v492_v26, %v490_v25 }
  0x41   : > { %1596 = vrot.lane.b32.xlu1 %v1560_v43, %s1833_s23  ;;  %v497_v43 = vrot.slane %v1947_v37, 3 }
  0x42   : > { %1591 = vrot.lane.b32.xlu0 %v1555_v33, %s1833_s23  ;;  %v493_v33 = vrot.slane %v1953_v39, 3 }
  0x43   : > { %v500_v50 = vsel %vm471_vm2, %v497_v43, %v499_v40 }
  0x44   : > { %v494_v44 = vsel %vm471_vm2, %v491_v21, %v493_v33  ;;  %v496_v45 = vsel %vm471_vm2, %v493_v33, %v495_v32  ;;  %v575_v21 = vrot.slane %v1953_v39, 4  ;;  %v581_v33 = vrot.slane %v1950_v38, 4 }
  0x45   : > { %1601 = vrot.lane.b32.xlu2 %v1565_v42, %s1833_s23  ;;  %v503_v42 = vrot.slane %v2020_v53, 3  ;;  %v1645_v49 = vpack.i.bf16 %v496_v45, %v494_v44 }
  0x46   : > { %v578_v28 = vsel %vm553_vm3, %v575_v21, %v577_v22 }
  0x47   : > { %v504_v47 = vsel %vm471_vm2, %v501_v41, %v503_v42  ;;  %v583_v41 = vrot.slane %v2017_v52, 4  ;;  %v585_v42 = vrot.slane %v2020_v53, 4 }
  0x48   : > { %v1655_v56 = vpack.i.bf16 %v504_v47, %v502_v46 }
  0x49   : > { %1611 = vrot.lane.b32.xlu1 %v1575_v51, %s1833_s23  ;;  %v557_v51 = vrot.slane %v1882_v0, 4  ;;  %v584_v46 = vsel %vm553_vm3, %v581_v33, %v583_v41 }
  0x4a   : > { %1606 = vrot.lane.b32.xlu0 %v1570_v48, %s1833_s23  ;;  %v498_v48 = vsel %vm471_vm2, %v495_v32, %v497_v43 }
  0x4b   : > { %v1650_v57 = vpack.i.bf16 %v500_v50, %v498_v48  ;;  %v558_v63 = vsel %vm553_vm3, %v555_v55, %v557_v51  ;;  %v560_v9 = vsel %vm553_vm3, %v557_v51, %v559_v61  ;;  %v586_v48 = vsel %vm553_vm3, %v583_v41, %v585_v42 }
  0x4c   : > { %v1660_v5 = vpack.i.bf16 %v558_v63, %v556_v62  ;;  %v1665_v17 = vpack.i.bf16 %v562_v10, %v560_v9  ;;  %v691_v50 = vrot.slane %v1885_v1, 5  ;;  %v693_v51 = vrot.slane %v1888_v2, 5 }
  0x4d   : > { %1616 = vrot.lane.b32.xlu2 %v1615_v4, %s1833_s23  ;;  %v566_v4 = vsel %vm553_vm3, %v563_v59, %v565_v60  ;;  %v2130_v54 = vpack.i.bf16 %v586_v48, %v584_v46  ;;  %v772_v55 = vrot.slane %v1882_v0, 6  ;;  %v779_v10 = vrot.slane %v1909_v13, 6 }
  0x4e   : > { %v2088_v16 = vpack.i.bf16 %v566_v4, %v564_v3  ;;  %v694_v59 = vsel %vm689_vm4, %v691_v50, %v693_v51  ;;  %v697_v3 = vrot.slane %v1909_v13, 5  ;;  %v699_v4 = vrot.slane %v1919_v19, 5 }
  0x4f   : > { %v789_v46 = vrot.slane %v1953_v39, 6  ;;  %v791_v48 = vrot.slane %v1943_v35, 6 }
  0x51   : > { %1626 = vrot.lane.b32.xlu1 %v1625_v15, %s1834_s24  ;;  %v567_v15 = vrot.slane %v1919_v19, 4 }
  0x52   : > { %1621 = vrot.lane.b32.xlu0 %v1620_v18, %s1834_s24  ;;  %v573_v18 = vrot.slane %v1929_v27, 4 }
  0x53   : > { %v568_v24 = vsel %vm553_vm3, %v565_v60, %v567_v15  ;;  %v570_v25 = vsel %vm553_vm3, %v567_v15, %v569_v11  ;;  %v783_v15 = vrot.slane %v1922_v20, 6 }
  0x54   : > { %v576_v26 = vsel %vm553_vm3, %v573_v18, %v575_v21  ;;  %v1675_v29 = vpack.i.bf16 %v570_v25, %v568_v24  ;;  %v574_v32 = vsel %vm553_vm3, %v571_v23, %v573_v18 }
  0x55   : > { %1631 = vrot.lane.b32.xlu2 %v1630_v31, %s1834_s24  ;;  %v572_v31 = vsel %vm553_vm3, %v569_v11, %v571_v23  ;;  %v781_v11 = vrot.slane %v1919_v19, 6 }
  0x56   : > { %v2108_v40 = vpack.i.bf16 %v574_v32, %v572_v31 }
  0x57   : > { %v784_v23 = vsel %vm771_vm5, %v781_v11, %v783_v15 }
  0x59   : > { %1641 = vrot.lane.b32.xlu1 %v1640_v34, %s1834_s24  ;;  %v579_v34 = vrot.slane %v1947_v37, 4 }
  0x5a   : > { %1636 = vrot.lane.b32.xlu0 %v1635_v36, %s1834_s24  ;;  %v2106_v36 = vpack.i.bf16 %v578_v28, %v576_v26  ;;  %v705_v26 = vrot.slane %v1929_v27, 5  ;;  %v707_v28 = vrot.slane %v1953_v39, 5 }
  0x5b   : > { %v580_v43 = vsel %vm553_vm3, %v577_v22, %v579_v34  ;;  %v582_v44 = vsel %vm553_vm3, %v579_v34, %v581_v33  ;;  %v782_v22 = vsel %vm771_vm5, %v779_v10, %v781_v11  ;;  %v695_v11 = vrot.slane %v1906_v12, 5 }
  0x5c   : > { %v2122_v47 = vpack.i.bf16 %v582_v44, %v580_v43  ;;  %v1730_v43 = vpack.i.bf16 %v784_v23, %v782_v22  ;;  %v787_v44 = vrot.slane %v1929_v27, 6 }
  0x5d   : > { %1646 = vrot.lane.b32.xlu2 %v1645_v49, %s1834_s24  ;;  %v690_v49 = vrot.slane %v1882_v0, 5 }
  0x5f   : > { %v692_v58 = vsel %vm689_vm4, %v690_v49, %v691_v50 }
  0x60   : > { %v1705_v62 = vpack.i.bf16 %v694_v59, %v692_v58 }
  0x61   : > { %1656 = vrot.lane.b32.xlu1 %v1655_v56, %s1834_s24  ;;  %v773_v56 = vrot.slane %v1885_v1, 6 }
  0x62   : > { %1651 = vrot.lane.b32.xlu0 %v1650_v57, %s1834_s24  ;;  %v775_v57 = vrot.slane %v1888_v2, 6 }
  0x63   : > { %v774_v61 = vsel %vm771_vm5, %v772_v55, %v773_v56  ;;  %v708_v55 = vsel %vm689_vm4, %v705_v26, %v707_v28 }
  0x64   : > { %v776_v63 = vsel %vm771_vm5, %v773_v56, %v775_v57 }
  0x65   : > { %1661 = vrot.lane.b32.xlu2 %v1660_v5, %s1835_s25  ;;  %v701_v5 = vrot.slane %v1922_v20, 5  ;;  %v1710_v9 = vpack.i.bf16 %v776_v63, %v774_v61 }
  0x67   : > { %v702_v18 = vsel %vm689_vm4, %v699_v4, %v701_v5 }
  0x69   : > { %1671 = vrot.lane.b32.xlu1 %v2088_v16, %s1835_s25 }
  0x6a   : > { %1666 = vrot.lane.b32.xlu0 %v1665_v17, %s1835_s25 }
  0x6d   : > { %1676 = vrot.lane.b32.xlu2 %v1675_v29, %s1835_s25 }
  0x6f   : > { %v2115_v45 = vpop.permute.xlu2 %1521 }
  0x71   : > { %1686 = vrot.lane.b32.xlu1 %v2106_v36, %s1835_s25 }
  0x72   : > { %1681 = vrot.lane.b32.xlu0 %v2108_v40, %s1835_s25 }
  0x75   : > { %1691 = vrot.lane.b32.xlu2 %v2122_v47, %s1835_s25 }
  0x77   : > { %v2141_v60 = vpop.permute.xlu2 %1526 }
  0x79   : > { %1701 = vrot.lane.b32.xlu1 %v1665_v17, %s1836_s26  ;;  %v700_v17 = vsel %vm689_vm4, %v697_v3, %v699_v4 }
  0x7a   : > { %1696 = vrot.lane.b32.xlu0 %v2130_v54, %s1835_s25  ;;  %v1720_v24 = vpack.i.bf16 %v702_v18, %v700_v17 }
  0x7d   : > { %1706 = vrot.lane.b32.xlu2 %v1705_v62, %s1837_s27 }
  0x7f   : > { %v1542_v21 = vpop.permute.xlu2 %1541 }
  0x80   : > { %v1544_v32 = vunpack.i.h.bf16 %v1542_v21  ;;  %v1543_v33 = vunpack.i.l.bf16 %v1542_v21 }
  0x81   : > { %1716 = vrot.lane.b32.xlu1 %v1675_v29, %s1836_s26  ;;  %v709_v29 = vrot.slane %v1943_v35, 5 }
  0x82   : > { %1711 = vrot.lane.b32.xlu0 %v1710_v9, %s1838_s28  ;;  %v792_v9 = vsel %vm771_vm5, %v789_v46, %v791_v48 }
  0x83   : > { %v2169_v25 = vpop.permute.xlu1 %1511  ;;  %v710_v56 = vsel %vm689_vm4, %v707_v28, %v709_v29 }
  0x84   : > { %v1502_v31 = vpop.permute.xlu0 %1501 }
  0x85   : > { %v1504_v34 = vunpack.i.h.bf16 %v1502_v31  ;;  %v1503_v41 = vunpack.i.l.bf16 %v1502_v31  ;;  %1721 = vrot.lane.b32.xlu2 %v1720_v24, %s1837_s27  ;;  %v777_v24 = vrot.slane %v1906_v12, 6 }
  0x87   : > { %v855_v49 = vsel %vm853_vm6, %v1897_v7, %v1504_v34  ;;  %v854_v50 = vsel %vm853_vm6, %v1894_v6, %v1503_v41  ;;  %v1557_v61 = vpop.permute.xlu2 %1556  ;;  %v790_v6 = vsel %vm771_vm5, %v787_v44, %v789_v46  ;;  %v1735_v7 = vpack.i.bf16 %v710_v56, %v708_v55 }
  0x88   : > { %v2189_v58 = vsel %vm870_vm7, %v854_v50, %v1543_v33  ;;  %v2192_v59 = vsel %vm870_vm7, %v855_v49, %v1544_v32  ;;  %v1559_v63 = vunpack.i.h.bf16 %v1557_v61  ;;  %v1558_v4 = vunpack.i.l.bf16 %v1557_v61 }
  0x89   : > { %1731 = vrot.lane.b32.xlu1 %v1730_v43, %s1838_s28  ;;  %v1740_v23 = vpack.i.bf16 %v792_v9, %v790_v6  ;;  %v696_v32 = vsel %vm689_vm4, %v693_v51, %v695_v11  ;;  %v698_v33 = vsel %vm689_vm4, %v695_v11, %v697_v3  ;;  %v780_v41 = vsel %vm771_vm5, %v777_v24, %v779_v10 }
  0x8a   : > { %1726 = vrot.lane.b32.xlu0 %v2106_v36, %s1836_s26  ;;  %v1750_v43 = vpack.i.bf16 %v698_v33, %v696_v32  ;;  %v795_v51 = vrot.slane %v1950_v38, 6  ;;  %v713_v3 = vrot.slane %v1950_v38, 5  ;;  %v715_v49 = vrot.slane %v2017_v52, 5 }
  0x8b   : > { %v1517_v62 = vpop.permute.xlu1 %1516  ;;  %v799_v56 = vrot.slane %v2020_v53, 6 }
  0x8c   : > { %v1519_v17 = vunpack.i.h.bf16 %v1517_v62  ;;  %v1518_v18 = vunpack.i.l.bf16 %v1517_v62  ;;  %v2204_v21 = vpop.permute.xlu0 %1506  ;;  %v1523_v62 = vunpack.i.l.bf16 %v2115_v45 }
  0x8d   : > { %1736 = vrot.lane.b32.xlu2 %v1735_v7, %s1837_s27  ;;  %v1524_v7 = vunpack.i.h.bf16 %v2115_v45  ;;  %v1509_v32 = vunpack.i.h.bf16 %v2204_v21  ;;  %v1508_v33 = vunpack.i.l.bf16 %v2204_v21 }
  0x8e   : > { %v861_v36 = vsel %vm853_vm6, %v1906_v12, %v1519_v17  ;;  %v860_v22 = vsel %vm853_vm6, %v1888_v2, %v1518_v18  ;;  %v778_v12 = vsel %vm771_vm5, %v775_v57, %v777_v24  ;;  %v797_v57 = vrot.slane %v2017_v52, 6 }
  0x8f   : > { %v2213_v28 = vsel %vm870_vm7, %v861_v36, %v1559_v63  ;;  %v2216_v31 = vsel %vm870_vm7, %v860_v22, %v1558_v4  ;;  %v1572_v34 = vpop.permute.xlu2 %1571  ;;  %v1760_v6 = vpack.i.bf16 %v780_v41, %v778_v12  ;;  %v716_v52 = vsel %vm689_vm4, %v713_v3, %v715_v49 }
  0x90   : > { %v1574_v55 = vunpack.i.h.bf16 %v1572_v34  ;;  %v1573_v2 = vunpack.i.l.bf16 %v1572_v34  ;;  %v800_v18 = vsel %vm771_vm5, %v797_v57, %v799_v56  ;;  %v1529_v36 = vunpack.i.h.bf16 %v2141_v60 }
  0x91   : > { %1746 = vrot.lane.b32.xlu1 %v2088_v16, %s1836_s26  ;;  %v717_v16 = vrot.slane %v2020_v53, 5  ;;  %v1528_v22 = vunpack.i.l.bf16 %v2141_v60  ;;  %v1513_v24 = vunpack.i.l.bf16 %v2169_v25  ;;  %v703_v60 = vrot.slane %v1935_v30, 5 }
  0x92   : > { %1741 = vrot.lane.b32.xlu0 %v1740_v23, %s1838_s28  ;;  %v1514_v23 = vunpack.i.h.bf16 %v2169_v25 }
  0x93   : > { %v2231_v46 = vpop.permute.xlu1 %1536  ;;  %v718_v9 = vsel %vm689_vm4, %v715_v49, %v717_v16 }
  0x94   : > { %v1532_v50 = vpop.permute.xlu0 %1531  ;;  %v1765_v34 = vpack.i.bf16 %v718_v9, %v716_v52  ;;  %v859_v21 = vsel %vm853_vm6, %v1885_v1, %v1514_v23  ;;  %v2293_v52 = vld [vmem:[%s1879_s20 + $0x98] sm:$0xff]  ;;  %v2296_v9 = vld [vmem:[%s1879_s20 + $0xa0] sm:$0xff]  ;;  %v863_v23 = vsel %vm853_vm6, %v1919_v19, %v1524_v7 }
  0x95   : > { %v1534_v61 = vunpack.i.h.bf16 %v1532_v50  ;;  %v1533_v10 = vunpack.i.l.bf16 %v1532_v50  ;;  %1751 = vrot.lane.b32.xlu2 %v1750_v43, %s1837_s27  ;;  %v785_v43 = vrot.slane %v1935_v30, 6  ;;  %v639_v19 = vrot.slane %v2296_v9, 4 }
  0x97   : > { %v867_v63 = vsel %vm853_vm6, %v1953_v39, %v1534_v61  ;;  %v866_v4 = vsel %vm853_vm6, %v1929_v27, %v1533_v10  ;;  %v1587_v17 = vpop.permute.xlu2 %1586  ;;  %v798_v39 = vsel %vm771_vm5, %v795_v51, %v797_v57  ;;  %v857_v10 = vsel %vm853_vm6, %v1912_v14, %v1509_v32 }
  0x98   : > { %v2253_v11 = vsel %vm870_vm7, %v866_v4, %v1573_v2  ;;  %v2256_v45 = vsel %vm870_vm7, %v867_v63, %v1574_v55  ;;  %v1770_v41 = vpack.i.bf16 %v800_v18, %v798_v39  ;;  %v1589_v55 = vunpack.i.h.bf16 %v1587_v17 }
  0x99   : > { %1761 = vrot.lane.b32.xlu1 %v1760_v6, %s1838_s28  ;;  %v1588_v2 = vunpack.i.l.bf16 %v1587_v17  ;;  %v856_v6 = vsel %vm853_vm6, %v1900_v8, %v1508_v33  ;;  %v704_v8 = vsel %vm689_vm4, %v701_v5, %v703_v60  ;;  %v706_v14 = vsel %vm689_vm4, %v703_v60, %v705_v26 }
  0x9a   : > { %1756 = vrot.lane.b32.xlu0 %v2130_v54, %s1836_s26  ;;  %v858_v54 = vsel %vm853_vm6, %v1882_v0, %v1513_v24  ;;  %v862_v24 = vsel %vm853_vm6, %v1909_v13, %v1523_v62  ;;  %v786_v5 = vsel %vm771_vm5, %v783_v15, %v785_v43  ;;  %v788_v26 = vsel %vm771_vm5, %v785_v43, %v787_v44 }
  0x9b   : > { %v1552_v12 = vpop.permute.xlu1 %1551  ;;  %v637_v32 = vrot.slane %v2293_v52, 4  ;;  %v1780_v7 = vpack.i.bf16 %v706_v14, %v704_v8  ;;  %v865_v13 = vsel %vm853_vm6, %v1935_v30, %v1529_v36  ;;  %v793_v15 = vrot.slane %v1947_v37, 6 }
  0x9c   : > { %v1554_v49 = vunpack.i.h.bf16 %v1552_v12  ;;  %v1553_v25 = vunpack.i.l.bf16 %v1552_v12  ;;  %v1547_v50 = vpop.permute.xlu0 %1546  ;;  %v711_v33 = vrot.slane %v1947_v37, 5  ;;  %v719_v8 = vrot.slane %v2293_v52, 5 }
  0x9d   : > { %v1549_v57 = vunpack.i.h.bf16 %v1547_v50  ;;  %v1548_v61 = vunpack.i.l.bf16 %v1547_v50  ;;  %1766 = vrot.lane.b32.xlu2 %v1765_v34, %s1837_s27  ;;  %v640_v36 = vsel %vm553_vm3, %v637_v32, %v639_v19 }
  0x9e   : > { %v2284_v63 = vsel %vm870_vm7, %v858_v54, %v1553_v25  ;;  %v2287_v4 = vsel %vm870_vm7, %v859_v21, %v1554_v49  ;;  %v1790_v49 = vpack.i.bf16 %v788_v26, %v786_v5 }
  0x9f   : > { %v873_v1 = vsel %vm870_vm7, %v856_v6, %v1548_v61  ;;  %v874_v0 = vsel %vm870_vm7, %v857_v10, %v1549_v57  ;;  %v1602_v18 = vpop.permute.xlu2 %1601  ;;  %v794_v57 = vsel %vm771_vm5, %v791_v48, %v793_v15  ;;  %v796_v61 = vsel %vm771_vm5, %v793_v15, %v795_v51 }
  0xa0   : > { %v2305_v17 = vsel %vm887_vm8, %v873_v1, %v1588_v2  ;;  %v2308_v39 = vsel %vm887_vm8, %v874_v0, %v1589_v55  ;;  %v1604_v44 = vunpack.i.h.bf16 %v1602_v18  ;;  %v712_v55 = vsel %vm689_vm4, %v709_v29, %v711_v33 }
  0xa1   : > { %1776 = vrot.lane.b32.xlu1 %v2108_v40, %s1836_s26  ;;  %v864_v40 = vsel %vm853_vm6, %v1922_v20, %v1528_v22  ;;  %v638_v20 = vsel %vm553_vm3, %v585_v42, %v637_v32  ;;  %v714_v2 = vsel %vm689_vm4, %v711_v33, %v713_v3  ;;  %v1539_v29 = vunpack.i.h.bf16 %v2231_v46 }
  0xa2   : > { %1771 = vrot.lane.b32.xlu0 %v1770_v41, %s1838_s28  ;;  %v1603_v41 = vunpack.i.l.bf16 %v1602_v18  ;;  %v1538_v3 = vunpack.i.l.bf16 %v2231_v46  ;;  %v1795_v10 = vpack.i.bf16 %v714_v2, %v712_v55  ;;  %v1805_v1 = vpack.i.bf16 %v640_v36, %v638_v20 }
  0xa3   : > { %v1567_v62 = vpop.permute.xlu1 %1566  ;;  %v1800_v0 = vpack.i.bf16 %v796_v61, %v794_v57  ;;  %v721_v48 = vrot.slane %v2296_v9, 5 }
  0xa4   : > { %v1569_v34 = vunpack.i.h.bf16 %v1567_v62  ;;  %v1568_v27 = vunpack.i.l.bf16 %v1567_v62  ;;  %v1562_v12 = vpop.permute.xlu0 %1561  ;;  %v868_v26 = vsel %vm853_vm6, %v1943_v35, %v1538_v3  ;;  %v720_v35 = vsel %vm689_vm4, %v717_v16, %v719_v8 }
  0xa5   : > { %v1564_v43 = vunpack.i.h.bf16 %v1562_v12  ;;  %v1563_v60 = vunpack.i.l.bf16 %v1562_v12  ;;  %1781 = vrot.lane.b32.xlu2 %v1780_v7, %s1837_s27  ;;  %v803_v7 = vrot.slane %v2296_v9, 6 }
  0xa6   : > { %v2332_v25 = vsel %vm870_vm7, %v865_v13, %v1569_v34  ;;  %v2335_v30 = vsel %vm870_vm7, %v864_v40, %v1568_v27 }
  0xa7   : > { %v880_v22 = vsel %vm870_vm7, %v863_v23, %v1564_v43  ;;  %v879_v50 = vsel %vm870_vm7, %v862_v24, %v1563_v60  ;;  %v1617_v54 = vpop.permute.xlu2 %1616  ;;  %v869_v24 = vsel %vm853_vm6, %v1947_v37, %v1539_v29 }
  0xa8   : > { %v2351_v21 = vsel %vm887_vm8, %v879_v50, %v1603_v41  ;;  %v2354_v42 = vsel %vm887_vm8, %v880_v22, %v1604_v44  ;;  %v1619_v18 = vunpack.i.h.bf16 %v1617_v54  ;;  %v1618_v23 = vunpack.i.l.bf16 %v1617_v54 }
  0xa9   : > { %1791 = vrot.lane.b32.xlu1 %v1790_v49, %s1838_s28 }
  0xaa   : > { %1786 = vrot.lane.b32.xlu0 %v2122_v47, %s1836_s26  ;;  %v801_v47 = vrot.slane %v2293_v52, 6  ;;  %v722_v52 = vsel %vm689_vm4, %v719_v8, %v721_v48 }
  0xab   : > { %v1582_v6 = vpop.permute.xlu1 %1581  ;;  %v1810_v9 = vpack.i.bf16 %v722_v52, %v720_v35  ;;  %v1107_v52 = vld [vmem:[%s2468_s9 + $0x18] sm:$0xff] }
  0xac   : > { %v1584_v38 = vunpack.i.h.bf16 %v1582_v6  ;;  %v1583_v14 = vunpack.i.l.bf16 %v1582_v6  ;;  %v1577_v51 = vpop.permute.xlu0 %1576  ;;  %v802_v16 = vsel %vm771_vm5, %v799_v56, %v801_v47  ;;  %v804_v15 = vsel %vm771_vm5, %v801_v47, %v803_v7  ;;  %v1428_v47 = vld [vmem:[%s2675_s1] sm:$0xff] }
  0xad   : > { %v1579_v46 = vunpack.i.h.bf16 %v1577_v51  ;;  %v1578_v5 = vunpack.i.l.bf16 %v1577_v51  ;;  %1796 = vrot.lane.b32.xlu2 %v1795_v10, %s1837_s27  ;;  %v1815_v60 = vpack.i.bf16 %v804_v15, %v802_v16  ;;  %v1839_v7 = vmov 0  }
  0xae   : > { %v2376_v32 = vsel %vm887_vm8, %v2189_v58, %v1583_v14  ;;  %v2380_v19 = vsel %vm887_vm8, %v2192_v59, %v1584_v38  ;;  %1820 = vset.pattern.permute.xlu1 %v1839_v7  ;;  %1821 = vset.pattern.permute.xlu2 %v1839_v7 }
  0xaf   : > { %v886_v37 = vsel %vm870_vm7, %v869_v24, %v1579_v46  ;;  %v885_v13 = vsel %vm870_vm7, %v868_v26, %v1578_v5  ;;  %v2396_v40 = vpop.permute.xlu2 %1631  ;;  %v1104_v26 = vld [vmem:[%s2468_s9] sm:$0xff]  ;;  %1822 = vset.pattern.permute.xlu0 %v1839_v7 }
  0xb0   : > { %v2391_v58 = vsel %vm887_vm8, %v885_v13, %v1618_v23  ;;  %v2394_v59 = vsel %vm887_vm8, %v886_v37, %v1619_v18 }
  0xb1   : > { %1806 = vrot.lane.b32.xlu1 %v1805_v1, %s1836_s26 }
  0xb2   : > { %1801 = vrot.lane.b32.xlu0 %v1800_v0, %s1838_s28 }
  0xb3   : > { %v1597_v62 = vpop.permute.xlu1 %1596 }
  0xb4   : > { %v1599_v33 = vunpack.i.h.bf16 %v1597_v62  ;;  %v1598_v34 = vunpack.i.l.bf16 %v1597_v62  ;;  %v1592_v27 = vpop.permute.xlu0 %1591  ;;  %v1109_v62 = vld [vmem:[%s2468_s9 + $0x28] sm:$0xff] }
  0xb5   : > { %v1594_v12 = vunpack.i.h.bf16 %v1592_v27  ;;  %v1593_v44 = vunpack.i.l.bf16 %v1592_v27  ;;  %1811 = vrot.lane.b32.xlu2 %v1810_v9, %s1837_s27 }
  0xb6   : > { %v894_v41 = vsel %vm887_vm8, %v2216_v31, %v1598_v34  ;;  %v895_v43 = vsel %vm887_vm8, %v2213_v28, %v1599_v33 }
  0xb7   : > { %v2411_v53 = vsel %vm887_vm8, %v2287_v4, %v1594_v12  ;;  %v2415_v56 = vsel %vm887_vm8, %v2284_v63, %v1593_v44  ;;  %v1647_v49 = vpop.permute.xlu2 %1646 }
  0xb8   : > { %v1649_v50 = vunpack.i.h.bf16 %v1647_v49  ;;  %v1648_v28 = vunpack.i.l.bf16 %v1647_v49 }
  0xb9   : > { %1122 = vperm.xlu1 %1820, %v1104_v26   ;;  %v1115_v26 = vld [vmem:[%s2468_s9 + $0x58] sm:$0xff] }
  0xba   : > { %1816 = vrot.lane.b32.xlu0 %v1815_v60, %s1838_s28 }
  0xbb   : > { %v1612_v20 = vpop.permute.xlu1 %1611 }
  0xbc   : > { %v1614_v36 = vunpack.i.h.bf16 %v1612_v20  ;;  %v1613_v31 = vunpack.i.l.bf16 %v1612_v20  ;;  %v1607_v22 = vpop.permute.xlu0 %1606  ;;  %v1112_v20 = vld [vmem:[%s2468_s9 + $0x40] sm:$0xff] }
  0xbd   : > { %v1609_v55 = vunpack.i.h.bf16 %v1607_v22  ;;  %v1608_v2 = vunpack.i.l.bf16 %v1607_v22 }
  0xbe   : > { %v2420_v4 = vsel %vm887_vm8, %v2253_v11, %v1613_v31  ;;  %v2424_v63 = vsel %vm887_vm8, %v2256_v45, %v1614_v36  ;;  %v1634_v36 = vunpack.i.h.bf16 %v2396_v40 }
  0xbf   : > { %v899_v54 = vsel %vm887_vm8, %v2332_v25, %v1609_v55  ;;  %v898_v57 = vsel %vm887_vm8, %v2335_v30, %v1608_v2  ;;  %v2436_v1 = vpop.permute.xlu2 %1661  ;;  %v1633_v55 = vunpack.i.l.bf16 %v2396_v40 }
  0xc0   : > { %v2431_v61 = vsel %vm904_vm9, %v898_v57, %v1648_v28  ;;  %v2434_v29 = vsel %vm904_vm9, %v899_v54, %v1649_v50  ;;  %v1664_v12 = vunpack.i.h.bf16 %v2436_v1  ;;  %v1663_v44 = vunpack.i.l.bf16 %v2436_v1  ;;  %v1105_v54 = vld [vmem:[%s2468_s9 + $0x8] sm:$0xff] }
  0xc1   : > { %1137 = vperm.xlu1 %1820, %v1107_v52   ;;  %1127 = vperm.xlu2 %1821, %v1105_v54  }
  0xc3   : > { %v1627_v3 = vpop.permute.xlu1 %1626 }
  0xc4   : > { %v1629_v11 = vunpack.i.h.bf16 %v1627_v3  ;;  %v1628_v10 = vunpack.i.l.bf16 %v1627_v3  ;;  %v1622_v6 = vpop.permute.xlu0 %1621 }
  0xc5   : > { %v1624_v16 = vunpack.i.h.bf16 %v1622_v6  ;;  %v1623_v15 = vunpack.i.l.bf16 %v1622_v6 }
  0xc6   : > { %v2440_v45 = vsel %vm904_vm9, %v2305_v17, %v1628_v10  ;;  %v2444_v25 = vsel %vm904_vm9, %v2308_v39, %v1629_v11  ;;  %v1429_v39 = vld [vmem:[%s2675_s1 + $0x8] sm:$0xff] }
  0xc7   : > { %v2457_v14 = vpop.permute.xlu2 %1676  ;;  %1061 = vmatpush.bf16.msra.mxu0 %v1429_v39  ;;  %1477 = vmatpush.bf16.msra.mxu1 %v1429_v39 }
  0xc8   : > { %1478 = vmatpush.bf16.msra.mxu2 %v1429_v39  ;;  %1479 = vmatpush.bf16.msra.mxu3 %v1429_v39  ;;  %v909_v39 = vsel %vm904_vm9, %v2415_v56, %v1633_v55 }
  0xc9   : > { %1147 = vperm.xlu1 %1820, %v1109_v62  }
  0xcb   : > { %v2447_v30 = vpop.permute.xlu1 %1641  ;;  %1062 = vmatpush.bf16.msra.mxu0 %v1428_v47  ;;  %1480 = vmatpush.bf16.msra.mxu1 %v1428_v47 }
  0xcc   : > { %v1637_v0 = vpop.permute.xlu0 %1636  ;;  %1481 = vmatpush.bf16.msra.mxu2 %v1428_v47  ;;  %1482 = vmatpush.bf16.msra.mxu3 %v1428_v47  ;;  %v1106_v47 = vld [vmem:[%s2468_s9 + $0x10] sm:$0xff] }
  0xcd   : > { %v1639_v8 = vunpack.i.h.bf16 %v1637_v0  ;;  %v1638_v48 = vunpack.i.l.bf16 %v1637_v0  ;;  %1132 = vperm.xlu0 %1822, %v1106_v47  }
  0xcf   : > { %v2452_v38 = vsel %vm904_vm9, %v895_v43, %v1639_v8  ;;  %v2455_v17 = vsel %vm904_vm9, %v894_v41, %v1638_v48  ;;  %v2482_v37 = vpop.permute.xlu2 %1691  ;;  %v905_v41 = vsel %vm904_vm9, %v2376_v32, %v1623_v15  ;;  %v906_v43 = vsel %vm904_vm9, %v2380_v19, %v1624_v16 }
  0xd0   : > { %v922_v31 = vsel %vm921_vm10, %v905_v41, %v1663_v44  ;;  %v923_v22 = vsel %vm921_vm10, %v906_v43, %v1664_v12  ;;  %v1108_v12 = vld [vmem:[%s2468_s9 + $0x20] sm:$0xff] }
  0xd1   : > { %1162 = vperm.xlu1 %1820, %v1112_v20   ;;  %1142 = vperm.xlu2 %1821, %v1108_v12  }
  0xd3   : > { %v1657_v51 = vpop.permute.xlu1 %1656 }
  0xd4   : > { %v1659_v18 = vunpack.i.h.bf16 %v1657_v51  ;;  %v1658_v23 = vunpack.i.l.bf16 %v1657_v51  ;;  %v2463_v24 = vpop.permute.xlu0 %1651  ;;  %v910_v51 = vsel %vm904_vm9, %v2411_v53, %v1634_v36 }
  0xd6   : > { %v2472_v46 = vsel %vm904_vm9, %v2391_v58, %v1658_v23  ;;  %v2476_v5 = vsel %vm904_vm9, %v2394_v59, %v1659_v18 }
  0xd7   : > { %v1707_v58 = vpop.permute.xlu2 %1706 }
  0xd8   : > { %v1709_v50 = vunpack.i.h.bf16 %v1707_v58  ;;  %v1708_v28 = vunpack.i.l.bf16 %v1707_v58 }
  0xd9   : > { %1177 = vperm.xlu1 %1820, %v1115_v26  }
  0xdb   : > { %v2484_v13 = vpop.permute.xlu1 %1671 }
  0xdc   : > { %v2486_v35 = vpop.permute.xlu0 %1666  ;;  %v1673_v57 = vunpack.i.l.bf16 %v2484_v13  ;;  %v1674_v11 = vunpack.i.h.bf16 %v2484_v13 }
  0xde   : > { %v926_v7 = vsel %vm921_vm10, %v909_v39, %v1673_v57  ;;  %v927_v56 = vsel %vm921_vm10, %v910_v51, %v1674_v11  ;;  %v1118_v57 = vld [vmem:[%s2468_s9 + $0x70] sm:$0xff]  ;;  %v1669_v51 = vunpack.i.h.bf16 %v2486_v35 }
  0xdf   : > { %v2494_v34 = vpop.permute.xlu2 %1721 }
  0xe0   : > { %v1724_v58 = vunpack.i.h.bf16 %v2494_v34  ;;  %v1723_v53 = vunpack.i.l.bf16 %v2494_v34  ;;  %v1643_v34 = vunpack.i.l.bf16 %v2447_v30 }
  0xe1   : > { %1192 = vperm.xlu1 %1820, %v1118_v57  }
  0xe3   : > { %v2489_v59 = vpop.permute.xlu1 %1686 }
  0xe4   : > { %v2491_v9 = vpop.permute.xlu0 %1681 }
  0xe5   : > { %v1684_v36 = vunpack.i.h.bf16 %v2491_v9 }
  0xe7   : > { %v2514_v40 = vpop.permute.xlu2 %1736 }
  0xeb   : > { %v1702_v33 = vpop.permute.xlu1 %1701 }
  0xec   : > { %v2496_v27 = vpop.permute.xlu0 %1696  ;;  %v1704_v60 = vunpack.i.h.bf16 %v1702_v33  ;;  %v1703_v49 = vunpack.i.l.bf16 %v1702_v33 }
  0xee   : > { %v939_v32 = vsel %vm938_vm11, %v922_v31, %v1703_v49  ;;  %v940_v19 = vsel %vm938_vm11, %v923_v22, %v1704_v60  ;;  %v1644_v60 = vunpack.i.h.bf16 %v2447_v30  ;;  %v1683_v31 = vunpack.i.l.bf16 %v2491_v9  ;;  %v1111_v30 = vld [vmem:[%s2468_s9 + $0x38] sm:$0xff] }
  0xef   : > { %v956_v1 = vsel %vm955_vm12, %v939_v32, %v1708_v28  ;;  %v957_v0 = vsel %vm955_vm12, %v940_v19, %v1709_v50  ;;  %1157 = vperm.xlu0 %1822, %v1111_v30  }
  0xf0   : > { %v914_v9 = vsel %vm904_vm9, %v2354_v42, %v1644_v60  ;;  %v1668_v42 = vunpack.i.l.bf16 %v2486_v35 }
  0xf3   : > { %v1717_v2 = vpop.permute.xlu1 %1716 }
  0xf4   : > { %v1712_v3 = vpop.permute.xlu0 %1711  ;;  %v1719_v8 = vunpack.i.h.bf16 %v1717_v2  ;;  %v1718_v48 = vunpack.i.l.bf16 %v1717_v2  ;;  %v1752_v2 = vpop.permute.xlu2 %1751 }
  0xf5   : > { %v1714_v10 = vunpack.i.h.bf16 %v1712_v3  ;;  %v1713_v6 = vunpack.i.l.bf16 %v1712_v3  ;;  %v913_v3 = vsel %vm904_vm9, %v2351_v21, %v1643_v34  ;;  %v1113_v34 = vld [vmem:[%s2468_s9 + $0x48] sm:$0xff] }
  0xf6   : > { %v943_v16 = vsel %vm938_vm11, %v926_v7, %v1718_v48  ;;  %v944_v15 = vsel %vm938_vm11, %v927_v56, %v1719_v8  ;;  %v930_v11 = vsel %vm921_vm10, %v913_v3, %v1683_v31  ;;  %v1110_v48 = vld [vmem:[%s2468_s9 + $0x30] sm:$0xff]  ;;  %v1693_v31 = vunpack.i.l.bf16 %v2482_v37 }
  0xf7   : > { %v973_v18 = vsel %vm972_vm13, %v956_v1, %v1713_v6  ;;  %v974_v23 = vsel %vm972_vm13, %v957_v0, %v1714_v10  ;;  %v960_v49 = vsel %vm955_vm12, %v943_v16, %v1723_v53  ;;  %v961_v20 = vsel %vm955_vm12, %v944_v15, %v1724_v58  ;;  %1152 = vperm.xlu2 %1821, %v1110_v48   ;;  %v1114_v56 = vld [vmem:[%s2468_s9 + $0x50] sm:$0xff] }
  0xf8   : > { %v990_v13 = vsel %vm989_vm14, %v973_v18, 0.0  ;;  %v991_v52 = vsel %vm989_vm14, %v974_v23, 0.0  ;;  %v931_v10 = vsel %vm921_vm10, %v914_v9, %v1684_v36  ;;  %v1739_v6 = vunpack.i.h.bf16 %v2514_v40  ;;  %1172 = vperm.xlu0 %1822, %v1114_v56  }
  0xf9   : > { %v1006_v62 = vpack.c.bf16 %v991_v52, %v990_v13  ;;  %v1738_v1 = vunpack.i.l.bf16 %v2514_v40  ;;  %v924_v58 = vsel %vm921_vm10, %v2440_v45, %v1668_v42  ;;  %v1754_v16 = vunpack.i.h.bf16 %v1752_v2 }
  0xfa   : > { %v1753_v15 = vunpack.i.l.bf16 %v1752_v2  ;;  %v1694_v36 = vunpack.i.h.bf16 %v2482_v37  ;;  %v1679_v48 = vunpack.i.h.bf16 %v2457_v14 }
  0xfb   : > { %1418 = vmatmul.msk.bf16.vlgmr.msra.gmra.mxu0 %vm1030_vm15, %v1006_v62  ;;  %v1732_v33 = vpop.permute.xlu1 %1731  ;;  %v925_v62 = vsel %vm921_vm10, %v2444_v25, %v1669_v51 }
  0xfc   : > { %v1734_v44 = vunpack.i.h.bf16 %v1732_v33  ;;  %v1733_v41 = vunpack.i.l.bf16 %v1732_v33  ;;  %v1727_v43 = vpop.permute.xlu0 %1726  ;;  %v1767_v12 = vpop.permute.xlu2 %1766 }
  0xfd   : > { %v1729_v28 = vunpack.i.h.bf16 %v1727_v43  ;;  %v1728_v55 = vunpack.i.l.bf16 %v1727_v43  ;;  %v1769_v9 = vunpack.i.h.bf16 %v1767_v12 }
  0xfe   : > { %v977_v22 = vsel %vm972_vm13, %v960_v49, %v1733_v41  ;;  %v978_v50 = vsel %vm972_vm13, %v961_v20, %v1734_v44  ;;  %v1654_v44 = vunpack.i.h.bf16 %v2463_v24  ;;  %v1653_v41 = vunpack.i.l.bf16 %v2463_v24 }
  0xff   : > { %v994_v32 = vsel %vm989_vm14, %v977_v22, 0.0  ;;  %v995_v19 = vsel %vm989_vm14, %v978_v50, 0.0  ;;  %v947_v0 = vsel %vm938_vm11, %v930_v11, %v1728_v55  ;;  %v948_v8 = vsel %vm938_vm11, %v931_v10, %v1729_v28  ;;  %1167 = vperm.xlu2 %1821, %v1113_v34   ;;  %v1117_v50 = vld [vmem:[%s2468_s9 + $0x68] sm:$0xff] }
 0x100   : > { %v1008_v54 = vpack.c.bf16 %v995_v19, %v994_v32  ;;  %v964_v47 = vsel %vm955_vm12, %v947_v0, %v1738_v1  ;;  %v965_v40 = vsel %vm955_vm12, %v948_v8, %v1739_v6  ;;  %v917_v28 = vsel %vm904_vm9, %v2420_v4, %v1653_v41  ;;  %1187 = vperm.xlu0 %1822, %v1117_v50   ;;  %v1116_v0 = vld [vmem:[%s2468_s9 + $0x60] sm:$0xff] }
 0x101   : > { %v918_v55 = vsel %vm904_vm9, %v2424_v63, %v1654_v44  ;;  %v934_v3 = vsel %vm921_vm10, %v917_v28, %v1693_v31  ;;  %v1768_v11 = vunpack.i.l.bf16 %v1767_v12  ;;  %v1678_v8 = vunpack.i.l.bf16 %v2457_v14 }
 0x102   : > { %1420 = vmatmul.msk.bf16.vlgmr.msra.gmra.mxu1 %vm1030_vm15, %v1008_v54  ;;  %v935_v4 = vsel %vm921_vm10, %v918_v55, %v1694_v36 }
 0x103   : > { %v1747_v21 = vpop.permute.xlu1 %1746 }
 0x104   : > { %v1742_v39 = vpop.permute.xlu0 %1741  ;;  %v1749_v26 = vunpack.i.h.bf16 %v1747_v21  ;;  %v1748_v7 = vunpack.i.l.bf16 %v1747_v21  ;;  %v1782_v1 = vpop.permute.xlu2 %1781 }
 0x105   : > { %v1744_v18 = vunpack.i.h.bf16 %v1742_v39  ;;  %v1743_v23 = vunpack.i.l.bf16 %v1742_v39  ;;  %v1784_v56 = vunpack.i.h.bf16 %v1782_v1 }
 0x106   : > { %v941_v43 = vsel %vm938_vm11, %v924_v58, %v1748_v7  ;;  %v942_v45 = vsel %vm938_vm11, %v925_v62, %v1749_v26  ;;  %v928_v7 = vsel %vm921_vm10, %v2455_v17, %v1678_v8  ;;  %v1783_v58 = vunpack.i.l.bf16 %v1782_v1 }
 0x107   : > { %v981_v13 = vsel %vm972_vm13, %v964_v47, %v1743_v23  ;;  %v982_v52 = vsel %vm972_vm13, %v965_v40, %v1744_v18  ;;  %v958_v22 = vsel %vm955_vm12, %v941_v43, %v1753_v15  ;;  %v959_v24 = vsel %vm955_vm12, %v942_v45, %v1754_v16  ;;  %1182 = vperm.xlu2 %1821, %v1116_v0  }
 0x108   : > { %v998_v53 = vsel %vm989_vm14, %v981_v13, 0.0  ;;  %v999_v35 = vsel %vm989_vm14, %v982_v52, 0.0  ;;  %v929_v52 = vsel %vm921_vm10, %v2452_v38, %v1679_v48  ;;  %v1689_v43 = vunpack.i.h.bf16 %v2489_v59 }
 0x109   : > { %v1010_v33 = vpack.c.bf16 %v999_v35, %v998_v53  ;;  %v1119_v35 = vld [vmem:[%s2468_s9 + $0x78] sm:$0xff]  ;;  %v1688_v45 = vunpack.i.l.bf16 %v2489_v59 }
 0x10b   : > { %1422 = vmatmul.msk.bf16.vlgmr.msra.gmra.mxu2 %vm1030_vm15, %v1010_v33  ;;  %v1762_v60 = vpop.permute.xlu1 %1761 }
 0x10c   : > { %v1764_v49 = vunpack.i.h.bf16 %v1762_v60  ;;  %v1763_v20 = vunpack.i.l.bf16 %v1762_v60  ;;  %v1757_v25 = vpop.permute.xlu0 %1756  ;;  %v1797_v38 = vpop.permute.xlu2 %1796 }
 0x10d   : > { %v1759_v2 = vunpack.i.h.bf16 %v1757_v25  ;;  %v1758_v30 = vunpack.i.l.bf16 %v1757_v25  ;;  %v1799_v50 = vunpack.i.h.bf16 %v1797_v38  ;;  %v1798_v28 = vunpack.i.l.bf16 %v1797_v38 }
 0x10e   : > { %v975_v32 = vsel %vm972_vm13, %v958_v22, %v1763_v20  ;;  %v976_v19 = vsel %vm972_vm13, %v959_v24, %v1764_v49  ;;  %v932_v22 = vsel %vm921_vm10, %v2431_v61, %v1688_v45  ;;  %v933_v24 = vsel %vm921_vm10, %v2434_v29, %v1689_v43 }
 0x10f   : > { %v992_v37 = vsel %vm989_vm14, %v975_v32, 0.0  ;;  %v993_v54 = vsel %vm989_vm14, %v976_v19, 0.0  ;;  %v951_v63 = vsel %vm938_vm11, %v934_v3, %v1758_v30  ;;  %v952_v10 = vsel %vm938_vm11, %v935_v4, %v1759_v2  ;;  %1197 = vperm.xlu2 %1821, %v1119_v35  }
 0x110   : > { %v1007_v57 = vpack.c.bf16 %v993_v54, %v992_v37  ;;  %v968_v51 = vsel %vm955_vm12, %v951_v63, %v1768_v11  ;;  %v969_v18 = vsel %vm955_vm12, %v952_v10, %v1769_v9  ;;  %v1699_v37 = vunpack.i.h.bf16 %v2496_v27 }
 0x111   : > { %v1698_v54 = vunpack.i.l.bf16 %v2496_v27 }
 0x112   : > { %1419 = vmatmul.msk.bf16.gmra.mxu0 %vm1030_vm15, %v1007_v57  ;;  %v937_v27 = vsel %vm921_vm10, %v2476_v5, %v1699_v37 }
 0x113   : > { %v1777_v6 = vpop.permute.xlu1 %1776  ;;  %v936_v1 = vsel %vm921_vm10, %v2472_v46, %v1698_v54 }
 0x114   : > { %v1772_v21 = vpop.permute.xlu0 %1771  ;;  %v1779_v23 = vunpack.i.h.bf16 %v1777_v6  ;;  %v1778_v47 = vunpack.i.l.bf16 %v1777_v6  ;;  %v1812_v4 = vpop.permute.xlu2 %1811 }
 0x115   : > { %v1774_v42 = vunpack.i.h.bf16 %v1772_v21  ;;  %v1773_v39 = vunpack.i.l.bf16 %v1772_v21  ;;  %v1814_v0 = vunpack.i.h.bf16 %v1812_v4  ;;  %v1813_v8 = vunpack.i.l.bf16 %v1812_v4 }
 0x116   : > { %v945_v62 = vsel %vm938_vm11, %v928_v7, %v1778_v47  ;;  %v946_v16 = vsel %vm938_vm11, %v929_v52, %v1779_v23 }
 0x117   : > { %v985_v40 = vsel %vm972_vm13, %v968_v51, %v1773_v39  ;;  %v986_v26 = vsel %vm972_vm13, %v969_v18, %v1774_v42  ;;  %v962_v44 = vsel %vm955_vm12, %v945_v62, %v1783_v58  ;;  %v963_v41 = vsel %vm955_vm12, %v946_v16, %v1784_v56 }
 0x118   : > { %v1002_v13 = vsel %vm989_vm14, %v985_v40, 0.0  ;;  %v1003_v14 = vsel %vm989_vm14, %v986_v26, 0.0 }
 0x119   : > { %v1012_v53 = vpack.c.bf16 %v1003_v14, %v1002_v13 }
 0x11b   : > { %1424 = vmatmul.msk.bf16.vlgmr.msra.gmra.mxu3 %vm1030_vm15, %v1012_v53  ;;  %v1792_v15 = vpop.permute.xlu1 %1791 }
 0x11c   : > { %v1794_v33 = vunpack.i.h.bf16 %v1792_v15  ;;  %v1793_v17 = vunpack.i.l.bf16 %v1792_v15  ;;  %v1787_v12 = vpop.permute.xlu0 %1786  ;;  %v1128_v35 = vpop.permute.xlu2 %1127 }
 0x11d   : > { %v1789_v49 = vunpack.i.h.bf16 %v1787_v12  ;;  %v1788_v20 = vunpack.i.l.bf16 %v1787_v12 }
 0x11e   : > { %v979_v60 = vsel %vm972_vm13, %v962_v44, %v1793_v17  ;;  %v980_v34 = vsel %vm972_vm13, %v963_v41, %v1794_v33 }
 0x11f   : > { %v996_v25 = vsel %vm989_vm14, %v979_v60, 0.0  ;;  %v997_v36 = vsel %vm989_vm14, %v980_v34, 0.0  ;;  %v949_v59 = vsel %vm938_vm11, %v932_v22, %v1788_v20  ;;  %v950_v55 = vsel %vm938_vm11, %v933_v24, %v1789_v49 }
 0x120   : > { %v1009_v31 = vpack.c.bf16 %v997_v36, %v996_v25  ;;  %v966_v61 = vsel %vm955_vm12, %v949_v59, %v1798_v28  ;;  %v967_v29 = vsel %vm955_vm12, %v950_v55, %v1799_v50 }
 0x122   : > { %1421 = vmatmul.msk.bf16.gmra.mxu1 %vm1030_vm15, %v1009_v31 }
 0x123   : > { %v1807_v32 = vpop.permute.xlu1 %1806 }
 0x124   : > { %v1802_v19 = vpop.permute.xlu0 %1801  ;;  %v1809_v57 = vunpack.i.h.bf16 %v1807_v32  ;;  %v1808_v3 = vunpack.i.l.bf16 %v1807_v32 }
 0x125   : > { %v1804_v2 = vunpack.i.h.bf16 %v1802_v19  ;;  %v1803_v30 = vunpack.i.l.bf16 %v1802_v19 }
 0x126   : > { %v953_v21 = vsel %vm938_vm11, %v936_v1, %v1808_v3  ;;  %v954_v48 = vsel %vm938_vm11, %v937_v27, %v1809_v57 }
 0x127   : > { %v983_v9 = vsel %vm972_vm13, %v966_v61, %v1803_v30  ;;  %v984_v11 = vsel %vm972_vm13, %v967_v29, %v1804_v2  ;;  %v970_v18 = vsel %vm955_vm12, %v953_v21, %v1813_v8  ;;  %v971_v23 = vsel %vm955_vm12, %v954_v48, %v1814_v0 }
 0x128   : > { %v1000_v63 = vsel %vm989_vm14, %v983_v9, 0.0  ;;  %v1001_v10 = vsel %vm989_vm14, %v984_v11, 0.0 }
 0x129   : > { %v1011_v6 = vpack.c.bf16 %v1001_v10, %v1000_v63 }
 0x12b   : > { %1423 = vmatmul.msk.bf16.gmra.mxu2 %vm1030_vm15, %v1011_v6  ;;  %v1123_v56 = vpop.permute.xlu1 %1122  ;;  %v1143_v33 = vpop.permute.xlu2 %1142 }
 0x12c   : > { %v1817_v42 = vpop.permute.xlu0 %1816 }
 0x12d   : > { %v1819_v39 = vunpack.i.h.bf16 %v1817_v42  ;;  %v1818_v51 = vunpack.i.l.bf16 %v1817_v42 }
 0x12f   : > { %v987_v46 = vsel %vm972_vm13, %v970_v18, %v1818_v51  ;;  %v988_v5 = vsel %vm972_vm13, %v971_v23, %v1819_v39 }
 0x130   : > { %v1004_v47 = vsel %vm989_vm14, %v987_v46, 0.0  ;;  %v1005_v40 = vsel %vm989_vm14, %v988_v5, 0.0 }
 0x131   : > { %v1013_v26 = vpack.c.bf16 %v1005_v40, %v1004_v47 }
 0x133   : > { %1425 = vmatmul.msk.bf16.gmra.mxu3 %vm1030_vm15, %v1013_v26  ;;  %v1138_v15 = vpop.permute.xlu1 %1137 }
 0x13b   : > { %v1148_v25 = vpop.permute.xlu1 %1147 }
 0x13f   : > { %v1133_v12 = vpop.permute.xlu0 %1132 }
 0x143   : > { %v1163_v3 = vpop.permute.xlu1 %1162 }
 0x14b   : > { %v1178_v47 = vpop.permute.xlu1 %1177 }
 0x151   : > { %v1153_v2 = vpop.permute.xlu2 %1152 }
 0x159   : > { %v1168_v48 = vpop.permute.xlu2 %1167 }
 0x161   : > { %v1158_v57 = vpop.permute.xlu0 %1157 }
 0x16a   : > { %v1173_v46 = vpop.permute.xlu0 %1172 }
 0x178   : > { %v1064_v7 = vpop.f32.mrf.mxu0 }
 0x179   : > { %v1200_v41 = vmul.f32 %v1123_v56, %v1064_v7 }
 0x17b   : > { %v1237_v20 = vmul.f32 %v1200_v41, %v1064_v7 }
 0x17f   : > { %v1074_v13 = vpop.f32.mrf.mxu1 }
 0x180   : > { %v1066_v14 = vpop.f32.mrf.mxu0  ;;  %v1204_v59 = vmul.f32 %v1143_v33, %v1074_v13 }
 0x181   : > { %v1433_v52 = vpack.c.bf16 %v1066_v14, %v1064_v7  ;;  %v1201_v17 = vmul.f32 %v1128_v35, %v1066_v14 }
 0x182   : > { %v1241_v37 = vmul.f32 %v1204_v59, %v1074_v13 }
 0x183   : > { %1434 = vst [vmem:[%s2655_s17] sm:$0xff] %v1433_v52   ;;  %v1238_v34 = vmul.f32 %v1201_v17, %v1066_v14  ;;  %v1216_v36 = vadd.f32 %v1201_v17, %v1200_v41 }
 0x185   : > { %v1253_v22 = vadd.f32 %v1238_v34, %v1237_v20 }
 0x187   : > { %v1076_v58 = vpop.f32.mrf.mxu1 }
 0x188   : > { %v1443_v53 = vpack.c.bf16 %v1076_v58, %v1074_v13  ;;  %v1205_v54 = vmul.f32 %v1148_v25, %v1076_v58 }
 0x18a   : > { %1471 = vst [vmem:[%s2655_s17 + $0x10] sm:$0xff] %v1443_v53   ;;  %v1242_v11 = vmul.f32 %v1205_v54, %v1076_v58  ;;  %v1183_v58 = vpop.permute.xlu2 %1182 }
 0x18e   : > { %v1084_v62 = vpop.f32.mrf.mxu2 }
 0x18f   : > { %v1069_v16 = vpop.f32.mrf.mxu0  ;;  %v1208_v39 = vmul.f32 %v1163_v3, %v1084_v62 }
 0x190   : > { %v1202_v38 = vmul.f32 %v1133_v12, %v1069_v16 }
 0x191   : > { %v1245_v40 = vmul.f32 %v1208_v39, %v1084_v62 }
 0x192   : > { %v1239_v31 = vmul.f32 %v1202_v38, %v1069_v16  ;;  %v1217_v24 = vadd.f32 %v1216_v36, %v1202_v38  ;;  %v1188_v38 = vpop.permute.xlu0 %1187 }
 0x194   : > { %v1254_v55 = vadd.f32 %v1253_v22, %v1239_v31 }
 0x196   : > { %v1086_v44 = vpop.f32.mrf.mxu2 }
 0x197   : > { %v1453_v43 = vpack.c.bf16 %v1086_v44, %v1084_v62  ;;  %v1071_v45 = vpop.f32.mrf.mxu0  ;;  %v1209_v26 = vmul.f32 %v1168_v48, %v1086_v44 }
 0x198   : > { %v1438_v60 = vpack.c.bf16 %v1071_v45, %v1069_v16  ;;  %v1203_v49 = vmul.f32 %v1138_v15, %v1071_v45 }
 0x199   : > { %1473 = vst [vmem:[%s2655_s17 + $0x20] sm:$0xff] %v1453_v43   ;;  %v1246_v52 = vmul.f32 %v1209_v26, %v1086_v44  ;;  %v1193_v43 = vpop.permute.xlu1 %1192 }
 0x19a   : > { %1470 = vst [vmem:[%s2655_s17 + $0x8] sm:$0xff] %v1438_v60   ;;  %v1240_v50 = vmul.f32 %v1203_v49, %v1071_v45  ;;  %v1218_v32 = vadd.f32 %v1217_v24, %v1203_v49  ;;  %v1198_v24 = vpop.permute.xlu2 %1197 }
 0x19c   : > { %v1255_v30 = vadd.f32 %v1254_v55, %v1240_v50  ;;  %v1219_v61 = vadd.f32 %v1218_v32, %v1204_v59 }
 0x19e   : > { %v1094_v28 = vpop.f32.mrf.mxu3  ;;  %v1256_v4 = vadd.f32 %v1255_v30, %v1241_v37  ;;  %v1220_v63 = vadd.f32 %v1219_v61, %v1205_v54 }
 0x19f   : > { %v1079_v19 = vpop.f32.mrf.mxu1  ;;  %v1212_v33 = vmul.f32 %v1183_v58, %v1094_v28 }
 0x1a0   : > { %v1206_v29 = vmul.f32 %v1153_v2, %v1079_v19  ;;  %v1257_v21 = vadd.f32 %v1256_v4, %v1242_v11 }
 0x1a1   : > { %v1249_v44 = vmul.f32 %v1212_v33, %v1094_v28 }
 0x1a2   : > { %v1243_v10 = vmul.f32 %v1206_v29, %v1079_v19  ;;  %v1221_v8 = vadd.f32 %v1220_v63, %v1206_v29 }
 0x1a4   : > { %v1258_v51 = vadd.f32 %v1257_v21, %v1243_v10 }
 0x1a6   : > { %v1096_v9 = vpop.f32.mrf.mxu3 }
 0x1a7   : > { %v1463_v6 = vpack.c.bf16 %v1096_v9, %v1094_v28  ;;  %v1081_v1 = vpop.f32.mrf.mxu1  ;;  %v1213_v45 = vmul.f32 %v1188_v38, %v1096_v9 }
 0x1a8   : > { %v1207_v27 = vmul.f32 %v1158_v57, %v1081_v1  ;;  %v1448_v0 = vpack.c.bf16 %v1081_v1, %v1079_v19 }
 0x1a9   : > { %1475 = vst [vmem:[%s2655_s17 + $0x30] sm:$0xff] %v1463_v6   ;;  %v1250_v36 = vmul.f32 %v1213_v45, %v1096_v9 }
 0x1aa   : > { %v1244_v42 = vmul.f32 %v1207_v27, %v1081_v1  ;;  %1472 = vst [vmem:[%s2655_s17 + $0x18] sm:$0xff] %v1448_v0   ;;  %v1222_v18 = vadd.f32 %v1221_v8, %v1207_v27 }
 0x1ac   : > { %v1259_v23 = vadd.f32 %v1258_v51, %v1244_v42  ;;  %v1223_v7 = vadd.f32 %v1222_v18, %v1208_v39 }
 0x1ae   : > { %v1089_v5 = vpop.f32.mrf.mxu2  ;;  %v1260_v13 = vadd.f32 %v1259_v23, %v1245_v40  ;;  %v1224_v56 = vadd.f32 %v1223_v7, %v1209_v26 }
 0x1af   : > { %v1210_v14 = vmul.f32 %v1173_v46, %v1089_v5 }
 0x1b0   : > { %v1261_v35 = vadd.f32 %v1260_v13, %v1246_v52 }
 0x1b1   : > { %v1247_v53 = vmul.f32 %v1210_v14, %v1089_v5  ;;  %v1225_v17 = vadd.f32 %v1224_v56, %v1210_v14 }
 0x1b3   : > { %v1262_v62 = vadd.f32 %v1261_v35, %v1247_v53 }
 0x1b6   : > { %v1091_v16 = vpop.f32.mrf.mxu2  ;;  %v1099_v15 = vpop.f32.mrf.mxu3 }
 0x1b7   : > { %v1211_v12 = vmul.f32 %v1178_v47, %v1091_v16  ;;  %v1458_v41 = vpack.c.bf16 %v1091_v16, %v1089_v5  ;;  %v1214_v49 = vmul.f32 %v1193_v43, %v1099_v15 }
 0x1b9   : > { %v1226_v60 = vadd.f32 %v1225_v17, %v1211_v12  ;;  %v1248_v34 = vmul.f32 %v1211_v12, %v1091_v16  ;;  %1474 = vst [vmem:[%s2655_s17 + $0x28] sm:$0xff] %v1458_v41   ;;  %v1251_v50 = vmul.f32 %v1214_v49, %v1099_v15 }
 0x1bb   : > { %v1227_v20 = vadd.f32 %v1226_v60, %v1212_v33  ;;  %v1263_v25 = vadd.f32 %v1262_v62, %v1248_v34 }
 0x1bd   : > { %v1264_v31 = vadd.f32 %v1263_v25, %v1249_v44  ;;  %v1228_v22 = vadd.f32 %v1227_v20, %v1213_v45 }
 0x1be   : > { %v1101_v59 = vpop.f32.mrf.mxu3 }
 0x1bf   : > { %v1229_v55 = vadd.f32 %v1228_v22, %v1214_v49  ;;  %v1265_v32 = vadd.f32 %v1264_v31, %v1250_v36  ;;  %v1215_v19 = vmul.f32 %v1198_v24, %v1101_v59  ;;  %v1468_v2 = vpack.c.bf16 %v1101_v59, %v1099_v15 }
 0x1c1   : > { %v1266_v30 = vadd.f32 %v1265_v32, %v1251_v50  ;;  %v1230_v37 = vadd.f32 %v1229_v55, %v1215_v19  ;;  %v1252_v54 = vmul.f32 %v1215_v19, %v1101_v59  ;;  %1476 = vst [vmem:[%s2655_s17 + $0x38] sm:$0xff] %v1468_v2  }
 0x1c3   : > { %v1231_v28 = vrot.slane %v1230_v37, 4  ;;  %v1267_v61 = vadd.f32 %v1266_v30, %v1252_v54 }
 0x1c5   : > { %v1232_v29 = vadd.f32 %v1231_v28, %v1230_v37  ;;  %v1268_v57 = vrot.slane %v1267_v61, 4 }
 0x1c7   : > { %v1233_v3 = vrot.slane %v1232_v29, 2  ;;  %v1269_v4 = vadd.f32 %v1268_v57, %v1267_v61 }
 0x1c9   : > { %v1234_v9 = vadd.f32 %v1233_v3, %v1232_v29  ;;  %v1270_v11 = vrot.slane %v1269_v4, 2 }
 0x1cb   : > { %v1235_v63 = vrot.slane %v1234_v9, 1  ;;  %v1271_v10 = vadd.f32 %v1270_v11, %v1269_v4 }
 0x1cd   : > { %v1272_v6 = vrot.slane %v1271_v10, 1  ;;  %v1236_v1 = vadd.f32 %v1235_v63, %v1234_v9 }
 0x1cf   : > { %v1273_v27 = vadd.f32 %v1272_v6, %v1271_v10 }
 0x1d1   : > { %v1275_v0 = vsel %vm1274_vm0, %v1236_v1, %v1273_v27 }
 0x1d2   : > { %v1276_v8 = vsel %vm771_vm5, %v1275_v0, 0.0 }
 0x1d3   : > { %1277 = vst [vmem:[%s211_s21] sm:$0xff] %v1276_v8 }
 0x1d4 PF: > { %s15_s15 = sadd.s32 1, %s1829_s15  }
 0x1d5   : > { %p12_p5 = scmp.ge.s32.totalorder %s15_s15, 8  }
 0x1d7   :  { %14 = sbr.rel (!%p12_p5) target bundleno = 1 (0x1), region = 75 }

// kernel: conv_block_forward.6
= control target key start
LH: loop header
LB: loop body
LE: loop exit
PB: predicated region body
PF: predicated region fallthrough
CT: control target
= control target key end

     0   :  { %s1913_s15 = smov 0   ;;  %s2735_s0 = inlined_call_operand.vmem [shape: f32[816,8], index: 0, kind: input, shape index: {}]   ;;  %s2736_s1 = inlined_call_operand.vmem [shape: bf16[80,128], index: 1, kind: input, shape index: {}]   ;;  %s2737_s2 = inlined_call_operand.vmem [shape: f32[768,1], index: 2, kind: input, shape index: {}]   ;;  %s2738_s3 = inlined_call_operand.vmem [shape: bf16[768,128], index: 3, kind: output, shape index: {0}]   ;;  %s2739_s4 = inlined_call_operand.vmem [shape: f32[48,128], index: 4, kind: output, shape index: {1}]  }
   0x1 LB: > { %s1919_s16 = sadd.s32 4294967295, %s1877_s15   ;;  %p1427_p0 = scmp.ge.s32.totalorder %s1877_s15, 1  ;;  %s1877_s15 = sphi %s1913_s15, %s15_s15  }
   0x2   : > { %p166_p1 = scmp.lt.s32.totalorder %s1877_s15, 7 }
   0x4   : > { %p167_p2 = pnand %p1427_p0, %p166_p1 }
   0x5   : > { %s1433_s17 = sshll.u32 (!%p167_p2), %s1919_s16, 7  ;;  %s1879_s21 = smov (!%p167_p2), 8  }
   0x6   : > { %170 = sbr.rel (%p167_p2) target bundleno = 468 (0x1d4), region = 32  ;;  %s1927_s20 = scalar_lea.vmem (!%p167_p2), %s2735_s0, %s1433_s17 }
   0x7   : > { %s1880_s22 = smov (!%p167_p2), 16   ;;  %s1881_s23 = smov (!%p167_p2), 24  }
   0x8   : > { %s1882_s24 = smov (!%p167_p2), 32   ;;  %s1883_s25 = smov (!%p167_p2), 40  }
   0x9   : > { %s1884_s26 = smov (!%p167_p2), 48   ;;  %s1885_s27 = smov (!%p167_p2), 56  }
   0xa   : > { %s1886_s28 = smov (!%p167_p2), 64   ;;  %s1428_s5 = sshll.u32 (!%p167_p2), %s1919_s16, 4 }
   0xb   : > { %v1930_v0 = vld [vmem:[%s1927_s20 + $0x20] sm:$0xff]  ;;  %v1933_v1 = vld [vmem:[%s1927_s20 + $0x28] sm:$0xff]  ;;  %v1936_v2 = vld [vmem:[%s1927_s20 + $0x30] sm:$0xff]  ;;  %vm253_vm0 = vcmask 1046528   ;;  %vm335_vm1 = vcmask 1045504   ;;  %vm471_vm2 = vcmask 1044480  }
   0xc   : > { %v261_v3 = vrot.slane %v1930_v0, 1  ;;  %v263_v4 = vrot.slane %v1933_v1, 1  ;;  %v265_v5 = vrot.slane %v1936_v2, 1  ;;  %v1942_v6 = vld [vmem:[%s1927_s20] sm:$0xff]  ;;  %v1945_v7 = vld [vmem:[%s1927_s20 + $0x8] sm:$0xff]  ;;  %v1948_v8 = vld [vmem:[%s1927_s20 + $0x10] sm:$0xff] }
   0xd   : > { %v254_v9 = vrot.slane %v1942_v6, 1  ;;  %v255_v10 = vrot.slane %v1945_v7, 1  ;;  %v257_v11 = vrot.slane %v1948_v8, 1  ;;  %v1954_v12 = vld [vmem:[%s1927_s20 + $0x38] sm:$0xff]  ;;  %v1957_v13 = vld [vmem:[%s1927_s20 + $0x40] sm:$0xff]  ;;  %v1967_v19 = vld [vmem:[%s1927_s20 + $0x48] sm:$0xff] }
   0xe   : > { %v1960_v14 = vld [vmem:[%s1927_s20 + $0x18] sm:$0xff]  ;;  %v264_v15 = vsel %vm253_vm0, %v261_v3, %v263_v4  ;;  %v266_v16 = vsel %vm253_vm0, %v263_v4, %v265_v5  ;;  %v267_v17 = vrot.slane %v1954_v12, 1  ;;  %v269_v18 = vrot.slane %v1957_v13, 1  ;;  %v1970_v20 = vld [vmem:[%s1927_s20 + $0x50] sm:$0xff]  ;;  %v1977_v27 = vld [vmem:[%s1927_s20 + $0x60] sm:$0xff]  ;;  %p197_p3 = scmp.lt.s32.totalorder %s1428_s5, 95 }
   0xf   : > { %v1558_v21 = vpack.i.bf16 %v266_v16, %v264_v15  ;;  %v256_v22 = vsel %vm253_vm0, %v254_v9, %v255_v10  ;;  %v258_v23 = vsel %vm253_vm0, %v255_v10, %v257_v11  ;;  %v259_v24 = vrot.slane %v1960_v14, 1  ;;  %v1983_v30 = vld [vmem:[%s1927_s20 + $0x58] sm:$0xff]  ;;  %v1991_v35 = vld [vmem:[%s1927_s20 + $0x70] sm:$0xff]  ;;  %v1998_v38 = vld [vmem:[%s1927_s20 + $0x80] sm:$0xff]  ;;  %p208_p4 = scmp.lt.s32.totalorder %s1919_s16, 5 }
  0x10   : > { %v1548_v25 = vpack.i.bf16 %v258_v23, %v256_v22  ;;  %v271_v26 = vrot.slane %v1967_v19, 1  ;;  %v268_v28 = vsel %vm253_vm0, %v265_v5, %v267_v17  ;;  %v273_v29 = vrot.slane %v1970_v20, 1  ;;  %v1995_v37 = vld [vmem:[%s1927_s20 + $0x78] sm:$0xff]  ;;  %v2001_v39 = vld [vmem:[%s1927_s20 + $0x68] sm:$0xff]  ;;  %s2741_s5 = smov (!%p197_p3, %s1428_s5), 95 }
  0x11   : > { %1559 = vrot.lane.b32.xlu1 %v1558_v21, %s1879_s21  ;;  %v270_v31 = vsel %vm253_vm0, %v267_v17, %v269_v18  ;;  %v260_v32 = vsel %vm253_vm0, %v257_v11, %v259_v24  ;;  %v262_v33 = vsel %vm253_vm0, %v259_v24, %v261_v3  ;;  %v277_v40 = vrot.slane %v1977_v27, 1  ;;  %s1429_s12 = sshll.u32 %s2741_s5, 3  ;;  %s2743_s16 = smov (!%p208_p4, %s1919_s16), 5 }
  0x12   : > { %1549 = vrot.lane.b32.xlu0 %v1548_v25, %s1879_s21  ;;  %v272_v34 = vsel %vm253_vm0, %v269_v18, %v271_v26  ;;  %v274_v36 = vsel %vm253_vm0, %v271_v26, %v273_v29  ;;  %v275_v42 = vrot.slane %v1983_v30, 1  ;;  %v1563_v43 = vpack.i.bf16 %v270_v31, %v268_v28  ;;  %s2527_s17 = scalar_lea.vmem %s2737_s2, %s1429_s12 }
  0x13   : > { %v1568_v41 = vpack.i.bf16 %v274_v36, %v272_v34  ;;  %v1553_v44 = vpack.i.bf16 %v262_v33, %v260_v32  ;;  %v281_v45 = vrot.slane %v1991_v35, 1  ;;  %v283_v46 = vrot.slane %v1995_v37, 1 }
  0x14   : > { %v285_v47 = vrot.slane %v1998_v38, 1  ;;  %v279_v48 = vrot.slane %v2001_v39, 1  ;;  %v276_v49 = vsel %vm253_vm0, %v273_v29, %v275_v42  ;;  %v278_v50 = vsel %vm253_vm0, %v275_v42, %v277_v40 }
  0x15   : > { %1569 = vrot.lane.b32.xlu2 %v1568_v41, %s1879_s21  ;;  %v284_v51 = vsel %vm253_vm0, %v281_v45, %v283_v46  ;;  %v1573_v54 = vpack.i.bf16 %v278_v50, %v276_v49  ;;  %v339_v56 = vrot.slane %v1948_v8, 2  ;;  %v336_v57 = vrot.slane %v1942_v6, 2 }
  0x16   : > { %v286_v52 = vsel %vm253_vm0, %v283_v46, %v285_v47  ;;  %v280_v53 = vsel %vm253_vm0, %v277_v40, %v279_v48  ;;  %v282_v55 = vsel %vm253_vm0, %v279_v48, %v281_v45  ;;  %v337_v58 = vrot.slane %v1945_v7, 2 }
  0x17   : > { %v1583_v59 = vpack.i.bf16 %v286_v52, %v284_v51  ;;  %v1578_v60 = vpack.i.bf16 %v282_v55, %v280_v53  ;;  %v343_v61 = vrot.slane %v1930_v0, 2  ;;  %v345_v62 = vrot.slane %v1933_v1, 2  ;;  %v2065_v52 = vld [vmem:[%s1927_s20 + $0x88] sm:$0xff]  ;;  %v2068_v53 = vld [vmem:[%s1927_s20 + $0x90] sm:$0xff] }
  0x18   : > { %v347_v63 = vrot.slane %v1936_v2, 2  ;;  %v341_v3 = vrot.slane %v1960_v14, 2  ;;  %v338_v4 = vsel %vm335_vm1, %v336_v57, %v337_v58  ;;  %v340_v5 = vsel %vm335_vm1, %v337_v58, %v339_v56 }
  0x19   : > { %1564 = vrot.lane.b32.xlu1 %v1563_v43, %s1879_s21  ;;  %v346_v9 = vsel %vm335_vm1, %v343_v61, %v345_v62  ;;  %v1588_v11 = vpack.i.bf16 %v340_v5, %v338_v4  ;;  %v351_v17 = vrot.slane %v1957_v13, 2  ;;  %v349_v18 = vrot.slane %v1954_v12, 2 }
  0x1a   : > { %1554 = vrot.lane.b32.xlu0 %v1553_v44, %s1879_s21  ;;  %v348_v10 = vsel %vm335_vm1, %v345_v62, %v347_v63  ;;  %v342_v15 = vsel %vm335_vm1, %v339_v56, %v341_v3  ;;  %v344_v16 = vsel %vm335_vm1, %v341_v3, %v343_v61  ;;  %v355_v23 = vrot.slane %v1970_v20, 2 }
  0x1b   : > { %v1598_v21 = vpack.i.bf16 %v348_v10, %v346_v9  ;;  %v1593_v22 = vpack.i.bf16 %v344_v16, %v342_v15  ;;  %v357_v24 = vrot.slane %v1983_v30, 2  ;;  %v359_v25 = vrot.slane %v1977_v27, 2 }
  0x1c   : > { %v353_v26 = vrot.slane %v1967_v19, 2  ;;  %v350_v28 = vsel %vm335_vm1, %v347_v63, %v349_v18  ;;  %v352_v29 = vsel %vm335_vm1, %v349_v18, %v351_v17  ;;  %v363_v40 = vrot.slane %v1991_v35, 2 }
  0x1d   : > { %1574 = vrot.lane.b32.xlu2 %v1573_v54, %s1879_s21  ;;  %v358_v31 = vsel %vm335_vm1, %v355_v23, %v357_v24  ;;  %v360_v32 = vsel %vm335_vm1, %v357_v24, %v359_v25  ;;  %v1603_v33 = vpack.i.bf16 %v352_v29, %v350_v28  ;;  %v361_v41 = vrot.slane %v2001_v39, 2 }
  0x1e   : > { %v354_v34 = vsel %vm335_vm1, %v351_v17, %v353_v26  ;;  %v356_v36 = vsel %vm335_vm1, %v353_v26, %v355_v23  ;;  %v1613_v42 = vpack.i.bf16 %v360_v32, %v358_v31  ;;  %v365_v44 = vrot.slane %v1995_v37, 2 }
  0x1f   : > { %v1608_v43 = vpack.i.bf16 %v356_v36, %v354_v34  ;;  %v367_v45 = vrot.slane %v1998_v38, 2  ;;  %v362_v46 = vsel %vm335_vm1, %v359_v25, %v361_v41  ;;  %v364_v47 = vsel %vm335_vm1, %v361_v41, %v363_v40 }
  0x20   : > { %v1618_v48 = vpack.i.bf16 %v364_v47, %v362_v46  ;;  %v366_v49 = vsel %vm335_vm1, %v363_v40, %v365_v44  ;;  %v419_v54 = vrot.slane %v2065_v52, 2  ;;  %v421_v55 = vrot.slane %v2068_v53, 2 }
  0x21   : > { %1584 = vrot.lane.b32.xlu1 %v1583_v59, %s1879_s21  ;;  %v368_v50 = vsel %vm335_vm1, %v365_v44, %v367_v45  ;;  %v475_v56 = vrot.slane %v1930_v0, 3  ;;  %v477_v57 = vrot.slane %v1933_v1, 3  ;;  %v479_v58 = vrot.slane %v1936_v2, 3 }
  0x22   : > { %1579 = vrot.lane.b32.xlu0 %v1578_v60, %s1879_s21  ;;  %v1623_v51 = vpack.i.bf16 %v368_v50, %v366_v49  ;;  %v472_v59 = vrot.slane %v1948_v8, 3  ;;  %v473_v60 = vrot.slane %v1960_v14, 3  ;;  %v420_v61 = vsel %vm335_vm1, %v367_v45, %v419_v54 }
  0x23   : > { %v422_v62 = vsel %vm335_vm1, %v419_v54, %v421_v55  ;;  %v478_v63 = vsel %vm471_vm2, %v475_v56, %v477_v57  ;;  %v480_v3 = vsel %vm471_vm2, %v477_v57, %v479_v58  ;;  %v483_v10 = vrot.slane %v1957_v13, 3 }
  0x24   : > { %v1663_v4 = vpack.i.bf16 %v422_v62, %v420_v61  ;;  %v474_v5 = vsel %vm471_vm2, %v472_v59, %v473_v60  ;;  %v476_v9 = vsel %vm471_vm2, %v473_v60, %v475_v56  ;;  %v1673_v15 = vpack.i.bf16 %v480_v3, %v478_v63 }
  0x25   : > { %1589 = vrot.lane.b32.xlu2 %v1588_v11, %s1880_s22  ;;  %v481_v11 = vrot.slane %v1954_v12, 3  ;;  %v487_v16 = vrot.slane %v1970_v20, 3  ;;  %v489_v17 = vrot.slane %v1983_v30, 3  ;;  %v1668_v18 = vpack.i.bf16 %v476_v9, %v474_v5 }
  0x26   : > { %v495_v32 = vrot.slane %v1991_v35, 3  ;;  %v499_v40 = vrot.slane %v1998_v38, 3  ;;  %v501_v41 = vrot.slane %v2065_v52, 3  ;;  %v554_v54 = vrot.slane %v1948_v8, 4 }
  0x27   : > { %v482_v23 = vsel %vm471_vm2, %v479_v58, %v481_v11  ;;  %v484_v24 = vsel %vm471_vm2, %v481_v11, %v483_v10  ;;  %v490_v25 = vsel %vm471_vm2, %v487_v16, %v489_v17  ;;  %v555_v55 = vrot.slane %v1960_v14, 4 }
  0x28   : > { %v1678_v31 = vpack.i.bf16 %v484_v24, %v482_v23  ;;  %v502_v46 = vsel %vm471_vm2, %v499_v40, %v501_v41  ;;  %vm553_vm3 = vcmask 1043456   ;;  %v561_v58 = vrot.slane %v1936_v2, 4 }
  0x29   : > { %1599 = vrot.lane.b32.xlu1 %v1598_v21, %s1880_s22  ;;  %v563_v59 = vrot.slane %v1954_v12, 4  ;;  %v565_v60 = vrot.slane %v1957_v13, 4  ;;  %v559_v61 = vrot.slane %v1933_v1, 4  ;;  %v556_v62 = vsel %vm553_vm3, %v554_v54, %v555_v55 }
  0x2a   : > { %1594 = vrot.lane.b32.xlu0 %v1593_v22, %s1880_s22  ;;  %v569_v11 = vrot.slane %v1970_v20, 4  ;;  %v571_v23 = vrot.slane %v1983_v30, 4  ;;  %vm689_vm4 = vcmask 1042432   ;;  %vm771_vm5 = vcmask 1041408  }
  0x2b   : > { %v564_v3 = vsel %vm553_vm3, %v561_v58, %v563_v59  ;;  %vm853_vm6 = vcmask 64512   ;;  %vm870_vm7 = vcmask 130048   ;;  %vm887_vm8 = vcmask 195584  }
  0x2c   : > { %vm904_vm9 = vcmask 261120   ;;  %vm921_vm10 = vcmask 326656   ;;  %vm938_vm11 = vcmask 392192   ;;  %vm955_vm12 = vcmask 457728  }
  0x2d   : > { %1604 = vrot.lane.b32.xlu2 %v1603_v33, %s1880_s22  ;;  %vm972_vm13 = vcmask 523264   ;;  %vm989_vm14 = vcmask 588800   ;;  %vm1054_vm15 = vcmask 654336   ;;  %vm1298_vm0 = vcmask 1040384  }
  0x31   : > { %1614 = vrot.lane.b32.xlu1 %v1613_v42, %s1880_s22 }
  0x32   : > { %1609 = vrot.lane.b32.xlu0 %v1608_v43, %s1880_s22 }
  0x35   : > { %1619 = vrot.lane.b32.xlu2 %v1618_v48, %s1880_s22 }
  0x39   : > { %1629 = vrot.lane.b32.xlu1 %v1593_v22, %s1881_s23  ;;  %v485_v22 = vrot.slane %v1967_v19, 3 }
  0x3a   : > { %1624 = vrot.lane.b32.xlu0 %v1623_v51, %s1880_s22 }
  0x3b   : > { %v486_v28 = vsel %vm471_vm2, %v483_v10, %v485_v22  ;;  %v488_v29 = vsel %vm471_vm2, %v485_v22, %v487_v16  ;;  %v562_v10 = vsel %vm553_vm3, %v559_v61, %v561_v58  ;;  %v577_v22 = vrot.slane %v1991_v35, 4 }
  0x3c   : > { %v1683_v36 = vpack.i.bf16 %v488_v29, %v486_v28 }
  0x3d   : > { %1634 = vrot.lane.b32.xlu2 %v1598_v21, %s1881_s23  ;;  %v491_v21 = vrot.slane %v1977_v27, 3 }
  0x3f   : > { %v492_v26 = vsel %vm471_vm2, %v489_v17, %v491_v21 }
  0x40   : > { %v1688_v34 = vpack.i.bf16 %v492_v26, %v490_v25 }
  0x41   : > { %1644 = vrot.lane.b32.xlu1 %v1608_v43, %s1881_s23  ;;  %v497_v43 = vrot.slane %v1995_v37, 3 }
  0x42   : > { %1639 = vrot.lane.b32.xlu0 %v1603_v33, %s1881_s23  ;;  %v493_v33 = vrot.slane %v2001_v39, 3 }
  0x43   : > { %v500_v50 = vsel %vm471_vm2, %v497_v43, %v499_v40 }
  0x44   : > { %v494_v44 = vsel %vm471_vm2, %v491_v21, %v493_v33  ;;  %v496_v45 = vsel %vm471_vm2, %v493_v33, %v495_v32  ;;  %v575_v21 = vrot.slane %v2001_v39, 4  ;;  %v581_v33 = vrot.slane %v1998_v38, 4 }
  0x45   : > { %1649 = vrot.lane.b32.xlu2 %v1613_v42, %s1881_s23  ;;  %v503_v42 = vrot.slane %v2068_v53, 3  ;;  %v1693_v49 = vpack.i.bf16 %v496_v45, %v494_v44 }
  0x46   : > { %v578_v28 = vsel %vm553_vm3, %v575_v21, %v577_v22 }
  0x47   : > { %v504_v47 = vsel %vm471_vm2, %v501_v41, %v503_v42  ;;  %v583_v41 = vrot.slane %v2065_v52, 4  ;;  %v585_v42 = vrot.slane %v2068_v53, 4 }
  0x48   : > { %v1703_v56 = vpack.i.bf16 %v504_v47, %v502_v46 }
  0x49   : > { %1659 = vrot.lane.b32.xlu1 %v1623_v51, %s1881_s23  ;;  %v557_v51 = vrot.slane %v1930_v0, 4  ;;  %v584_v46 = vsel %vm553_vm3, %v581_v33, %v583_v41 }
  0x4a   : > { %1654 = vrot.lane.b32.xlu0 %v1618_v48, %s1881_s23  ;;  %v498_v48 = vsel %vm471_vm2, %v495_v32, %v497_v43 }
  0x4b   : > { %v1698_v57 = vpack.i.bf16 %v500_v50, %v498_v48  ;;  %v558_v63 = vsel %vm553_vm3, %v555_v55, %v557_v51  ;;  %v560_v9 = vsel %vm553_vm3, %v557_v51, %v559_v61  ;;  %v586_v48 = vsel %vm553_vm3, %v583_v41, %v585_v42 }
  0x4c   : > { %v1708_v5 = vpack.i.bf16 %v558_v63, %v556_v62  ;;  %v1713_v17 = vpack.i.bf16 %v562_v10, %v560_v9  ;;  %v691_v50 = vrot.slane %v1933_v1, 5  ;;  %v693_v51 = vrot.slane %v1936_v2, 5 }
  0x4d   : > { %1664 = vrot.lane.b32.xlu2 %v1663_v4, %s1881_s23  ;;  %v566_v4 = vsel %vm553_vm3, %v563_v59, %v565_v60  ;;  %v2178_v54 = vpack.i.bf16 %v586_v48, %v584_v46  ;;  %v772_v55 = vrot.slane %v1930_v0, 6  ;;  %v779_v10 = vrot.slane %v1957_v13, 6 }
  0x4e   : > { %v2136_v16 = vpack.i.bf16 %v566_v4, %v564_v3  ;;  %v694_v59 = vsel %vm689_vm4, %v691_v50, %v693_v51  ;;  %v697_v3 = vrot.slane %v1957_v13, 5  ;;  %v699_v4 = vrot.slane %v1967_v19, 5 }
  0x4f   : > { %v789_v46 = vrot.slane %v2001_v39, 6  ;;  %v791_v48 = vrot.slane %v1991_v35, 6 }
  0x51   : > { %1674 = vrot.lane.b32.xlu1 %v1673_v15, %s1882_s24  ;;  %v567_v15 = vrot.slane %v1967_v19, 4 }
  0x52   : > { %1669 = vrot.lane.b32.xlu0 %v1668_v18, %s1882_s24  ;;  %v573_v18 = vrot.slane %v1977_v27, 4 }
  0x53   : > { %v568_v24 = vsel %vm553_vm3, %v565_v60, %v567_v15  ;;  %v570_v25 = vsel %vm553_vm3, %v567_v15, %v569_v11  ;;  %v783_v15 = vrot.slane %v1970_v20, 6 }
  0x54   : > { %v576_v26 = vsel %vm553_vm3, %v573_v18, %v575_v21  ;;  %v1723_v29 = vpack.i.bf16 %v570_v25, %v568_v24  ;;  %v574_v32 = vsel %vm553_vm3, %v571_v23, %v573_v18 }
  0x55   : > { %1679 = vrot.lane.b32.xlu2 %v1678_v31, %s1882_s24  ;;  %v572_v31 = vsel %vm553_vm3, %v569_v11, %v571_v23  ;;  %v781_v11 = vrot.slane %v1967_v19, 6 }
  0x56   : > { %v2156_v40 = vpack.i.bf16 %v574_v32, %v572_v31 }
  0x57   : > { %v784_v23 = vsel %vm771_vm5, %v781_v11, %v783_v15 }
  0x59   : > { %1689 = vrot.lane.b32.xlu1 %v1688_v34, %s1882_s24  ;;  %v579_v34 = vrot.slane %v1995_v37, 4 }
  0x5a   : > { %1684 = vrot.lane.b32.xlu0 %v1683_v36, %s1882_s24  ;;  %v2154_v36 = vpack.i.bf16 %v578_v28, %v576_v26  ;;  %v705_v26 = vrot.slane %v1977_v27, 5  ;;  %v707_v28 = vrot.slane %v2001_v39, 5 }
  0x5b   : > { %v580_v43 = vsel %vm553_vm3, %v577_v22, %v579_v34  ;;  %v582_v44 = vsel %vm553_vm3, %v579_v34, %v581_v33  ;;  %v782_v22 = vsel %vm771_vm5, %v779_v10, %v781_v11  ;;  %v695_v11 = vrot.slane %v1954_v12, 5 }
  0x5c   : > { %v2170_v47 = vpack.i.bf16 %v582_v44, %v580_v43  ;;  %v1778_v43 = vpack.i.bf16 %v784_v23, %v782_v22  ;;  %v787_v44 = vrot.slane %v1977_v27, 6 }
  0x5d   : > { %1694 = vrot.lane.b32.xlu2 %v1693_v49, %s1882_s24  ;;  %v690_v49 = vrot.slane %v1930_v0, 5 }
  0x5f   : > { %v692_v58 = vsel %vm689_vm4, %v690_v49, %v691_v50 }
  0x60   : > { %v1753_v62 = vpack.i.bf16 %v694_v59, %v692_v58 }
  0x61   : > { %1704 = vrot.lane.b32.xlu1 %v1703_v56, %s1882_s24  ;;  %v773_v56 = vrot.slane %v1933_v1, 6 }
  0x62   : > { %1699 = vrot.lane.b32.xlu0 %v1698_v57, %s1882_s24  ;;  %v775_v57 = vrot.slane %v1936_v2, 6  ;;  %s1432_s24 = sshll.u32 %s2743_s16, 3 }
  0x63   : > { %v774_v61 = vsel %vm771_vm5, %v772_v55, %v773_v56  ;;  %v708_v55 = vsel %vm689_vm4, %v705_v26, %v707_v28 }
  0x64   : > { %v776_v63 = vsel %vm771_vm5, %v773_v56, %v775_v57 }
  0x65   : > { %1709 = vrot.lane.b32.xlu2 %v1708_v5, %s1883_s25  ;;  %v701_v5 = vrot.slane %v1970_v20, 5  ;;  %v1758_v9 = vpack.i.bf16 %v776_v63, %v774_v61 }
  0x67   : > { %v702_v18 = vsel %vm689_vm4, %v699_v4, %v701_v5 }
  0x69   : > { %1719 = vrot.lane.b32.xlu1 %v2136_v16, %s1883_s25 }
  0x6a   : > { %1714 = vrot.lane.b32.xlu0 %v1713_v17, %s1883_s25 }
  0x6d   : > { %1724 = vrot.lane.b32.xlu2 %v1723_v29, %s1883_s25 }
  0x6f   : > { %v2163_v45 = vpop.permute.xlu2 %1569 }
  0x71   : > { %1734 = vrot.lane.b32.xlu1 %v2154_v36, %s1883_s25 }
  0x72   : > { %1729 = vrot.lane.b32.xlu0 %v2156_v40, %s1883_s25 }
  0x75   : > { %1739 = vrot.lane.b32.xlu2 %v2170_v47, %s1883_s25 }
  0x77   : > { %v2189_v60 = vpop.permute.xlu2 %1574 }
  0x79   : > { %1749 = vrot.lane.b32.xlu1 %v1713_v17, %s1884_s26  ;;  %v700_v17 = vsel %vm689_vm4, %v697_v3, %v699_v4 }
  0x7a   : > { %1744 = vrot.lane.b32.xlu0 %v2178_v54, %s1883_s25  ;;  %v1768_v24 = vpack.i.bf16 %v702_v18, %v700_v17 }
  0x7d   : > { %1754 = vrot.lane.b32.xlu2 %v1753_v62, %s1885_s27 }
  0x7f   : > { %v1590_v21 = vpop.permute.xlu2 %1589 }
  0x80   : > { %v1592_v32 = vunpack.i.h.bf16 %v1590_v21  ;;  %v1591_v33 = vunpack.i.l.bf16 %v1590_v21 }
  0x81   : > { %1764 = vrot.lane.b32.xlu1 %v1723_v29, %s1884_s26  ;;  %v709_v29 = vrot.slane %v1991_v35, 5 }
  0x82   : > { %1759 = vrot.lane.b32.xlu0 %v1758_v9, %s1886_s28  ;;  %v792_v9 = vsel %vm771_vm5, %v789_v46, %v791_v48 }
  0x83   : > { %v2217_v25 = vpop.permute.xlu1 %1559  ;;  %v710_v56 = vsel %vm689_vm4, %v707_v28, %v709_v29 }
  0x84   : > { %v1550_v31 = vpop.permute.xlu0 %1549 }
  0x85   : > { %v1552_v34 = vunpack.i.h.bf16 %v1550_v31  ;;  %v1551_v41 = vunpack.i.l.bf16 %v1550_v31  ;;  %1769 = vrot.lane.b32.xlu2 %v1768_v24, %s1885_s27  ;;  %v777_v24 = vrot.slane %v1954_v12, 6 }
  0x87   : > { %v855_v49 = vsel %vm853_vm6, %v1945_v7, %v1552_v34  ;;  %v854_v50 = vsel %vm853_vm6, %v1942_v6, %v1551_v41  ;;  %v1605_v61 = vpop.permute.xlu2 %1604  ;;  %v790_v6 = vsel %vm771_vm5, %v787_v44, %v789_v46  ;;  %v1783_v7 = vpack.i.bf16 %v710_v56, %v708_v55 }
  0x88   : > { %v2237_v58 = vsel %vm870_vm7, %v854_v50, %v1591_v33  ;;  %v2240_v59 = vsel %vm870_vm7, %v855_v49, %v1592_v32  ;;  %v1607_v63 = vunpack.i.h.bf16 %v1605_v61  ;;  %v1606_v4 = vunpack.i.l.bf16 %v1605_v61 }
  0x89   : > { %1779 = vrot.lane.b32.xlu1 %v1778_v43, %s1886_s28  ;;  %v1788_v23 = vpack.i.bf16 %v792_v9, %v790_v6  ;;  %v696_v32 = vsel %vm689_vm4, %v693_v51, %v695_v11  ;;  %v698_v33 = vsel %vm689_vm4, %v695_v11, %v697_v3  ;;  %v780_v41 = vsel %vm771_vm5, %v777_v24, %v779_v10 }
  0x8a   : > { %1774 = vrot.lane.b32.xlu0 %v2154_v36, %s1884_s26  ;;  %v1798_v43 = vpack.i.bf16 %v698_v33, %v696_v32  ;;  %v795_v51 = vrot.slane %v1998_v38, 6  ;;  %v713_v3 = vrot.slane %v1998_v38, 5  ;;  %v715_v49 = vrot.slane %v2065_v52, 5 }
  0x8b   : > { %v1565_v62 = vpop.permute.xlu1 %1564  ;;  %v799_v56 = vrot.slane %v2068_v53, 6 }
  0x8c   : > { %v1567_v17 = vunpack.i.h.bf16 %v1565_v62  ;;  %v1566_v18 = vunpack.i.l.bf16 %v1565_v62  ;;  %v2252_v21 = vpop.permute.xlu0 %1554  ;;  %v1571_v62 = vunpack.i.l.bf16 %v2163_v45 }
  0x8d   : > { %1784 = vrot.lane.b32.xlu2 %v1783_v7, %s1885_s27  ;;  %v1572_v7 = vunpack.i.h.bf16 %v2163_v45  ;;  %v1557_v32 = vunpack.i.h.bf16 %v2252_v21  ;;  %v1556_v33 = vunpack.i.l.bf16 %v2252_v21 }
  0x8e   : > { %v861_v36 = vsel %vm853_vm6, %v1954_v12, %v1567_v17  ;;  %v860_v22 = vsel %vm853_vm6, %v1936_v2, %v1566_v18  ;;  %v778_v12 = vsel %vm771_vm5, %v775_v57, %v777_v24  ;;  %v797_v57 = vrot.slane %v2065_v52, 6 }
  0x8f   : > { %v2261_v28 = vsel %vm870_vm7, %v861_v36, %v1607_v63  ;;  %v2264_v31 = vsel %vm870_vm7, %v860_v22, %v1606_v4  ;;  %v1620_v34 = vpop.permute.xlu2 %1619  ;;  %v1808_v6 = vpack.i.bf16 %v780_v41, %v778_v12  ;;  %v716_v52 = vsel %vm689_vm4, %v713_v3, %v715_v49 }
  0x90   : > { %v1622_v55 = vunpack.i.h.bf16 %v1620_v34  ;;  %v1621_v2 = vunpack.i.l.bf16 %v1620_v34  ;;  %v800_v18 = vsel %vm771_vm5, %v797_v57, %v799_v56  ;;  %v1577_v36 = vunpack.i.h.bf16 %v2189_v60 }
  0x91   : > { %1794 = vrot.lane.b32.xlu1 %v2136_v16, %s1884_s26  ;;  %v717_v16 = vrot.slane %v2068_v53, 5  ;;  %v1576_v22 = vunpack.i.l.bf16 %v2189_v60  ;;  %v1561_v24 = vunpack.i.l.bf16 %v2217_v25  ;;  %v703_v60 = vrot.slane %v1983_v30, 5 }
  0x92   : > { %1789 = vrot.lane.b32.xlu0 %v1788_v23, %s1886_s28  ;;  %v1562_v23 = vunpack.i.h.bf16 %v2217_v25 }
  0x93   : > { %v2279_v46 = vpop.permute.xlu1 %1584  ;;  %v718_v9 = vsel %vm689_vm4, %v715_v49, %v717_v16 }
  0x94   : > { %v1580_v50 = vpop.permute.xlu0 %1579  ;;  %v1813_v34 = vpack.i.bf16 %v718_v9, %v716_v52  ;;  %v859_v21 = vsel %vm853_vm6, %v1933_v1, %v1562_v23  ;;  %v2341_v52 = vld [vmem:[%s1927_s20 + $0x98] sm:$0xff]  ;;  %v2344_v9 = vld [vmem:[%s1927_s20 + $0xa0] sm:$0xff]  ;;  %v863_v23 = vsel %vm853_vm6, %v1967_v19, %v1572_v7  ;;  %s1431_s20 = sshll.u32 %s2741_s5, 2 }
  0x95   : > { %v1582_v61 = vunpack.i.h.bf16 %v1580_v50  ;;  %v1581_v10 = vunpack.i.l.bf16 %v1580_v50  ;;  %1799 = vrot.lane.b32.xlu2 %v1798_v43, %s1885_s27  ;;  %v785_v43 = vrot.slane %v1983_v30, 6  ;;  %v639_v19 = vrot.slane %v2344_v9, 4  ;;  %s2716_s23 = scalar_lea.vmem %s2738_s3, %s1431_s20 }
  0x97   : > { %v867_v63 = vsel %vm853_vm6, %v2001_v39, %v1582_v61  ;;  %v866_v4 = vsel %vm853_vm6, %v1977_v27, %v1581_v10  ;;  %v1635_v17 = vpop.permute.xlu2 %1634  ;;  %v798_v39 = vsel %vm771_vm5, %v795_v51, %v797_v57  ;;  %v857_v10 = vsel %vm853_vm6, %v1960_v14, %v1557_v32 }
  0x98   : > { %v2301_v11 = vsel %vm870_vm7, %v866_v4, %v1621_v2  ;;  %v2304_v45 = vsel %vm870_vm7, %v867_v63, %v1622_v55  ;;  %v1818_v41 = vpack.i.bf16 %v800_v18, %v798_v39  ;;  %v1637_v55 = vunpack.i.h.bf16 %v1635_v17 }
  0x99   : > { %1809 = vrot.lane.b32.xlu1 %v1808_v6, %s1886_s28  ;;  %v1636_v2 = vunpack.i.l.bf16 %v1635_v17  ;;  %v856_v6 = vsel %vm853_vm6, %v1948_v8, %v1556_v33  ;;  %v704_v8 = vsel %vm689_vm4, %v701_v5, %v703_v60  ;;  %v706_v14 = vsel %vm689_vm4, %v703_v60, %v705_v26 }
  0x9a   : > { %1804 = vrot.lane.b32.xlu0 %v2178_v54, %s1884_s26  ;;  %v858_v54 = vsel %vm853_vm6, %v1930_v0, %v1561_v24  ;;  %v862_v24 = vsel %vm853_vm6, %v1957_v13, %v1571_v62  ;;  %v786_v5 = vsel %vm771_vm5, %v783_v15, %v785_v43  ;;  %v788_v26 = vsel %vm771_vm5, %v785_v43, %v787_v44 }
  0x9b   : > { %v1600_v12 = vpop.permute.xlu1 %1599  ;;  %v637_v32 = vrot.slane %v2341_v52, 4  ;;  %v1828_v7 = vpack.i.bf16 %v706_v14, %v704_v8  ;;  %v865_v13 = vsel %vm853_vm6, %v1983_v30, %v1577_v36  ;;  %v793_v15 = vrot.slane %v1995_v37, 6 }
  0x9c   : > { %v1602_v49 = vunpack.i.h.bf16 %v1600_v12  ;;  %v1601_v25 = vunpack.i.l.bf16 %v1600_v12  ;;  %v1595_v50 = vpop.permute.xlu0 %1594  ;;  %v711_v33 = vrot.slane %v1995_v37, 5  ;;  %v719_v8 = vrot.slane %v2341_v52, 5 }
  0x9d   : > { %v1597_v57 = vunpack.i.h.bf16 %v1595_v50  ;;  %v1596_v61 = vunpack.i.l.bf16 %v1595_v50  ;;  %1814 = vrot.lane.b32.xlu2 %v1813_v34, %s1885_s27  ;;  %v640_v36 = vsel %vm553_vm3, %v637_v32, %v639_v19 }
  0x9e   : > { %v2332_v63 = vsel %vm870_vm7, %v858_v54, %v1601_v25  ;;  %v2335_v4 = vsel %vm870_vm7, %v859_v21, %v1602_v49  ;;  %v1838_v49 = vpack.i.bf16 %v788_v26, %v786_v5 }
  0x9f   : > { %v873_v1 = vsel %vm870_vm7, %v856_v6, %v1596_v61  ;;  %v874_v0 = vsel %vm870_vm7, %v857_v10, %v1597_v57  ;;  %v1650_v18 = vpop.permute.xlu2 %1649  ;;  %v794_v57 = vsel %vm771_vm5, %v791_v48, %v793_v15  ;;  %v796_v61 = vsel %vm771_vm5, %v793_v15, %v795_v51 }
  0xa0   : > { %v2353_v17 = vsel %vm887_vm8, %v873_v1, %v1636_v2  ;;  %v2356_v39 = vsel %vm887_vm8, %v874_v0, %v1637_v55  ;;  %v1652_v44 = vunpack.i.h.bf16 %v1650_v18  ;;  %v712_v55 = vsel %vm689_vm4, %v709_v29, %v711_v33 }
  0xa1   : > { %1824 = vrot.lane.b32.xlu1 %v2156_v40, %s1884_s26  ;;  %v864_v40 = vsel %vm853_vm6, %v1970_v20, %v1576_v22  ;;  %v638_v20 = vsel %vm553_vm3, %v585_v42, %v637_v32  ;;  %v714_v2 = vsel %vm689_vm4, %v711_v33, %v713_v3  ;;  %v1587_v29 = vunpack.i.h.bf16 %v2279_v46 }
  0xa2   : > { %1819 = vrot.lane.b32.xlu0 %v1818_v41, %s1886_s28  ;;  %v1651_v41 = vunpack.i.l.bf16 %v1650_v18  ;;  %v1586_v3 = vunpack.i.l.bf16 %v2279_v46  ;;  %v1843_v10 = vpack.i.bf16 %v714_v2, %v712_v55  ;;  %v1853_v1 = vpack.i.bf16 %v640_v36, %v638_v20 }
  0xa3   : > { %v1615_v62 = vpop.permute.xlu1 %1614  ;;  %v1848_v0 = vpack.i.bf16 %v796_v61, %v794_v57  ;;  %v721_v48 = vrot.slane %v2344_v9, 5 }
  0xa4   : > { %v1617_v34 = vunpack.i.h.bf16 %v1615_v62  ;;  %v1616_v27 = vunpack.i.l.bf16 %v1615_v62  ;;  %v1610_v12 = vpop.permute.xlu0 %1609  ;;  %v868_v26 = vsel %vm853_vm6, %v1991_v35, %v1586_v3  ;;  %v720_v35 = vsel %vm689_vm4, %v717_v16, %v719_v8 }
  0xa5   : > { %v1612_v43 = vunpack.i.h.bf16 %v1610_v12  ;;  %v1611_v60 = vunpack.i.l.bf16 %v1610_v12  ;;  %1829 = vrot.lane.b32.xlu2 %v1828_v7, %s1885_s27  ;;  %v803_v7 = vrot.slane %v2344_v9, 6 }
  0xa6   : > { %v2380_v25 = vsel %vm870_vm7, %v865_v13, %v1617_v34  ;;  %v2383_v30 = vsel %vm870_vm7, %v864_v40, %v1616_v27 }
  0xa7   : > { %v880_v22 = vsel %vm870_vm7, %v863_v23, %v1612_v43  ;;  %v879_v50 = vsel %vm870_vm7, %v862_v24, %v1611_v60  ;;  %v1665_v54 = vpop.permute.xlu2 %1664  ;;  %v869_v24 = vsel %vm853_vm6, %v1995_v37, %v1587_v29 }
  0xa8   : > { %v2399_v21 = vsel %vm887_vm8, %v879_v50, %v1651_v41  ;;  %v2402_v42 = vsel %vm887_vm8, %v880_v22, %v1652_v44  ;;  %v1667_v18 = vunpack.i.h.bf16 %v1665_v54  ;;  %v1666_v23 = vunpack.i.l.bf16 %v1665_v54 }
  0xa9   : > { %1839 = vrot.lane.b32.xlu1 %v1838_v49, %s1886_s28 }
  0xaa   : > { %1834 = vrot.lane.b32.xlu0 %v2170_v47, %s1884_s26  ;;  %v801_v47 = vrot.slane %v2341_v52, 6  ;;  %v722_v52 = vsel %vm689_vm4, %v719_v8, %v721_v48 }
  0xab   : > { %v1630_v6 = vpop.permute.xlu1 %1629  ;;  %v1858_v9 = vpack.i.bf16 %v722_v52, %v720_v35  ;;  %v1887_v35 = vmov 0  }
  0xac   : > { %v1632_v38 = vunpack.i.h.bf16 %v1630_v6  ;;  %v1631_v14 = vunpack.i.l.bf16 %v1630_v6  ;;  %v1625_v51 = vpop.permute.xlu0 %1624  ;;  %v802_v16 = vsel %vm771_vm5, %v799_v56, %v801_v47  ;;  %v804_v15 = vsel %vm771_vm5, %v801_v47, %v803_v7  ;;  %1868 = vset.pattern.permute.xlu1 %v1887_v35  ;;  %1869 = vset.pattern.permute.xlu2 %v1887_v35 }
  0xad   : > { %v1627_v46 = vunpack.i.h.bf16 %v1625_v51  ;;  %v1626_v5 = vunpack.i.l.bf16 %v1625_v51  ;;  %1844 = vrot.lane.b32.xlu2 %v1843_v10, %s1885_s27  ;;  %v1863_v60 = vpack.i.bf16 %v804_v15, %v802_v16  ;;  %1870 = vset.pattern.permute.xlu0 %v1887_v35 }
  0xae   : > { %v2424_v32 = vsel %vm887_vm8, %v2237_v58, %v1631_v14  ;;  %v2428_v19 = vsel %vm887_vm8, %v2240_v59, %v1632_v38  ;;  %v1466_v38 = vld [vmem:[%s2736_s1 + $0x10] sm:$0xff] }
  0xaf   : > { %v886_v37 = vsel %vm870_vm7, %v869_v24, %v1627_v46  ;;  %v885_v13 = vsel %vm870_vm7, %v868_v26, %v1626_v5  ;;  %v2444_v40 = vpop.permute.xlu2 %1679 }
  0xb0   : > { %v2439_v58 = vsel %vm887_vm8, %v885_v13, %v1666_v23  ;;  %v2442_v59 = vsel %vm887_vm8, %v886_v37, %v1667_v18  ;;  %v1465_v23 = vld [vmem:[%s2736_s1 + $0x8] sm:$0xff]  ;;  %v1464_v37 = vld [vmem:[%s2736_s1] sm:$0xff] }
  0xb1   : > { %1854 = vrot.lane.b32.xlu1 %v1853_v1, %s1884_s26  ;;  %v1128_v13 = vld [vmem:[%s2527_s17] sm:$0xff] }
  0xb2   : > { %1849 = vrot.lane.b32.xlu0 %v1848_v0, %s1886_s28  ;;  %v1467_v0 = vld [vmem:[%s2736_s1 + $0x18] sm:$0xff] }
  0xb3   : > { %v1645_v62 = vpop.permute.xlu1 %1644 }
  0xb4   : > { %v1647_v33 = vunpack.i.h.bf16 %v1645_v62  ;;  %v1646_v34 = vunpack.i.l.bf16 %v1645_v62  ;;  %v1640_v27 = vpop.permute.xlu0 %1639 }
  0xb5   : > { %v1642_v12 = vunpack.i.h.bf16 %v1640_v27  ;;  %v1641_v44 = vunpack.i.l.bf16 %v1640_v27  ;;  %1859 = vrot.lane.b32.xlu2 %v1858_v9, %s1885_s27  ;;  %v1131_v9 = vld [vmem:[%s2527_s17 + $0x18] sm:$0xff]  ;;  %s211_s27 = scalar_lea.vmem %s2739_s4, %s1432_s24 }
  0xb6   : > { %v894_v41 = vsel %vm887_vm8, %v2264_v31, %v1646_v34  ;;  %v895_v43 = vsel %vm887_vm8, %v2261_v28, %v1647_v33  ;;  %v1133_v33 = vld [vmem:[%s2527_s17 + $0x28] sm:$0xff] }
  0xb7   : > { %v2459_v53 = vsel %vm887_vm8, %v2335_v4, %v1642_v12  ;;  %v2463_v56 = vsel %vm887_vm8, %v2332_v63, %v1641_v44  ;;  %v1695_v49 = vpop.permute.xlu2 %1694 }
  0xb8   : > { %v1697_v50 = vunpack.i.h.bf16 %v1695_v49  ;;  %v1696_v28 = vunpack.i.l.bf16 %v1695_v49 }
  0xb9   : > { %1146 = vperm.xlu1 %1868, %v1128_v13   ;;  %v1139_v13 = vld [vmem:[%s2527_s17 + $0x58] sm:$0xff] }
  0xba   : > { %1864 = vrot.lane.b32.xlu0 %v1863_v60, %s1886_s28 }
  0xbb   : > { %v1660_v20 = vpop.permute.xlu1 %1659 }
  0xbc   : > { %v1662_v36 = vunpack.i.h.bf16 %v1660_v20  ;;  %v1661_v31 = vunpack.i.l.bf16 %v1660_v20  ;;  %v1655_v22 = vpop.permute.xlu0 %1654 }
  0xbd   : > { %v1657_v55 = vunpack.i.h.bf16 %v1655_v22  ;;  %v1656_v2 = vunpack.i.l.bf16 %v1655_v22  ;;  %v1136_v22 = vld [vmem:[%s2527_s17 + $0x40] sm:$0xff] }
  0xbe   : > { %v2468_v4 = vsel %vm887_vm8, %v2301_v11, %v1661_v31  ;;  %v2472_v63 = vsel %vm887_vm8, %v2304_v45, %v1662_v36 }
  0xbf   : > { %v899_v54 = vsel %vm887_vm8, %v2380_v25, %v1657_v55  ;;  %v898_v57 = vsel %vm887_vm8, %v2383_v30, %v1656_v2  ;;  %v2486_v45 = vpop.permute.xlu2 %1709  ;;  %v1468_v30 = vld [vmem:[%s2736_s1 + $0x20] sm:$0xff] }
  0xc0   : > { %v2479_v61 = vsel %vm904_vm9, %v898_v57, %v1696_v28  ;;  %v2482_v29 = vsel %vm904_vm9, %v899_v54, %v1697_v50  ;;  %1082 = vmatpush.bf16.msra.mxu0 %v1468_v30  ;;  %1516 = vmatpush.bf16.msra.mxu1 %v1468_v30  ;;  %v1711_v60 = vunpack.i.l.bf16 %v2486_v45  ;;  %v1682_v50 = vunpack.i.h.bf16 %v2444_v40 }
  0xc1   : > { %1517 = vmatpush.bf16.msra.mxu2 %v1468_v30  ;;  %1518 = vmatpush.bf16.msra.mxu3 %v1468_v30  ;;  %v1681_v57 = vunpack.i.l.bf16 %v2444_v40 }
  0xc2   : > { %1161 = vperm.xlu1 %1868, %v1131_v9  }
  0xc3   : > { %v1675_v3 = vpop.permute.xlu1 %1674 }
  0xc4   : > { %v1677_v11 = vunpack.i.h.bf16 %v1675_v3  ;;  %v1676_v10 = vunpack.i.l.bf16 %v1675_v3  ;;  %v2484_v6 = vpop.permute.xlu0 %1669  ;;  %1083 = vmatpush.bf16.msra.mxu0 %v1467_v0  ;;  %1519 = vmatpush.bf16.msra.mxu1 %v1467_v0 }
  0xc5   : > { %1520 = vmatpush.bf16.msra.mxu2 %v1467_v0  ;;  %1521 = vmatpush.bf16.msra.mxu3 %v1467_v0  ;;  %v1672_v34 = vunpack.i.h.bf16 %v2484_v6  ;;  %v1671_v27 = vunpack.i.l.bf16 %v2484_v6 }
  0xc6   : > { %v2490_v1 = vsel %vm904_vm9, %v2353_v17, %v1676_v10  ;;  %v2494_v25 = vsel %vm904_vm9, %v2356_v39, %v1677_v11  ;;  %v1129_v11 = vld [vmem:[%s2527_s17 + $0x8] sm:$0xff] }
  0xc7   : > { %v2516_v18 = vpop.permute.xlu2 %1724  ;;  %v905_v49 = vsel %vm904_vm9, %v2424_v32, %v1671_v27  ;;  %v906_v20 = vsel %vm904_vm9, %v2428_v19, %v1672_v34  ;;  %1151 = vperm.xlu2 %1869, %v1129_v11  }
  0xc8   : > { %1084 = vmatpush.bf16.msra.mxu0 %v1466_v38  ;;  %1522 = vmatpush.bf16.msra.mxu1 %v1466_v38  ;;  %v922_v28 = vsel %vm921_vm10, %v905_v49, %v1711_v60 }
  0xc9   : > { %1523 = vmatpush.bf16.msra.mxu2 %v1466_v38  ;;  %1524 = vmatpush.bf16.msra.mxu3 %v1466_v38 }
  0xca   : > { %1171 = vperm.xlu1 %1868, %v1133_v33  }
  0xcb   : > { %v2503_v17 = vpop.permute.xlu1 %1689 }
  0xcc   : > { %v1685_v8 = vpop.permute.xlu0 %1684  ;;  %1085 = vmatpush.bf16.msra.mxu0 %v1465_v23  ;;  %1525 = vmatpush.bf16.msra.mxu1 %v1465_v23 }
  0xcd   : > { %v1687_v39 = vunpack.i.h.bf16 %v1685_v8  ;;  %v1686_v48 = vunpack.i.l.bf16 %v1685_v8  ;;  %1526 = vmatpush.bf16.msra.mxu2 %v1465_v23  ;;  %1527 = vmatpush.bf16.msra.mxu3 %v1465_v23  ;;  %v909_v23 = vsel %vm904_vm9, %v2463_v56, %v1681_v57 }
  0xcf   : > { %v2511_v14 = vsel %vm904_vm9, %v895_v43, %v1687_v39  ;;  %v2514_v51 = vsel %vm904_vm9, %v894_v41, %v1686_v48  ;;  %v2541_v52 = vpop.permute.xlu2 %1739  ;;  %v1712_v43 = vunpack.i.h.bf16 %v2486_v45 }
  0xd0   : > { %1086 = vmatpush.bf16.msra.mxu0 %v1464_v37  ;;  %1528 = vmatpush.bf16.msra.mxu1 %v1464_v37 }
  0xd1   : > { %1529 = vmatpush.bf16.msra.mxu2 %v1464_v37  ;;  %1530 = vmatpush.bf16.msra.mxu3 %v1464_v37  ;;  %v923_v55 = vsel %vm921_vm10, %v906_v20, %v1712_v43  ;;  %v1130_v37 = vld [vmem:[%s2527_s17 + $0x10] sm:$0xff]  ;;  %v1132_v43 = vld [vmem:[%s2527_s17 + $0x20] sm:$0xff] }
  0xd2   : > { %1186 = vperm.xlu1 %1868, %v1136_v22   ;;  %1156 = vperm.xlu0 %1870, %v1130_v37  }
  0xd3   : > { %v1705_v24 = vpop.permute.xlu1 %1704  ;;  %1166 = vperm.xlu2 %1869, %v1132_v43  }
  0xd4   : > { %v1707_v46 = vunpack.i.h.bf16 %v1705_v24  ;;  %v1706_v5 = vunpack.i.l.bf16 %v1705_v24  ;;  %v2522_v47 = vpop.permute.xlu0 %1699  ;;  %v910_v24 = vsel %vm904_vm9, %v2459_v53, %v1682_v50 }
  0xd6   : > { %v2531_v26 = vsel %vm904_vm9, %v2439_v58, %v1706_v5  ;;  %v2535_v7 = vsel %vm904_vm9, %v2442_v59, %v1707_v46 }
  0xd7   : > { %v1755_v62 = vpop.permute.xlu2 %1754 }
  0xd8   : > { %v1757_v2 = vunpack.i.h.bf16 %v1755_v62  ;;  %v1756_v54 = vunpack.i.l.bf16 %v1755_v62 }
  0xda   : > { %1201 = vperm.xlu1 %1868, %v1139_v13  }
  0xdb   : > { %v2543_v58 = vpop.permute.xlu1 %1719 }
  0xdc   : > { %v2545_v59 = vpop.permute.xlu0 %1714  ;;  %v1721_v10 = vunpack.i.l.bf16 %v2543_v58  ;;  %v1722_v45 = vunpack.i.h.bf16 %v2543_v58 }
  0xde   : > { %v926_v35 = vsel %vm921_vm10, %v909_v23, %v1721_v10  ;;  %v927_v56 = vsel %vm921_vm10, %v910_v24, %v1722_v45  ;;  %v1142_v10 = vld [vmem:[%s2527_s17 + $0x70] sm:$0xff]  ;;  %v1717_v24 = vunpack.i.h.bf16 %v2545_v59 }
  0xdf   : > { %v2555_v44 = vpop.permute.xlu2 %1769 }
  0xe0   : > { %v1772_v62 = vunpack.i.h.bf16 %v2555_v44  ;;  %v1771_v53 = vunpack.i.l.bf16 %v2555_v44  ;;  %v1691_v44 = vunpack.i.l.bf16 %v2503_v17 }
  0xe2   : > { %1216 = vperm.xlu1 %1868, %v1142_v10  }
  0xe3   : > { %v2548_v16 = vpop.permute.xlu1 %1734 }
  0xe4   : > { %v2550_v15 = vpop.permute.xlu0 %1729 }
  0xe5   : > { %v1732_v50 = vunpack.i.h.bf16 %v2550_v15 }
  0xe7   : > { %v2575_v40 = vpop.permute.xlu2 %1784 }
  0xeb   : > { %v1750_v12 = vpop.permute.xlu1 %1749 }
  0xec   : > { %v2557_v41 = vpop.permute.xlu0 %1744  ;;  %v1752_v36 = vunpack.i.h.bf16 %v1750_v12  ;;  %v1751_v31 = vunpack.i.l.bf16 %v1750_v12 }
  0xee   : > { %v939_v32 = vsel %vm938_vm11, %v922_v28, %v1751_v31  ;;  %v940_v19 = vsel %vm938_vm11, %v923_v55, %v1752_v36  ;;  %v1692_v36 = vunpack.i.h.bf16 %v2503_v17  ;;  %v1731_v28 = vunpack.i.l.bf16 %v2550_v15  ;;  %v1135_v17 = vld [vmem:[%s2527_s17 + $0x38] sm:$0xff] }
  0xef   : > { %v956_v8 = vsel %vm955_vm12, %v939_v32, %v1756_v54  ;;  %v957_v39 = vsel %vm955_vm12, %v940_v19, %v1757_v2  ;;  %1181 = vperm.xlu0 %1870, %v1135_v17  }
  0xf0   : > { %v914_v15 = vsel %vm904_vm9, %v2402_v42, %v1692_v36  ;;  %v1716_v42 = vunpack.i.l.bf16 %v2545_v59 }
  0xf3   : > { %v1765_v3 = vpop.permute.xlu1 %1764 }
  0xf4   : > { %v1760_v6 = vpop.permute.xlu0 %1759  ;;  %v1767_v48 = vunpack.i.h.bf16 %v1765_v3  ;;  %v1766_v38 = vunpack.i.l.bf16 %v1765_v3  ;;  %v1800_v3 = vpop.permute.xlu2 %1799 }
  0xf5   : > { %v1762_v30 = vunpack.i.h.bf16 %v1760_v6  ;;  %v1761_v0 = vunpack.i.l.bf16 %v1760_v6  ;;  %v913_v6 = vsel %vm904_vm9, %v2399_v21, %v1691_v44  ;;  %v1137_v44 = vld [vmem:[%s2527_s17 + $0x48] sm:$0xff] }
  0xf6   : > { %v943_v34 = vsel %vm938_vm11, %v926_v35, %v1766_v38  ;;  %v944_v27 = vsel %vm938_vm11, %v927_v56, %v1767_v48  ;;  %v930_v45 = vsel %vm921_vm10, %v913_v6, %v1731_v28  ;;  %v1134_v38 = vld [vmem:[%s2527_s17 + $0x30] sm:$0xff]  ;;  %v1741_v28 = vunpack.i.l.bf16 %v2541_v52 }
  0xf7   : > { %v973_v46 = vsel %vm972_vm13, %v956_v8, %v1761_v0  ;;  %v974_v5 = vsel %vm972_vm13, %v957_v39, %v1762_v30  ;;  %v960_v31 = vsel %vm955_vm12, %v943_v34, %v1771_v53  ;;  %v961_v22 = vsel %vm955_vm12, %v944_v27, %v1772_v62  ;;  %1176 = vperm.xlu2 %1869, %v1134_v38   ;;  %v1138_v56 = vld [vmem:[%s2527_s17 + $0x50] sm:$0xff] }
  0xf8   : > { %v990_v58 = vsel %vm989_vm14, %v973_v46, 0.0  ;;  %v991_v9 = vsel %vm989_vm14, %v974_v5, 0.0  ;;  %v931_v30 = vsel %vm921_vm10, %v914_v15, %v1732_v50  ;;  %v1787_v0 = vunpack.i.h.bf16 %v2575_v40  ;;  %1196 = vperm.xlu0 %1870, %v1138_v56  }
  0xf9   : > { %v1006_v33 = vpack.c.bf16 %v991_v9, %v990_v58  ;;  %v1786_v8 = vunpack.i.l.bf16 %v2575_v40  ;;  %v924_v62 = vsel %vm921_vm10, %v2490_v1, %v1716_v42  ;;  %v1802_v34 = vunpack.i.h.bf16 %v1800_v3 }
  0xfa   : > { %v1801_v27 = vunpack.i.l.bf16 %v1800_v3  ;;  %v1742_v50 = vunpack.i.h.bf16 %v2541_v52  ;;  %v1727_v38 = vunpack.i.h.bf16 %v2516_v18 }
  0xfb   : > { %1454 = vmatmul.msk.bf16.vlgmr.msra.gmra.mxu0 %vm1054_vm15, %v1006_v33  ;;  %v1780_v12 = vpop.permute.xlu1 %1779  ;;  %v925_v33 = vsel %vm921_vm10, %v2494_v25, %v1717_v24 }
  0xfc   : > { %v1782_v60 = vunpack.i.h.bf16 %v1780_v12  ;;  %v1781_v49 = vunpack.i.l.bf16 %v1780_v12  ;;  %v1775_v20 = vpop.permute.xlu0 %1774  ;;  %v1815_v43 = vpop.permute.xlu2 %1814 }
  0xfd   : > { %v1777_v54 = vunpack.i.h.bf16 %v1775_v20  ;;  %v1776_v57 = vunpack.i.l.bf16 %v1775_v20  ;;  %v1817_v15 = vunpack.i.h.bf16 %v1815_v43 }
  0xfe   : > { %v977_v55 = vsel %vm972_vm13, %v960_v31, %v1781_v49  ;;  %v978_v2 = vsel %vm972_vm13, %v961_v22, %v1782_v60  ;;  %v1702_v60 = vunpack.i.h.bf16 %v2522_v47  ;;  %v1701_v49 = vunpack.i.l.bf16 %v2522_v47 }
  0xff   : > { %v994_v32 = vsel %vm989_vm14, %v977_v55, 0.0  ;;  %v995_v19 = vsel %vm989_vm14, %v978_v2, 0.0  ;;  %v947_v39 = vsel %vm938_vm11, %v930_v45, %v1776_v57  ;;  %v948_v48 = vsel %vm938_vm11, %v931_v30, %v1777_v54  ;;  %1191 = vperm.xlu2 %1869, %v1137_v44   ;;  %v1141_v2 = vld [vmem:[%s2527_s17 + $0x68] sm:$0xff] }
 0x100   : > { %v1008_v11 = vpack.c.bf16 %v995_v19, %v994_v32  ;;  %v964_v37 = vsel %vm955_vm12, %v947_v39, %v1786_v8  ;;  %v965_v40 = vsel %vm955_vm12, %v948_v48, %v1787_v0  ;;  %v917_v54 = vsel %vm904_vm9, %v2468_v4, %v1701_v49  ;;  %1211 = vperm.xlu0 %1870, %v1141_v2   ;;  %v1140_v39 = vld [vmem:[%s2527_s17 + $0x60] sm:$0xff] }
 0x101   : > { %v918_v57 = vsel %vm904_vm9, %v2472_v63, %v1702_v60  ;;  %v934_v6 = vsel %vm921_vm10, %v917_v54, %v1741_v28  ;;  %v1816_v45 = vunpack.i.l.bf16 %v1815_v43  ;;  %v1726_v48 = vunpack.i.l.bf16 %v2516_v18 }
 0x102   : > { %1456 = vmatmul.msk.bf16.vlgmr.msra.gmra.mxu1 %vm1054_vm15, %v1008_v11  ;;  %v935_v4 = vsel %vm921_vm10, %v918_v57, %v1742_v50 }
 0x103   : > { %v1795_v21 = vpop.permute.xlu1 %1794 }
 0x104   : > { %v1790_v23 = vpop.permute.xlu0 %1789  ;;  %v1797_v13 = vunpack.i.h.bf16 %v1795_v21  ;;  %v1796_v35 = vunpack.i.l.bf16 %v1795_v21  ;;  %v1830_v8 = vpop.permute.xlu2 %1829 }
 0x105   : > { %v1792_v46 = vunpack.i.h.bf16 %v1790_v23  ;;  %v1791_v5 = vunpack.i.l.bf16 %v1790_v23  ;;  %v1832_v56 = vunpack.i.h.bf16 %v1830_v8 }
 0x106   : > { %v941_v20 = vsel %vm938_vm11, %v924_v62, %v1796_v35  ;;  %v942_v1 = vsel %vm938_vm11, %v925_v33, %v1797_v13  ;;  %v928_v35 = vsel %vm921_vm10, %v2514_v51, %v1726_v48  ;;  %v1831_v62 = vunpack.i.l.bf16 %v1830_v8 }
 0x107   : > { %v981_v58 = vsel %vm972_vm13, %v964_v37, %v1791_v5  ;;  %v982_v9 = vsel %vm972_vm13, %v965_v40, %v1792_v46  ;;  %v958_v55 = vsel %vm955_vm12, %v941_v20, %v1801_v27  ;;  %v959_v47 = vsel %vm955_vm12, %v942_v1, %v1802_v34  ;;  %1206 = vperm.xlu2 %1869, %v1140_v39  }
 0x108   : > { %v998_v53 = vsel %vm989_vm14, %v981_v58, 0.0  ;;  %v999_v59 = vsel %vm989_vm14, %v982_v9, 0.0  ;;  %v929_v9 = vsel %vm921_vm10, %v2511_v14, %v1727_v38  ;;  %v1737_v20 = vunpack.i.h.bf16 %v2548_v16 }
 0x109   : > { %v1010_v12 = vpack.c.bf16 %v999_v59, %v998_v53  ;;  %v1143_v59 = vld [vmem:[%s2527_s17 + $0x78] sm:$0xff]  ;;  %v1736_v1 = vunpack.i.l.bf16 %v2548_v16 }
 0x10b   : > { %1458 = vmatmul.msk.bf16.vlgmr.msra.gmra.mxu2 %vm1054_vm15, %v1010_v12  ;;  %v1810_v36 = vpop.permute.xlu1 %1809 }
 0x10c   : > { %v1812_v31 = vunpack.i.h.bf16 %v1810_v36  ;;  %v1811_v22 = vunpack.i.l.bf16 %v1810_v36  ;;  %v1805_v25 = vpop.permute.xlu0 %1804  ;;  %v1845_v14 = vpop.permute.xlu2 %1844 }
 0x10d   : > { %v1807_v3 = vunpack.i.h.bf16 %v1805_v25  ;;  %v1806_v17 = vunpack.i.l.bf16 %v1805_v25  ;;  %v1847_v2 = vunpack.i.h.bf16 %v1845_v14  ;;  %v1846_v54 = vunpack.i.l.bf16 %v1845_v14 }
 0x10e   : > { %v975_v32 = vsel %vm972_vm13, %v958_v55, %v1811_v22  ;;  %v976_v19 = vsel %vm972_vm13, %v959_v47, %v1812_v31  ;;  %v932_v55 = vsel %vm921_vm10, %v2479_v61, %v1736_v1  ;;  %v933_v47 = vsel %vm921_vm10, %v2482_v29, %v1737_v20 }
 0x10f   : > { %v992_v52 = vsel %vm989_vm14, %v975_v32, 0.0  ;;  %v993_v11 = vsel %vm989_vm14, %v976_v19, 0.0  ;;  %v951_v63 = vsel %vm938_vm11, %v934_v6, %v1806_v17  ;;  %v952_v30 = vsel %vm938_vm11, %v935_v4, %v1807_v3  ;;  %1221 = vperm.xlu2 %1869, %v1143_v59  }
 0x110   : > { %v1007_v10 = vpack.c.bf16 %v993_v11, %v992_v52  ;;  %v968_v24 = vsel %vm955_vm12, %v951_v63, %v1816_v45  ;;  %v969_v46 = vsel %vm955_vm12, %v952_v30, %v1817_v15  ;;  %v1747_v52 = vunpack.i.h.bf16 %v2557_v41 }
 0x111   : > { %v1746_v11 = vunpack.i.l.bf16 %v2557_v41 }
 0x112   : > { %1455 = vmatmul.msk.bf16.gmra.mxu0 %vm1054_vm15, %v1007_v10  ;;  %v937_v41 = vsel %vm921_vm10, %v2535_v7, %v1747_v52 }
 0x113   : > { %v1825_v0 = vpop.permute.xlu1 %1824  ;;  %v936_v8 = vsel %vm921_vm10, %v2531_v26, %v1746_v11 }
 0x114   : > { %v1820_v21 = vpop.permute.xlu0 %1819  ;;  %v1827_v5 = vunpack.i.h.bf16 %v1825_v0  ;;  %v1826_v37 = vunpack.i.l.bf16 %v1825_v0  ;;  %v1860_v4 = vpop.permute.xlu2 %1859 }
 0x115   : > { %v1822_v42 = vunpack.i.h.bf16 %v1820_v21  ;;  %v1821_v23 = vunpack.i.l.bf16 %v1820_v21  ;;  %v1862_v39 = vunpack.i.h.bf16 %v1860_v4  ;;  %v1861_v48 = vunpack.i.l.bf16 %v1860_v4 }
 0x116   : > { %v945_v33 = vsel %vm938_vm11, %v928_v35, %v1826_v37  ;;  %v946_v34 = vsel %vm938_vm11, %v929_v9, %v1827_v5 }
 0x117   : > { %v985_v40 = vsel %vm972_vm13, %v968_v24, %v1821_v23  ;;  %v986_v13 = vsel %vm972_vm13, %v969_v46, %v1822_v42  ;;  %v962_v60 = vsel %vm955_vm12, %v945_v33, %v1831_v62  ;;  %v963_v49 = vsel %vm955_vm12, %v946_v34, %v1832_v56 }
 0x118   : > { %v1002_v58 = vsel %vm989_vm14, %v985_v40, 0.0  ;;  %v1003_v18 = vsel %vm989_vm14, %v986_v13, 0.0 }
 0x119   : > { %v1012_v53 = vpack.c.bf16 %v1003_v18, %v1002_v58 }
 0x11b   : > { %1460 = vmatmul.msk.bf16.vlgmr.msra.gmra.mxu3 %vm1054_vm15, %v1012_v53  ;;  %v1840_v27 = vpop.permute.xlu1 %1839 }
 0x11c   : > { %v1842_v12 = vunpack.i.h.bf16 %v1840_v27  ;;  %v1841_v51 = vunpack.i.l.bf16 %v1840_v27  ;;  %v1835_v43 = vpop.permute.xlu0 %1834 }
 0x11d   : > { %v1837_v31 = vunpack.i.h.bf16 %v1835_v43  ;;  %v1836_v22 = vunpack.i.l.bf16 %v1835_v43 }
 0x11e   : > { %v979_v36 = vsel %vm972_vm13, %v962_v60, %v1841_v51  ;;  %v980_v44 = vsel %vm972_vm13, %v963_v49, %v1842_v12 }
 0x11f   : > { %v996_v25 = vsel %vm989_vm14, %v979_v36, 0.0  ;;  %v997_v50 = vsel %vm989_vm14, %v980_v44, 0.0  ;;  %v949_v16 = vsel %vm938_vm11, %v932_v55, %v1836_v22  ;;  %v950_v57 = vsel %vm938_vm11, %v933_v47, %v1837_v31 }
 0x120   : > { %v1009_v28 = vpack.c.bf16 %v997_v50, %v996_v25  ;;  %v966_v61 = vsel %vm955_vm12, %v949_v16, %v1846_v54  ;;  %v967_v29 = vsel %vm955_vm12, %v950_v57, %v1847_v2 }
 0x121   : > { %v1152_v59 = vpop.permute.xlu2 %1151 }
 0x122   : > { %1457 = vmatmul.msk.bf16.gmra.mxu1 %vm1054_vm15, %v1009_v28 }
 0x123   : > { %v1855_v32 = vpop.permute.xlu1 %1854 }
 0x124   : > { %v1850_v19 = vpop.permute.xlu0 %1849  ;;  %v1857_v10 = vunpack.i.h.bf16 %v1855_v32  ;;  %v1856_v6 = vunpack.i.l.bf16 %v1855_v32 }
 0x125   : > { %v1852_v3 = vunpack.i.h.bf16 %v1850_v19  ;;  %v1851_v17 = vunpack.i.l.bf16 %v1850_v19 }
 0x126   : > { %v953_v21 = vsel %vm938_vm11, %v936_v8, %v1856_v6  ;;  %v954_v38 = vsel %vm938_vm11, %v937_v41, %v1857_v10 }
 0x127   : > { %v983_v15 = vsel %vm972_vm13, %v966_v61, %v1851_v17  ;;  %v984_v45 = vsel %vm972_vm13, %v967_v29, %v1852_v3  ;;  %v970_v46 = vsel %vm955_vm12, %v953_v21, %v1861_v48  ;;  %v971_v5 = vsel %vm955_vm12, %v954_v38, %v1862_v39 }
 0x128   : > { %v1000_v63 = vsel %vm989_vm14, %v983_v15, 0.0  ;;  %v1001_v30 = vsel %vm989_vm14, %v984_v45, 0.0 }
 0x129   : > { %v1011_v0 = vpack.c.bf16 %v1001_v30, %v1000_v63 }
 0x12b   : > { %1459 = vmatmul.msk.bf16.gmra.mxu2 %vm1054_vm15, %v1011_v0  ;;  %v1147_v56 = vpop.permute.xlu1 %1146 }
 0x12c   : > { %v1865_v42 = vpop.permute.xlu0 %1864 }
 0x12d   : > { %v1867_v23 = vunpack.i.h.bf16 %v1865_v42  ;;  %v1866_v24 = vunpack.i.l.bf16 %v1865_v42  ;;  %v1167_v12 = vpop.permute.xlu2 %1166 }
 0x12f   : > { %v987_v26 = vsel %vm972_vm13, %v970_v46, %v1866_v24  ;;  %v988_v7 = vsel %vm972_vm13, %v971_v5, %v1867_v23 }
 0x130   : > { %v1004_v37 = vsel %vm989_vm14, %v987_v26, 0.0  ;;  %v1005_v40 = vsel %vm989_vm14, %v988_v7, 0.0 }
 0x131   : > { %v1013_v13 = vpack.c.bf16 %v1005_v40, %v1004_v37 }
 0x133   : > { %1461 = vmatmul.msk.bf16.gmra.mxu3 %vm1054_vm15, %v1013_v13 }
 0x134   : > { %v1162_v27 = vpop.permute.xlu1 %1161 }
 0x13c   : > { %v1172_v25 = vpop.permute.xlu1 %1171 }
 0x144   : > { %v1157_v43 = vpop.permute.xlu0 %1156  ;;  %v1187_v6 = vpop.permute.xlu1 %1186 }
 0x14c   : > { %v1202_v37 = vpop.permute.xlu1 %1201 }
 0x151   : > { %v1177_v3 = vpop.permute.xlu2 %1176 }
 0x159   : > { %v1192_v38 = vpop.permute.xlu2 %1191 }
 0x161   : > { %v1182_v10 = vpop.permute.xlu0 %1181 }
 0x16a   : > { %v1197_v26 = vpop.permute.xlu0 %1196 }
 0x178   : > { %v1088_v35 = vpop.f32.mrf.mxu0 }
 0x179   : > { %v1224_v49 = vmul.f32 %v1147_v56, %v1088_v35 }
 0x17b   : > { %v1261_v22 = vmul.f32 %v1224_v49, %v1088_v35 }
 0x17f   : > { %v1098_v58 = vpop.f32.mrf.mxu1 }
 0x180   : > { %v1090_v18 = vpop.f32.mrf.mxu0  ;;  %v1228_v16 = vmul.f32 %v1167_v12, %v1098_v58 }
 0x181   : > { %v1472_v9 = vpack.c.bf16 %v1090_v18, %v1088_v35  ;;  %v1225_v51 = vmul.f32 %v1152_v59, %v1090_v18 }
 0x182   : > { %v1265_v52 = vmul.f32 %v1228_v16, %v1098_v58 }
 0x183   : > { %1473 = vst [vmem:[%s2716_s23] sm:$0xff] %v1472_v9   ;;  %v1262_v44 = vmul.f32 %v1225_v51, %v1090_v18  ;;  %v1240_v50 = vadd.f32 %v1225_v51, %v1224_v49 }
 0x185   : > { %v1277_v55 = vadd.f32 %v1262_v44, %v1261_v22 }
 0x187   : > { %v1100_v62 = vpop.f32.mrf.mxu1 }
 0x188   : > { %v1482_v53 = vpack.c.bf16 %v1100_v62, %v1098_v58  ;;  %v1229_v11 = vmul.f32 %v1172_v25, %v1100_v62 }
 0x18a   : > { %1510 = vst [vmem:[%s2716_s23 + $0x10] sm:$0xff] %v1482_v53   ;;  %v1266_v45 = vmul.f32 %v1229_v11, %v1100_v62  ;;  %v1207_v62 = vpop.permute.xlu2 %1206 }
 0x18e   : > { %v1108_v33 = vpop.f32.mrf.mxu2 }
 0x18f   : > { %v1093_v34 = vpop.f32.mrf.mxu0  ;;  %v1232_v23 = vmul.f32 %v1187_v6, %v1108_v33 }
 0x190   : > { %v1226_v14 = vmul.f32 %v1157_v43, %v1093_v34 }
 0x191   : > { %v1269_v40 = vmul.f32 %v1232_v23, %v1108_v33 }
 0x192   : > { %v1263_v28 = vmul.f32 %v1226_v14, %v1093_v34  ;;  %v1241_v47 = vadd.f32 %v1240_v50, %v1226_v14  ;;  %v1212_v14 = vpop.permute.xlu0 %1211 }
 0x194   : > { %v1278_v57 = vadd.f32 %v1277_v55, %v1263_v28 }
 0x196   : > { %v1110_v60 = vpop.f32.mrf.mxu2 }
 0x197   : > { %v1492_v20 = vpack.c.bf16 %v1110_v60, %v1108_v33  ;;  %v1095_v1 = vpop.f32.mrf.mxu0  ;;  %v1233_v13 = vmul.f32 %v1192_v38, %v1110_v60 }
 0x198   : > { %v1477_v36 = vpack.c.bf16 %v1095_v1, %v1093_v34  ;;  %v1227_v31 = vmul.f32 %v1162_v27, %v1095_v1 }
 0x199   : > { %1512 = vst [vmem:[%s2716_s23 + $0x20] sm:$0xff] %v1492_v20   ;;  %v1270_v9 = vmul.f32 %v1233_v13, %v1110_v60  ;;  %v1217_v20 = vpop.permute.xlu1 %1216 }
 0x19a   : > { %1509 = vst [vmem:[%s2716_s23 + $0x8] sm:$0xff] %v1477_v36   ;;  %v1264_v2 = vmul.f32 %v1227_v31, %v1095_v1  ;;  %v1242_v32 = vadd.f32 %v1241_v47, %v1227_v31  ;;  %v1222_v47 = vpop.permute.xlu2 %1221 }
 0x19c   : > { %v1279_v17 = vadd.f32 %v1278_v57, %v1264_v2  ;;  %v1243_v61 = vadd.f32 %v1242_v32, %v1228_v16 }
 0x19e   : > { %v1118_v54 = vpop.f32.mrf.mxu3  ;;  %v1280_v4 = vadd.f32 %v1279_v17, %v1265_v52  ;;  %v1244_v63 = vadd.f32 %v1243_v61, %v1229_v11 }
 0x19f   : > { %v1103_v19 = vpop.f32.mrf.mxu1  ;;  %v1236_v12 = vmul.f32 %v1207_v62, %v1118_v54 }
 0x1a0   : > { %v1230_v29 = vmul.f32 %v1177_v3, %v1103_v19  ;;  %v1281_v21 = vadd.f32 %v1280_v4, %v1266_v45 }
 0x1a1   : > { %v1273_v60 = vmul.f32 %v1236_v12, %v1118_v54 }
 0x1a2   : > { %v1267_v30 = vmul.f32 %v1230_v29, %v1103_v19  ;;  %v1245_v48 = vadd.f32 %v1244_v63, %v1230_v29 }
 0x1a4   : > { %v1282_v24 = vadd.f32 %v1281_v21, %v1267_v30 }
 0x1a6   : > { %v1120_v15 = vpop.f32.mrf.mxu3 }
 0x1a7   : > { %v1502_v0 = vpack.c.bf16 %v1120_v15, %v1118_v54  ;;  %v1105_v8 = vpop.f32.mrf.mxu1  ;;  %v1237_v1 = vmul.f32 %v1212_v14, %v1120_v15 }
 0x1a8   : > { %v1231_v41 = vmul.f32 %v1182_v10, %v1105_v8  ;;  %v1487_v39 = vpack.c.bf16 %v1105_v8, %v1103_v19 }
 0x1a9   : > { %1514 = vst [vmem:[%s2716_s23 + $0x30] sm:$0xff] %v1502_v0   ;;  %v1274_v50 = vmul.f32 %v1237_v1, %v1120_v15 }
 0x1aa   : > { %v1268_v42 = vmul.f32 %v1231_v41, %v1105_v8  ;;  %1511 = vst [vmem:[%s2716_s23 + $0x18] sm:$0xff] %v1487_v39   ;;  %v1246_v46 = vadd.f32 %v1245_v48, %v1231_v41 }
 0x1ac   : > { %v1283_v5 = vadd.f32 %v1282_v24, %v1268_v42  ;;  %v1247_v35 = vadd.f32 %v1246_v46, %v1232_v23 }
 0x1ae   : > { %v1113_v7 = vpop.f32.mrf.mxu2  ;;  %v1284_v58 = vadd.f32 %v1283_v5, %v1269_v40  ;;  %v1248_v56 = vadd.f32 %v1247_v35, %v1233_v13 }
 0x1af   : > { %v1234_v18 = vmul.f32 %v1197_v26, %v1113_v7 }
 0x1b0   : > { %v1285_v59 = vadd.f32 %v1284_v58, %v1270_v9 }
 0x1b1   : > { %v1271_v53 = vmul.f32 %v1234_v18, %v1113_v7  ;;  %v1249_v51 = vadd.f32 %v1248_v56, %v1234_v18 }
 0x1b3   : > { %v1286_v33 = vadd.f32 %v1285_v59, %v1271_v53 }
 0x1b6   : > { %v1115_v34 = vpop.f32.mrf.mxu2  ;;  %v1123_v27 = vpop.f32.mrf.mxu3 }
 0x1b7   : > { %v1235_v43 = vmul.f32 %v1202_v37, %v1115_v34  ;;  %v1497_v49 = vpack.c.bf16 %v1115_v34, %v1113_v7  ;;  %v1238_v31 = vmul.f32 %v1217_v20, %v1123_v27 }
 0x1b9   : > { %v1250_v36 = vadd.f32 %v1249_v51, %v1235_v43  ;;  %v1272_v44 = vmul.f32 %v1235_v43, %v1115_v34  ;;  %1513 = vst [vmem:[%s2716_s23 + $0x28] sm:$0xff] %v1497_v49   ;;  %v1275_v2 = vmul.f32 %v1238_v31, %v1123_v27 }
 0x1bb   : > { %v1251_v22 = vadd.f32 %v1250_v36, %v1236_v12  ;;  %v1287_v25 = vadd.f32 %v1286_v33, %v1272_v44 }
 0x1bd   : > { %v1288_v28 = vadd.f32 %v1287_v25, %v1273_v60  ;;  %v1252_v55 = vadd.f32 %v1251_v22, %v1237_v1 }
 0x1be   : > { %v1125_v16 = vpop.f32.mrf.mxu3 }
 0x1bf   : > { %v1253_v57 = vadd.f32 %v1252_v55, %v1238_v31  ;;  %v1289_v32 = vadd.f32 %v1288_v28, %v1274_v50  ;;  %v1239_v19 = vmul.f32 %v1222_v47, %v1125_v16  ;;  %v1507_v3 = vpack.c.bf16 %v1125_v16, %v1123_v27 }
 0x1c1   : > { %v1290_v17 = vadd.f32 %v1289_v32, %v1275_v2  ;;  %v1254_v52 = vadd.f32 %v1253_v57, %v1239_v19  ;;  %v1276_v11 = vmul.f32 %v1239_v19, %v1125_v16  ;;  %1515 = vst [vmem:[%s2716_s23 + $0x38] sm:$0xff] %v1507_v3  }
 0x1c3   : > { %v1255_v54 = vrot.slane %v1254_v52, 4  ;;  %v1291_v61 = vadd.f32 %v1290_v17, %v1276_v11 }
 0x1c5   : > { %v1256_v29 = vadd.f32 %v1255_v54, %v1254_v52  ;;  %v1292_v10 = vrot.slane %v1291_v61, 4 }
 0x1c7   : > { %v1257_v6 = vrot.slane %v1256_v29, 2  ;;  %v1293_v4 = vadd.f32 %v1292_v10, %v1291_v61 }
 0x1c9   : > { %v1258_v15 = vadd.f32 %v1257_v6, %v1256_v29  ;;  %v1294_v45 = vrot.slane %v1293_v4, 2 }
 0x1cb   : > { %v1259_v63 = vrot.slane %v1258_v15, 1  ;;  %v1295_v30 = vadd.f32 %v1294_v45, %v1293_v4 }
 0x1cd   : > { %v1296_v0 = vrot.slane %v1295_v30, 1  ;;  %v1260_v8 = vadd.f32 %v1259_v63, %v1258_v15 }
 0x1cf   : > { %v1297_v41 = vadd.f32 %v1296_v0, %v1295_v30 }
 0x1d1   : > { %v1299_v39 = vsel %vm1298_vm0, %v1260_v8, %v1297_v41 }
 0x1d2   : > { %v1300_v48 = vsel %vm771_vm5, %v1299_v39, 0.0 }
 0x1d3   : > { %1301 = vst [vmem:[%s211_s27] sm:$0xff] %v1300_v48 }
 0x1d4 PF: > { %s15_s15 = sadd.s32 1, %s1877_s15  }
 0x1d5   : > { %p12_p5 = scmp.ge.s32.totalorder %s15_s15, 8  }
 0x1d7   :  { %14 = sbr.rel (!%p12_p5) target bundleno = 1 (0x1), region = 75 }

</bundles_post_ra>
